<compile_context>
chip_gen: v5e
topology: v5e:2x2
jax: 0.10.0
libtpu: 0.0.40
codegen_flags: <defaults>
</compile_context>

<pallas_src>
import jax
import jax.numpy as jnp
from jax.experimental import pallas as pl
from jax.experimental.pallas import tpu as pltpu

H = W = 5
CIN, C1, C2 = 1, 16, 32
NUM_CLASSES = 7


# ----------------------------------------------------------------------------
# Small helpers (init / pack time only).
# ----------------------------------------------------------------------------
def _round_up(x, m):
    return ((x + m - 1) // m) * m


def _pad2d(w, rows, cols, dtype):
    out = jnp.zeros((rows, cols), jnp.float32)
    out = out.at[: w.shape[0], : w.shape[1]].set(w.astype(jnp.float32))
    return out.astype(dtype)


def _pad_bias(b, cols):
    out = jnp.zeros((1, cols), jnp.float32)
    return out.at[0, : b.shape[0]].set(b.astype(jnp.float32))


def _conv3x3_same_as_matrix(w_oihw, h, w):
    """Dense Toeplitz matrix M with flatten_nchw(conv(x)) == flatten_nchw(x) @ M.

    Entries of M are exactly the conv weights (identity-probe construction), so
    casting M to bf16 is identical to casting the conv weights to bf16.
    """
    cout, cin, _, _ = w_oihw.shape
    eye = jnp.eye(cin * h * w, dtype=jnp.float32).reshape(cin * h * w, cin, h, w)
    y = jax.lax.conv_general_dilated(
        eye, w_oihw.astype(jnp.float32), window_strides=(1, 1), padding="SAME",
        dimension_numbers=("NCHW", "OIHW", "NCHW"),
        precision=jax.lax.Precision.HIGHEST)
    return y.reshape(cin * h * w, cout * h * w)


# ----------------------------------------------------------------------------
# Parameter construction (deterministic, synthetic) + packing to GEMM form.
# ----------------------------------------------------------------------------
def init_params(key):
    ks = jax.random.split(key, 12)

    def dense(kw, kb, shape_w):
        fan_in = shape_w[0] if len(shape_w) == 2 else shape_w[1] * shape_w[2] * shape_w[3]
        scale = 1.0 / jnp.sqrt(jnp.float32(fan_in))
        w = jax.random.normal(kw, shape_w, jnp.float32) * scale
        b = jax.random.normal(
            kb, (shape_w[-1] if len(shape_w) == 2 else shape_w[0],), jnp.float32) * scale
        return w, b

    p = {}
    p["conv1_w"], p["conv1_b"] = dense(ks[0], ks[1], (C1, CIN, 3, 3))   # (O,I,kh,kw)
    p["conv2_w"], p["conv2_b"] = dense(ks[2], ks[3], (C2, C1, 3, 3))
    p["fc1_w"], p["fc1_b"] = dense(ks[4], ks[5], (C2 * H * W, 128))     # (in,out)
    p["fc2_w"], p["fc2_b"] = dense(ks[6], ks[7], (128, 64))
    p["fc3_w"], p["fc3_b"] = dense(ks[8], ks[9], (64, 32))
    p["fc4_w"], p["fc4_b"] = dense(ks[10], ks[11], (32, NUM_CLASSES))
    return p


def pack_params(params, weight_dtype=jnp.bfloat16):
    """One-time weight preprocessing: convs -> Toeplitz GEMMs, pad, cast to bf16.

    Padded rows/cols are exact zeros, so padded lanes stay zero through
    bias+ReLU and results are exact (up to bf16 weight rounding).
    Biases stay f32 (bias-add/ReLU are done in f32 on the VPU).
    """
    d0 = _round_up(CIN * H * W, 32)          # 25  -> 32   (input features)
    d1 = _round_up(C1 * H * W, 128)          # 400 -> 512
    d2 = _round_up(C2 * H * W, 128)          # 800 -> 896  (128-aligned, not 1024)
    d3 = 128                                 # fc1 out
    d4 = _round_up(64, 128)                  # 64  -> 128
    d5 = _round_up(32, 128)                  # 32  -> 128
    d6 = _round_up(NUM_CLASSES, 128)         # 7   -> 128

    w1 = _conv3x3_same_as_matrix(params["conv1_w"], H, W)        # (25, 400)
    b1 = jnp.repeat(params["conv1_b"], H * W)                    # (400,) NCHW order
    w2 = _conv3x3_same_as_matrix(params["conv2_w"], H, W)        # (400, 800)
    b2 = jnp.repeat(params["conv2_b"], H * W)                    # (800,)

    mats = [
        (_pad2d(w1, d0, d1, weight_dtype), _pad_bias(b1, d1)),
        (_pad2d(w2, d1, d2, weight_dtype), _pad_bias(b2, d2)),
        (_pad2d(params["fc1_w"], d2, d3, weight_dtype), _pad_bias(params["fc1_b"], d3)),
        (_pad2d(params["fc2_w"], d3, d4, weight_dtype), _pad_bias(params["fc2_b"], d4)),
        (_pad2d(params["fc3_w"], d4, d5, weight_dtype), _pad_bias(params["fc3_b"], d5)),
        (_pad2d(params["fc4_w"], d5, d6, weight_dtype), _pad_bias(params["fc4_b"], d6)),
    ]
    return mats


# ----------------------------------------------------------------------------
# Fused Pallas kernel: 6 chained GEMM + bias (+ ReLU except last layer).
# Weights bf16 (MXU), accumulation/bias/ReLU f32; all intermediates on-chip.
# ----------------------------------------------------------------------------
def _fused_forward_kernel(x_ref, *refs):
    *wb, o_ref = refs
    n_layers = len(wb) // 2
    h = x_ref[...]                                    # f32 activations
    for li in range(n_layers):
        w = wb[2 * li][...]                           # bf16 weights
        b = wb[2 * li + 1][...]                       # f32 bias
        y = jnp.dot(h.astype(w.dtype), w, preferred_element_type=jnp.float32) + b
        h = jnp.maximum(y, 0.0) if li < n_layers - 1 else y
    o_ref[...] = h.astype(o_ref.dtype)


def _build_call(mats, m_pad, m_tile, d_in, d_out, single_buffer_weights):
    resident_kwargs = (
        {"pipeline_mode": pl.Buffered(1)} if single_buffer_weights else {}
    )
    in_specs = [pl.BlockSpec((m_tile, d_in), lambda i: (i, 0))]      # streamed rows
    for w, b in mats:
        in_specs.append(pl.BlockSpec(w.shape, lambda i: (0, 0), **resident_kwargs))
        in_specs.append(pl.BlockSpec(b.shape, lambda i: (0, 0), **resident_kwargs))

    return pl.pallas_call(
        _fused_forward_kernel,
        out_shape=jax.ShapeDtypeStruct((m_pad, d_out), jnp.float32),
        grid=(m_pad // m_tile,),
        in_specs=in_specs,
        out_specs=pl.BlockSpec((m_tile, d_out), lambda i: (i, 0)),
        compiler_params=pltpu.CompilerParams(
            dimension_semantics=("parallel",),          # row tiles shard across cores
            vmem_limit_bytes=32 * 1024 * 1024),         # safe on v5e/v6e/v7x
    )


def bayesian_nn_forward(mats, x_nchw):
    """mats: packed/padded weight-bias pairs; x_nchw: (N, 1, 5, 5) float.

    Fold Monte-Carlo samples (and any outer vmap) into N so each call presents
    >=128 rows to the MXU and the one-time weight DMA is amortized.
    """
    n = x_nchw.shape[0]
    d_in = mats[0][0].shape[0]
    d_out = mats[-1][0].shape[1]

    m_tile = min(256, _round_up(max(n, 1), 8))     # rows per grid step
    m_pad = _round_up(max(n, 1), m_tile)

    x_flat = x_nchw.reshape(n, CIN * H * W).astype(jnp.float32)
    x_pad = jnp.zeros((m_pad, d_in), jnp.float32).at[:n, : CIN * H * W].set(x_flat)

    flat_wb = [a for pair in mats for a in pair]

    # Prefer single-buffered resident weights (halves their VMEM footprint);
    # fall back to default double-buffered specs if pipeline_mode is rejected.
    try:
        out = _build_call(mats, m_pad, m_tile, d_in, d_out, True)(x_pad, *flat_wb)
    except Exception:
        out = _build_call(mats, m_pad, m_tile, d_in, d_out, False)(x_pad, *flat_wb)
    return out[:n, :NUM_CLASSES]


# ----------------------------------------------------------------------------
# Pure-JAX references (correctness checks only).
#   weight_dtype=bf16  -> numerics matched to the kernel (tight tolerance)
#   weight_dtype=f32   -> exact module math (loose tolerance, bf16 rounding)
# ----------------------------------------------------------------------------
def reference_forward(params, x_nchw, weight_dtype=jnp.float32):
    wd = weight_dtype

    def conv(x, w, b):
        y = jax.lax.conv_general_dilated(
            x.astype(wd), w.astype(wd), window_strides=(1, 1), padding="SAME",
            dimension_numbers=("NCHW", "OIHW", "NCHW"),
            preferred_element_type=jnp.float32,
            precision=jax.lax.Precision.HIGHEST)
        return jax.nn.relu(y + b[None, :, None, None].astype(jnp.float32))

    def fc(x, w, b, relu=True):
        y = jnp.dot(x.astype(wd), w.astype(wd),
                    preferred_element_type=jnp.float32,
                    precision=jax.lax.Precision.HIGHEST) + b.astype(jnp.float32)
        return jax.nn.relu(y) if relu else y

    x = conv(x_nchw.astype(jnp.float32), params["conv1_w"], params["conv1_b"])
    x = conv(x, params["conv2_w"], params["conv2_b"])
    x = x.reshape(x.shape[0], -1)
    x = fc(x, params["fc1_w"], params["fc1_b"])
    x = fc(x, params["fc2_w"], params["fc2_b"])
    x = fc(x, params["fc3_w"], params["fc3_b"])
    x = fc(x, params["fc4_w"], params["fc4_b"], relu=False)
    return x


if __name__ == "__main__":
    key = jax.random.PRNGKey(0)
    kp, kx = jax.random.split(key)
    params = init_params(kp)
    mats = pack_params(params)                     # one-time pack: Toeplitz + pad + bf16

    # 1) Tiny batch, exactly what the PyTorch module expects: (2, 1, 5, 5).
    x_small = jax.random.normal(kx, (2, CIN, H, W), jnp.float32)
    out_small = jax.block_until_ready(bayesian_nn_forward(mats, x_small))
    assert out_small.shape == (2, NUM_CLASSES), out_small.shape

    # 2) Monte-Carlo samples folded into the row dimension: 512 rows ->
    #    two 256-row grid steps (MXU-filling tiles, core-shardable grid).
    x_big = jax.random.normal(jax.random.fold_in(kx, 1), (512, CIN, H, W), jnp.float32)
    out_big = jax.block_until_ready(bayesian_nn_forward(mats, x_big))
    assert out_big.shape == (512, NUM_CLASSES), out_big.shape

    for out, x in ((out_small, x_small), (out_big, x_big)):
        ref_bf16 = reference_forward(params, x, jnp.bfloat16)   # numerics-matched
        ref_f32 = reference_forward(params, x, jnp.float32)     # exact module math
        err_bf16 = float(jnp.max(jnp.abs(out - ref_bf16)))
        err_f32 = float(jnp.max(jnp.abs(out - ref_f32)))
        assert jnp.allclose(out, ref_bf16, atol=1e-2, rtol=1e-2), err_bf16
        assert jnp.allclose(out, ref_f32, atol=5e-2, rtol=5e-2), err_f32

    print("KERNEL_OK")
</pallas_src>

<mosaic_0001>
module attributes {stable_mosaic.version = 11 : i64} {
  func.func @_fused_forward_kernel(%arg0: i32, %arg1: memref<8x32xf32, #tpu.memory_space<vmem>>, %arg2: memref<32x512xbf16, #tpu.memory_space<vmem>>, %arg3: memref<1x512xf32, #tpu.memory_space<vmem>>, %arg4: memref<512x896xbf16, #tpu.memory_space<vmem>>, %arg5: memref<1x896xf32, #tpu.memory_space<vmem>>, %arg6: memref<896x128xbf16, #tpu.memory_space<vmem>>, %arg7: memref<1x128xf32, #tpu.memory_space<vmem>>, %arg8: memref<128x128xbf16, #tpu.memory_space<vmem>>, %arg9: memref<1x128xf32, #tpu.memory_space<vmem>>, %arg10: memref<128x128xbf16, #tpu.memory_space<vmem>>, %arg11: memref<1x128xf32, #tpu.memory_space<vmem>>, %arg12: memref<128x128xbf16, #tpu.memory_space<vmem>>, %arg13: memref<1x128xf32, #tpu.memory_space<vmem>>, %arg14: memref<8x128xf32, #tpu.memory_space<vmem>>) attributes {dimension_semantics = [#tpu.dimension_semantics<parallel>], iteration_bounds = array<i64: 1>, scalar_prefetch = 0 : i64, scratch_operands = 0 : i64, tpu.core_type = #tpu.core_type<tc>, window_params = [{transform_indices = @transform_0, window_bounds = array<i64: 8, 32>}, {pipeline_mode = #tpu.pipeline_mode<synchronous>, transform_indices = @transform_1, window_bounds = array<i64: 32, 512>}, {pipeline_mode = #tpu.pipeline_mode<synchronous>, transform_indices = @transform_2, window_bounds = array<i64: 1, 512>}, {pipeline_mode = #tpu.pipeline_mode<synchronous>, transform_indices = @transform_3, window_bounds = array<i64: 512, 896>}, {pipeline_mode = #tpu.pipeline_mode<synchronous>, transform_indices = @transform_4, window_bounds = array<i64: 1, 896>}, {pipeline_mode = #tpu.pipeline_mode<synchronous>, transform_indices = @transform_5, window_bounds = array<i64: 896, 128>}, {pipeline_mode = #tpu.pipeline_mode<synchronous>, transform_indices = @transform_6, window_bounds = array<i64: 1, 128>}, {pipeline_mode = #tpu.pipeline_mode<synchronous>, transform_indices = @transform_7, window_bounds = array<i64: 128, 128>}, {pipeline_mode = #tpu.pipeline_mode<synchronous>, transform_indices = @transform_8, window_bounds = array<i64: 1, 128>}, {pipeline_mode = #tpu.pipeline_mode<synchronous>, transform_indices = @transform_9, window_bounds = array<i64: 128, 128>}, {pipeline_mode = #tpu.pipeline_mode<synchronous>, transform_indices = @transform_10, window_bounds = array<i64: 1, 128>}, {pipeline_mode = #tpu.pipeline_mode<synchronous>, transform_indices = @transform_11, window_bounds = array<i64: 128, 128>}, {pipeline_mode = #tpu.pipeline_mode<synchronous>, transform_indices = @transform_12, window_bounds = array<i64: 1, 128>}, {transform_indices = @transform_13, window_bounds = array<i64: 8, 128>}]} {
    %c0 = arith.constant 0 : index
    %c0_0 = arith.constant 0 : index
    %0 = vector.load %arg1[%c0, %c0_0] : memref<8x32xf32, #tpu.memory_space<vmem>>, vector<8x32xf32>
    %c0_1 = arith.constant 0 : index
    %c0_2 = arith.constant 0 : index
    %1 = vector.load %arg2[%c0_1, %c0_2] : memref<32x512xbf16, #tpu.memory_space<vmem>>, vector<32x512xbf16>
    %c0_3 = arith.constant 0 : index
    %c0_4 = arith.constant 0 : index
    %2 = vector.load %arg3[%c0_3, %c0_4] : memref<1x512xf32, #tpu.memory_space<vmem>>, vector<1x512xf32>
    %3 = arith.truncf %0 : vector<8x32xf32> to vector<8x32xbf16>
    %cst = arith.constant dense<0.000000e+00> : vector<8x512xf32>
    %4 = tpu.matmul %3, %1, %cst {dimension_numbers = #tpu.dot_dimension_numbers<[1], [0], [0], [1], [0, 0, 1, 1], [], []>} : vector<8x32xbf16>, vector<32x512xbf16>, vector<8x512xf32> -> vector<8x512xf32>
    %5 = vector.broadcast %2 : vector<1x512xf32> to vector<8x512xf32>
    %6 = arith.addf %4, %5 : vector<8x512xf32>
    %cst_5 = arith.constant 0.000000e+00 : f32
    %7 = vector.broadcast %cst_5 : f32 to vector<8x512xf32>
    %8 = arith.maximumf %6, %7 : vector<8x512xf32>
    %c0_6 = arith.constant 0 : index
    %c0_7 = arith.constant 0 : index
    %9 = vector.load %arg4[%c0_6, %c0_7] : memref<512x896xbf16, #tpu.memory_space<vmem>>, vector<512x896xbf16>
    %c0_8 = arith.constant 0 : index
    %c0_9 = arith.constant 0 : index
    %10 = vector.load %arg5[%c0_8, %c0_9] : memref<1x896xf32, #tpu.memory_space<vmem>>, vector<1x896xf32>
    %11 = arith.truncf %8 : vector<8x512xf32> to vector<8x512xbf16>
    %cst_10 = arith.constant dense<0.000000e+00> : vector<8x896xf32>
    %12 = tpu.matmul %11, %9, %cst_10 {dimension_numbers = #tpu.dot_dimension_numbers<[1], [0], [0], [1], [0, 0, 1, 1], [], []>} : vector<8x512xbf16>, vector<512x896xbf16>, vector<8x896xf32> -> vector<8x896xf32>
    %13 = vector.broadcast %10 : vector<1x896xf32> to vector<8x896xf32>
    %14 = arith.addf %12, %13 : vector<8x896xf32>
    %cst_11 = arith.constant 0.000000e+00 : f32
    %15 = vector.broadcast %cst_11 : f32 to vector<8x896xf32>
    %16 = arith.maximumf %14, %15 : vector<8x896xf32>
    %c0_12 = arith.constant 0 : index
    %c0_13 = arith.constant 0 : index
    %17 = vector.load %arg6[%c0_12, %c0_13] : memref<896x128xbf16, #tpu.memory_space<vmem>>, vector<896x128xbf16>
    %c0_14 = arith.constant 0 : index
    %c0_15 = arith.constant 0 : index
    %18 = vector.load %arg7[%c0_14, %c0_15] : memref<1x128xf32, #tpu.memory_space<vmem>>, vector<1x128xf32>
    %19 = arith.truncf %16 : vector<8x896xf32> to vector<8x896xbf16>
    %cst_16 = arith.constant dense<0.000000e+00> : vector<8x128xf32>
    %20 = tpu.matmul %19, %17, %cst_16 {dimension_numbers = #tpu.dot_dimension_numbers<[1], [0], [0], [1], [0, 0, 1, 1], [], []>} : vector<8x896xbf16>, vector<896x128xbf16>, vector<8x128xf32> -> vector<8x128xf32>
    %21 = vector.broadcast %18 : vector<1x128xf32> to vector<8x128xf32>
    %22 = arith.addf %20, %21 : vector<8x128xf32>
    %cst_17 = arith.constant 0.000000e+00 : f32
    %23 = vector.broadcast %cst_17 : f32 to vector<8x128xf32>
    %24 = arith.maximumf %22, %23 : vector<8x128xf32>
    %c0_18 = arith.constant 0 : index
    %c0_19 = arith.constant 0 : index
    %25 = vector.load %arg8[%c0_18, %c0_19] : memref<128x128xbf16, #tpu.memory_space<vmem>>, vector<128x128xbf16>
    %c0_20 = arith.constant 0 : index
    %c0_21 = arith.constant 0 : index
    %26 = vector.load %arg9[%c0_20, %c0_21] : memref<1x128xf32, #tpu.memory_space<vmem>>, vector<1x128xf32>
    %27 = arith.truncf %24 : vector<8x128xf32> to vector<8x128xbf16>
    %cst_22 = arith.constant dense<0.000000e+00> : vector<8x128xf32>
    %28 = tpu.matmul %27, %25, %cst_22 {dimension_numbers = #tpu.dot_dimension_numbers<[1], [0], [0], [1], [0, 0, 1, 1], [], []>} : vector<8x128xbf16>, vector<128x128xbf16>, vector<8x128xf32> -> vector<8x128xf32>
    %29 = vector.broadcast %26 : vector<1x128xf32> to vector<8x128xf32>
    %30 = arith.addf %28, %29 : vector<8x128xf32>
    %cst_23 = arith.constant 0.000000e+00 : f32
    %31 = vector.broadcast %cst_23 : f32 to vector<8x128xf32>
    %32 = arith.maximumf %30, %31 : vector<8x128xf32>
    %c0_24 = arith.constant 0 : index
    %c0_25 = arith.constant 0 : index
    %33 = vector.load %arg10[%c0_24, %c0_25] : memref<128x128xbf16, #tpu.memory_space<vmem>>, vector<128x128xbf16>
    %c0_26 = arith.constant 0 : index
    %c0_27 = arith.constant 0 : index
    %34 = vector.load %arg11[%c0_26, %c0_27] : memref<1x128xf32, #tpu.memory_space<vmem>>, vector<1x128xf32>
    %35 = arith.truncf %32 : vector<8x128xf32> to vector<8x128xbf16>
    %cst_28 = arith.constant dense<0.000000e+00> : vector<8x128xf32>
    %36 = tpu.matmul %35, %33, %cst_28 {dimension_numbers = #tpu.dot_dimension_numbers<[1], [0], [0], [1], [0, 0, 1, 1], [], []>} : vector<8x128xbf16>, vector<128x128xbf16>, vector<8x128xf32> -> vector<8x128xf32>
    %37 = vector.broadcast %34 : vector<1x128xf32> to vector<8x128xf32>
    %38 = arith.addf %36, %37 : vector<8x128xf32>
    %cst_29 = arith.constant 0.000000e+00 : f32
    %39 = vector.broadcast %cst_29 : f32 to vector<8x128xf32>
    %40 = arith.maximumf %38, %39 : vector<8x128xf32>
    %c0_30 = arith.constant 0 : index
    %c0_31 = arith.constant 0 : index
    %41 = vector.load %arg12[%c0_30, %c0_31] : memref<128x128xbf16, #tpu.memory_space<vmem>>, vector<128x128xbf16>
    %c0_32 = arith.constant 0 : index
    %c0_33 = arith.constant 0 : index
    %42 = vector.load %arg13[%c0_32, %c0_33] : memref<1x128xf32, #tpu.memory_space<vmem>>, vector<1x128xf32>
    %43 = arith.truncf %40 : vector<8x128xf32> to vector<8x128xbf16>
    %cst_34 = arith.constant dense<0.000000e+00> : vector<8x128xf32>
    %44 = tpu.matmul %43, %41, %cst_34 {dimension_numbers = #tpu.dot_dimension_numbers<[1], [0], [0], [1], [0, 0, 1, 1], [], []>} : vector<8x128xbf16>, vector<128x128xbf16>, vector<8x128xf32> -> vector<8x128xf32>
    %45 = vector.broadcast %42 : vector<1x128xf32> to vector<8x128xf32>
    %46 = arith.addf %44, %45 : vector<8x128xf32>
    %c0_35 = arith.constant 0 : index
    %c0_36 = arith.constant 0 : index
    %47 = vector.load %arg14[%c0_35, %c0_36] : memref<8x128xf32, #tpu.memory_space<vmem>>, vector<8x128xf32>
    tpu.vector_store %arg14[%c0_35, %c0_36], %46 {strides = array<i32>} : memref<8x128xf32, #tpu.memory_space<vmem>>, vector<8x128xf32>,
    return
  }
  func.func @transform_0(%arg0: i32) -> (i32, i32) {
    %c0_i32 = arith.constant 0 : i32
    %c0_i32_0 = arith.constant 0 : i32
    return %arg0, %c0_i32 : i32, i32
  }
  func.func @transform_1(%arg0: i32) -> (i32, i32) {
    %c0_i32 = arith.constant 0 : i32
    %c0_i32_0 = arith.constant 0 : i32
    %c0_i32_1 = arith.constant 0 : i32
    return %c0_i32, %c0_i32_0 : i32, i32
  }
  func.func @transform_2(%arg0: i32) -> (i32, i32) {
    %c0_i32 = arith.constant 0 : i32
    %c0_i32_0 = arith.constant 0 : i32
    %c0_i32_1 = arith.constant 0 : i32
    return %c0_i32, %c0_i32_0 : i32, i32
  }
  func.func @transform_3(%arg0: i32) -> (i32, i32) {
    %c0_i32 = arith.constant 0 : i32
    %c0_i32_0 = arith.constant 0 : i32
    %c0_i32_1 = arith.constant 0 : i32
    return %c0_i32, %c0_i32_0 : i32, i32
  }
  func.func @transform_4(%arg0: i32) -> (i32, i32) {
    %c0_i32 = arith.constant 0 : i32
    %c0_i32_0 = arith.constant 0 : i32
    %c0_i32_1 = arith.constant 0 : i32
    return %c0_i32, %c0_i32_0 : i32, i32
  }
  func.func @transform_5(%arg0: i32) -> (i32, i32) {
    %c0_i32 = arith.constant 0 : i32
    %c0_i32_0 = arith.constant 0 : i32
    %c0_i32_1 = arith.constant 0 : i32
    return %c0_i32, %c0_i32_0 : i32, i32
  }
  func.func @transform_6(%arg0: i32) -> (i32, i32) {
    %c0_i32 = arith.constant 0 : i32
    %c0_i32_0 = arith.constant 0 : i32
    %c0_i32_1 = arith.constant 0 : i32
    return %c0_i32, %c0_i32_0 : i32, i32
  }
  func.func @transform_7(%arg0: i32) -> (i32, i32) {
    %c0_i32 = arith.constant 0 : i32
    %c0_i32_0 = arith.constant 0 : i32
    %c0_i32_1 = arith.constant 0 : i32
    return %c0_i32, %c0_i32_0 : i32, i32
  }
  func.func @transform_8(%arg0: i32) -> (i32, i32) {
    %c0_i32 = arith.constant 0 : i32
    %c0_i32_0 = arith.constant 0 : i32
    %c0_i32_1 = arith.constant 0 : i32
    return %c0_i32, %c0_i32_0 : i32, i32
  }
  func.func @transform_9(%arg0: i32) -> (i32, i32) {
    %c0_i32 = arith.constant 0 : i32
    %c0_i32_0 = arith.constant 0 : i32
    %c0_i32_1 = arith.constant 0 : i32
    return %c0_i32, %c0_i32_0 : i32, i32
  }
  func.func @transform_10(%arg0: i32) -> (i32, i32) {
    %c0_i32 = arith.constant 0 : i32
    %c0_i32_0 = arith.constant 0 : i32
    %c0_i32_1 = arith.constant 0 : i32
    return %c0_i32, %c0_i32_0 : i32, i32
  }
  func.func @transform_11(%arg0: i32) -> (i32, i32) {
    %c0_i32 = arith.constant 0 : i32
    %c0_i32_0 = arith.constant 0 : i32
    %c0_i32_1 = arith.constant 0 : i32
    return %c0_i32, %c0_i32_0 : i32, i32
  }
  func.func @transform_12(%arg0: i32) -> (i32, i32) {
    %c0_i32 = arith.constant 0 : i32
    %c0_i32_0 = arith.constant 0 : i32
    %c0_i32_1 = arith.constant 0 : i32
    return %c0_i32, %c0_i32_0 : i32, i32
  }
  func.func @transform_13(%arg0: i32) -> (i32, i32) {
    %c0_i32 = arith.constant 0 : i32
    %c0_i32_0 = arith.constant 0 : i32
    return %arg0, %c0_i32 : i32, i32
  }
}

module attributes {stable_mosaic.version = 11 : i64} {
  func.func @_fused_forward_kernel(%arg0: i32, %arg1: memref<8x32xf32, #tpu.memory_space<vmem>>, %arg2: memref<32x512xbf16, #tpu.memory_space<vmem>>, %arg3: memref<1x512xf32, #tpu.memory_space<vmem>>, %arg4: memref<512x896xbf16, #tpu.memory_space<vmem>>, %arg5: memref<1x896xf32, #tpu.memory_space<vmem>>, %arg6: memref<896x128xbf16, #tpu.memory_space<vmem>>, %arg7: memref<1x128xf32, #tpu.memory_space<vmem>>, %arg8: memref<128x128xbf16, #tpu.memory_space<vmem>>, %arg9: memref<1x128xf32, #tpu.memory_space<vmem>>, %arg10: memref<128x128xbf16, #tpu.memory_space<vmem>>, %arg11: memref<1x128xf32, #tpu.memory_space<vmem>>, %arg12: memref<128x128xbf16, #tpu.memory_space<vmem>>, %arg13: memref<1x128xf32, #tpu.memory_space<vmem>>, %arg14: memref<8x128xf32, #tpu.memory_space<vmem>>) attributes {dimension_semantics = [#tpu.dimension_semantics<parallel>], iteration_bounds = array<i64: 1>, scalar_prefetch = 0 : i64, scratch_operands = 0 : i64, tpu.core_type = #tpu.core_type<tc>, window_params = [{transform_indices = @transform_0, window_bounds = array<i64: 8, 32>}, {pipeline_mode = #tpu.pipeline_mode<synchronous>, transform_indices = @transform_1, window_bounds = array<i64: 32, 512>}, {pipeline_mode = #tpu.pipeline_mode<synchronous>, transform_indices = @transform_2, window_bounds = array<i64: 1, 512>}, {pipeline_mode = #tpu.pipeline_mode<synchronous>, transform_indices = @transform_3, window_bounds = array<i64: 512, 896>}, {pipeline_mode = #tpu.pipeline_mode<synchronous>, transform_indices = @transform_4, window_bounds = array<i64: 1, 896>}, {pipeline_mode = #tpu.pipeline_mode<synchronous>, transform_indices = @transform_5, window_bounds = array<i64: 896, 128>}, {pipeline_mode = #tpu.pipeline_mode<synchronous>, transform_indices = @transform_6, window_bounds = array<i64: 1, 128>}, {pipeline_mode = #tpu.pipeline_mode<synchronous>, transform_indices = @transform_7, window_bounds = array<i64: 128, 128>}, {pipeline_mode = #tpu.pipeline_mode<synchronous>, transform_indices = @transform_8, window_bounds = array<i64: 1, 128>}, {pipeline_mode = #tpu.pipeline_mode<synchronous>, transform_indices = @transform_9, window_bounds = array<i64: 128, 128>}, {pipeline_mode = #tpu.pipeline_mode<synchronous>, transform_indices = @transform_10, window_bounds = array<i64: 1, 128>}, {pipeline_mode = #tpu.pipeline_mode<synchronous>, transform_indices = @transform_11, window_bounds = array<i64: 128, 128>}, {pipeline_mode = #tpu.pipeline_mode<synchronous>, transform_indices = @transform_12, window_bounds = array<i64: 1, 128>}, {transform_indices = @transform_13, window_bounds = array<i64: 8, 128>}]} {
    %c0 = arith.constant 0 : index
    %c0_0 = arith.constant 0 : index
    %0 = vector.load %arg1[%c0, %c0_0] : memref<8x32xf32, #tpu.memory_space<vmem>>, vector<8x32xf32>
    %c0_1 = arith.constant 0 : index
    %c0_2 = arith.constant 0 : index
    %1 = vector.load %arg2[%c0_1, %c0_2] : memref<32x512xbf16, #tpu.memory_space<vmem>>, vector<32x512xbf16>
    %c0_3 = arith.constant 0 : index
    %c0_4 = arith.constant 0 : index
    %2 = vector.load %arg3[%c0_3, %c0_4] : memref<1x512xf32, #tpu.memory_space<vmem>>, vector<1x512xf32>
    %3 = arith.truncf %0 : vector<8x32xf32> to vector<8x32xbf16>
    %cst = arith.constant dense<0.000000e+00> : vector<8x512xf32>
    %4 = tpu.matmul %3, %1, %cst {dimension_numbers = #tpu.dot_dimension_numbers<[1], [0], [0], [1], [0, 0, 1, 1], [], []>} : vector<8x32xbf16>, vector<32x512xbf16>, vector<8x512xf32> -> vector<8x512xf32>
    %5 = vector.broadcast %2 : vector<1x512xf32> to vector<8x512xf32>
    %6 = arith.addf %4, %5 : vector<8x512xf32>
    %cst_5 = arith.constant 0.000000e+00 : f32
    %7 = vector.broadcast %cst_5 : f32 to vector<8x512xf32>
    %8 = arith.maximumf %6, %7 : vector<8x512xf32>
    %c0_6 = arith.constant 0 : index
    %c0_7 = arith.constant 0 : index
    %9 = vector.load %arg4[%c0_6, %c0_7] : memref<512x896xbf16, #tpu.memory_space<vmem>>, vector<512x896xbf16>
    %c0_8 = arith.constant 0 : index
    %c0_9 = arith.constant 0 : index
    %10 = vector.load %arg5[%c0_8, %c0_9] : memref<1x896xf32, #tpu.memory_space<vmem>>, vector<1x896xf32>
    %11 = arith.truncf %8 : vector<8x512xf32> to vector<8x512xbf16>
    %cst_10 = arith.constant dense<0.000000e+00> : vector<8x896xf32>
    %12 = tpu.matmul %11, %9, %cst_10 {dimension_numbers = #tpu.dot_dimension_numbers<[1], [0], [0], [1], [0, 0, 1, 1], [], []>} : vector<8x512xbf16>, vector<512x896xbf16>, vector<8x896xf32> -> vector<8x896xf32>
    %13 = vector.broadcast %10 : vector<1x896xf32> to vector<8x896xf32>
    %14 = arith.addf %12, %13 : vector<8x896xf32>
    %cst_11 = arith.constant 0.000000e+00 : f32
    %15 = vector.broadcast %cst_11 : f32 to vector<8x896xf32>
    %16 = arith.maximumf %14, %15 : vector<8x896xf32>
    %c0_12 = arith.constant 0 : index
    %c0_13 = arith.constant 0 : index
    %17 = vector.load %arg6[%c0_12, %c0_13] : memref<896x128xbf16, #tpu.memory_space<vmem>>, vector<896x128xbf16>
    %c0_14 = arith.constant 0 : index
    %c0_15 = arith.constant 0 : index
    %18 = vector.load %arg7[%c0_14, %c0_15] : memref<1x128xf32, #tpu.memory_space<vmem>>, vector<1x128xf32>
    %19 = arith.truncf %16 : vector<8x896xf32> to vector<8x896xbf16>
    %cst_16 = arith.constant dense<0.000000e+00> : vector<8x128xf32>
    %20 = tpu.matmul %19, %17, %cst_16 {dimension_numbers = #tpu.dot_dimension_numbers<[1], [0], [0], [1], [0, 0, 1, 1], [], []>} : vector<8x896xbf16>, vector<896x128xbf16>, vector<8x128xf32> -> vector<8x128xf32>
    %21 = vector.broadcast %18 : vector<1x128xf32> to vector<8x128xf32>
    %22 = arith.addf %20, %21 : vector<8x128xf32>
    %cst_17 = arith.constant 0.000000e+00 : f32
    %23 = vector.broadcast %cst_17 : f32 to vector<8x128xf32>
    %24 = arith.maximumf %22, %23 : vector<8x128xf32>
    %c0_18 = arith.constant 0 : index
    %c0_19 = arith.constant 0 : index
    %25 = vector.load %arg8[%c0_18, %c0_19] : memref<128x128xbf16, #tpu.memory_space<vmem>>, vector<128x128xbf16>
    %c0_20 = arith.constant 0 : index
    %c0_21 = arith.constant 0 : index
    %26 = vector.load %arg9[%c0_20, %c0_21] : memref<1x128xf32, #tpu.memory_space<vmem>>, vector<1x128xf32>
    %27 = arith.truncf %24 : vector<8x128xf32> to vector<8x128xbf16>
    %cst_22 = arith.constant dense<0.000000e+00> : vector<8x128xf32>
    %28 = tpu.matmul %27, %25, %cst_22 {dimension_numbers = #tpu.dot_dimension_numbers<[1], [0], [0], [1], [0, 0, 1, 1], [], []>} : vector<8x128xbf16>, vector<128x128xbf16>, vector<8x128xf32> -> vector<8x128xf32>
    %29 = vector.broadcast %26 : vector<1x128xf32> to vector<8x128xf32>
    %30 = arith.addf %28, %29 : vector<8x128xf32>
    %cst_23 = arith.constant 0.000000e+00 : f32
    %31 = vector.broadcast %cst_23 : f32 to vector<8x128xf32>
    %32 = arith.maximumf %30, %31 : vector<8x128xf32>
    %c0_24 = arith.constant 0 : index
    %c0_25 = arith.constant 0 : index
    %33 = vector.load %arg10[%c0_24, %c0_25] : memref<128x128xbf16, #tpu.memory_space<vmem>>, vector<128x128xbf16>
    %c0_26 = arith.constant 0 : index
    %c0_27 = arith.constant 0 : index
    %34 = vector.load %arg11[%c0_26, %c0_27] : memref<1x128xf32, #tpu.memory_space<vmem>>, vector<1x128xf32>
    %35 = arith.truncf %32 : vector<8x128xf32> to vector<8x128xbf16>
    %cst_28 = arith.constant dense<0.000000e+00> : vector<8x128xf32>
    %36 = tpu.matmul %35, %33, %cst_28 {dimension_numbers = #tpu.dot_dimension_numbers<[1], [0], [0], [1], [0, 0, 1, 1], [], []>} : vector<8x128xbf16>, vector<128x128xbf16>, vector<8x128xf32> -> vector<8x128xf32>
    %37 = vector.broadcast %34 : vector<1x128xf32> to vector<8x128xf32>
    %38 = arith.addf %36, %37 : vector<8x128xf32>
    %cst_29 = arith.constant 0.000000e+00 : f32
    %39 = vector.broadcast %cst_29 : f32 to vector<8x128xf32>
    %40 = arith.maximumf %38, %39 : vector<8x128xf32>
    %c0_30 = arith.constant 0 : index
    %c0_31 = arith.constant 0 : index
    %41 = vector.load %arg12[%c0_30, %c0_31] : memref<128x128xbf16, #tpu.memory_space<vmem>>, vector<128x128xbf16>
    %c0_32 = arith.constant 0 : index
    %c0_33 = arith.constant 0 : index
    %42 = vector.load %arg13[%c0_32, %c0_33] : memref<1x128xf32, #tpu.memory_space<vmem>>, vector<1x128xf32>
    %43 = arith.truncf %40 : vector<8x128xf32> to vector<8x128xbf16>
    %cst_34 = arith.constant dense<0.000000e+00> : vector<8x128xf32>
    %44 = tpu.matmul %43, %41, %cst_34 {dimension_numbers = #tpu.dot_dimension_numbers<[1], [0], [0], [1], [0, 0, 1, 1], [], []>} : vector<8x128xbf16>, vector<128x128xbf16>, vector<8x128xf32> -> vector<8x128xf32>
    %45 = vector.broadcast %42 : vector<1x128xf32> to vector<8x128xf32>
    %46 = arith.addf %44, %45 : vector<8x128xf32>
    %c0_35 = arith.constant 0 : index
    %c0_36 = arith.constant 0 : index
    %47 = vector.load %arg14[%c0_35, %c0_36] : memref<8x128xf32, #tpu.memory_space<vmem>>, vector<8x128xf32>
    tpu.vector_store %arg14[%c0_35, %c0_36], %46 {strides = array<i32>} : memref<8x128xf32, #tpu.memory_space<vmem>>, vector<8x128xf32>,
    return
  }
  func.func @transform_0(%arg0: i32) -> (i32, i32) {
    %c0_i32 = arith.constant 0 : i32
    %c0_i32_0 = arith.constant 0 : i32
    return %arg0, %c0_i32 : i32, i32
  }
  func.func @transform_1(%arg0: i32) -> (i32, i32) {
    %c0_i32 = arith.constant 0 : i32
    %c0_i32_0 = arith.constant 0 : i32
    %c0_i32_1 = arith.constant 0 : i32
    return %c0_i32, %c0_i32_0 : i32, i32
  }
  func.func @transform_2(%arg0: i32) -> (i32, i32) {
    %c0_i32 = arith.constant 0 : i32
    %c0_i32_0 = arith.constant 0 : i32
    %c0_i32_1 = arith.constant 0 : i32
    return %c0_i32, %c0_i32_0 : i32, i32
  }
  func.func @transform_3(%arg0: i32) -> (i32, i32) {
    %c0_i32 = arith.constant 0 : i32
    %c0_i32_0 = arith.constant 0 : i32
    %c0_i32_1 = arith.constant 0 : i32
    return %c0_i32, %c0_i32_0 : i32, i32
  }
  func.func @transform_4(%arg0: i32) -> (i32, i32) {
    %c0_i32 = arith.constant 0 : i32
    %c0_i32_0 = arith.constant 0 : i32
    %c0_i32_1 = arith.constant 0 : i32
    return %c0_i32, %c0_i32_0 : i32, i32
  }
  func.func @transform_5(%arg0: i32) -> (i32, i32) {
    %c0_i32 = arith.constant 0 : i32
    %c0_i32_0 = arith.constant 0 : i32
    %c0_i32_1 = arith.constant 0 : i32
    return %c0_i32, %c0_i32_0 : i32, i32
  }
  func.func @transform_6(%arg0: i32) -> (i32, i32) {
    %c0_i32 = arith.constant 0 : i32
    %c0_i32_0 = arith.constant 0 : i32
    %c0_i32_1 = arith.constant 0 : i32
    return %c0_i32, %c0_i32_0 : i32, i32
  }
  func.func @transform_7(%arg0: i32) -> (i32, i32) {
    %c0_i32 = arith.constant 0 : i32
    %c0_i32_0 = arith.constant 0 : i32
    %c0_i32_1 = arith.constant 0 : i32
    return %c0_i32, %c0_i32_0 : i32, i32
  }
  func.func @transform_8(%arg0: i32) -> (i32, i32) {
    %c0_i32 = arith.constant 0 : i32
    %c0_i32_0 = arith.constant 0 : i32
    %c0_i32_1 = arith.constant 0 : i32
    return %c0_i32, %c0_i32_0 : i32, i32
  }
  func.func @transform_9(%arg0: i32) -> (i32, i32) {
    %c0_i32 = arith.constant 0 : i32
    %c0_i32_0 = arith.constant 0 : i32
    %c0_i32_1 = arith.constant 0 : i32
    return %c0_i32, %c0_i32_0 : i32, i32
  }
  func.func @transform_10(%arg0: i32) -> (i32, i32) {
    %c0_i32 = arith.constant 0 : i32
    %c0_i32_0 = arith.constant 0 : i32
    %c0_i32_1 = arith.constant 0 : i32
    return %c0_i32, %c0_i32_0 : i32, i32
  }
  func.func @transform_11(%arg0: i32) -> (i32, i32) {
    %c0_i32 = arith.constant 0 : i32
    %c0_i32_0 = arith.constant 0 : i32
    %c0_i32_1 = arith.constant 0 : i32
    return %c0_i32, %c0_i32_0 : i32, i32
  }
  func.func @transform_12(%arg0: i32) -> (i32, i32) {
    %c0_i32 = arith.constant 0 : i32
    %c0_i32_0 = arith.constant 0 : i32
    %c0_i32_1 = arith.constant 0 : i32
    return %c0_i32, %c0_i32_0 : i32, i32
  }
  func.func @transform_13(%arg0: i32) -> (i32, i32) {
    %c0_i32 = arith.constant 0 : i32
    %c0_i32_0 = arith.constant 0 : i32
    return %arg0, %c0_i32 : i32, i32
  }
}

</mosaic_0001>

<bundles_post_ra>
// kernel: tpu_custom_call.1
= control target key start
LH: loop header
LB: loop body
LE: loop exit
PB: predicated region body
PF: predicated region fallthrough
CT: control target
= control target key end

     0   :  { %18 = vsyncpa [#allocation3], 0  ;;  %s4975_s0 = inlined_call_operand.hbm [shape: f32[8,32], index: 0, kind: input, shape index: {}]   ;;  %s4976_s1 = inlined_call_operand.hbm [shape: bf16[32,512], index: 1, kind: input, shape index: {}]   ;;  %s4977_s2 = inlined_call_operand.hbm [shape: f32[1,512], index: 2, kind: input, shape index: {}]   ;;  %s4978_s3 = inlined_call_operand.hbm [shape: bf16[512,896], index: 3, kind: input, shape index: {}]   ;;  %s4979_s4 = inlined_call_operand.hbm [shape: f32[1,896], index: 4, kind: input, shape index: {}]   ;;  %s4980_s5 = inlined_call_operand.hbm [shape: bf16[896,128], index: 5, kind: input, shape index: {}]   ;;  %s4981_s6 = inlined_call_operand.vmem [shape: f32[1,128], index: 6, kind: input, shape index: {}]   ;;  %s4982_s7 = inlined_call_operand.hbm [shape: bf16[128,128], index: 7, kind: input, shape index: {}]   ;;  %s4983_s8 = inlined_call_operand.vmem [shape: f32[1,128], index: 8, kind: input, shape index: {}]   ;;  %s4984_s9 = inlined_call_operand.hbm [shape: bf16[128,128], index: 9, kind: input, shape index: {}]   ;;  %s4985_s10 = inlined_call_operand.vmem [shape: f32[1,128], index: 10, kind: input, shape index: {}]   ;;  %s4986_s11 = inlined_call_operand.hbm [shape: bf16[128,128], index: 11, kind: input, shape index: {}]   ;;  %s4987_s12 = inlined_call_operand.vmem [shape: f32[1,128], index: 12, kind: input, shape index: {}]   ;;  %s4988_s13 = inlined_call_operand.hbm [shape: f32[8,128], index: 13, kind: output, shape index: {}]  }
   0x1   :  { %19 = vsyncpa [#allocation6], 0 }
   0x2   :  { %20 = vsyncpa [#allocation9], 0 }
   0x3   :  { %21 = vsyncpa [#allocation12], 0 }
   0x4   :  { %22 = vsyncpa [#allocation15], 0  ;;  %s39_s27 = sshll.u32 %s4976_s1, 4  ;;  %s40_s27 = int_to_ptr.hbm [resolvable:$true] %s39_s27 }
   0x5   :  { %23 = vsyncpa [#allocation4], 0  ;;  %s4756_s28 = smov [#allocation5]   ;;  %s63_s15 = sshll.u32 %s4978_s3, 4  ;;  %s64_s15 = int_to_ptr.hbm [resolvable:$true] %s63_s15 }
   0x6   :  { %s41_s29 = sshll.u32 %s4756_s28, 4  ;;  %s4757_s16 = smov 256   ;;  %s42_s29 = int_to_ptr.vmem [resolvable:$true] %s41_s29 }
   0x7   :  { %s4758_s17 = smov 16   ;;  %s4759_s18 = smov [#allocation8]  }
   0x8   :  { %47 = dma.hbm_to_vmem [thread:$0]  %s40_s27, 1024, %s42_s29, [#allocation6], %s4757_s16, %s4757_s16, %s4758_s17  }
   0x9   :  { %s65_s19 = sshll.u32 %s4759_s18, 4  ;;  %s4760_s20 = smov 448   ;;  %s66_s19 = int_to_ptr.vmem [resolvable:$true] %s65_s19 }
   0xa   :  { %s4761_s21 = smov 28   ;;  %s87_s23 = sshll.u32 %s4980_s5, 4  ;;  %s88_s23 = int_to_ptr.hbm [resolvable:$true] %s87_s23 }
   0xb   :  { %71 = dma.hbm_to_vmem [thread:$0]  %s64_s15, 28672, %s66_s19, [#allocation9], %s4760_s20, %s4760_s20, %s4761_s21  }
   0xc   :  { %s4762_s24 = smov [#allocation11]   ;;  %s117_s28 = sshll.u32 %s4984_s9, 4  ;;  %s118_s28 = int_to_ptr.hbm [resolvable:$true] %s117_s28 }
   0xd   :  { %s89_s25 = sshll.u32 %s4762_s24, 4  ;;  %s4763_s27 = smov 64   ;;  %s90_s25 = int_to_ptr.vmem [resolvable:$true] %s89_s25 }
   0xe   :  { %s4764_s29 = smov 4   ;;  %s4765_s30 = smov [#allocation14]  }
   0xf   :  { %95 = dma.hbm_to_vmem [thread:$0]  %s88_s23, 7168, %s90_s25, [#allocation12], %s4763_s27, %s4763_s27, %s4764_s29  }
  0x10   :  { %s119_s14 = sshll.u32 %s4765_s30, 4  ;;  %s29_s5 = sshll.u32 %s4975_s0, 4  ;;  %s120_s14 = int_to_ptr.vmem [resolvable:$true] %s119_s14  ;;  %s30_s5 = int_to_ptr.hbm [resolvable:$true] %s29_s5 }
  0x11   :  { %125 = dma.hbm_to_vmem [thread:$0]  %s118_s28, 1024, %s120_s14, [#allocation15], %s4763_s27, %s4763_s27, %s4764_s29  }
  0x12   :  { %s53_s18 = sshll.u32 %s4977_s2, 4  ;;  %s4766_s19 = smov [#allocation2]   ;;  %s54_s18 = int_to_ptr.hbm [resolvable:$true] %s53_s18 }
  0x13   :  { %s31_s20 = sshll.u32 %s4766_s19, 4  ;;  %s4767_s21 = smov [#allocation7]   ;;  %s32_s20 = int_to_ptr.vmem [resolvable:$true] %s31_s20 }
  0x14   :  { %34 = dma.hbm_to_vmem [thread:$0]  %s30_s5, 128, %s32_s20, [#allocation3]  }
  0x15   :  { %s55_s1 = sshll.u32 %s4767_s21, 4  ;;  %s77_s0 = sshll.u32 %s4979_s4, 4  ;;  %s56_s1 = int_to_ptr.vmem [resolvable:$true] %s55_s1  ;;  %s78_s0 = int_to_ptr.hbm [resolvable:$true] %s77_s0 }
  0x16   :  { %58 = dma.hbm_to_vmem [thread:$0]  %s54_s18, 64, %s56_s1, [#allocation6]  }
  0x17   :  { %s102_s26 = sshll.u32 %s4982_s7, 4  ;;  %s4768_s3 = smov [#allocation10]   ;;  %s103_s26 = int_to_ptr.hbm [resolvable:$true] %s102_s26 }
  0x18   :  { %s79_s2 = sshll.u32 %s4768_s3, 4  ;;  %s4769_s28 = smov [#allocation13]   ;;  %s80_s2 = int_to_ptr.vmem [resolvable:$true] %s79_s2 }
  0x19   :  { %82 = dma.hbm_to_vmem [thread:$0]  %s78_s0, 112, %s80_s2, [#allocation9]  }
  0x1a   :  { %s104_s30 = sshll.u32 %s4769_s28, 4  ;;  %s132_s16 = sshll.u32 %s4986_s11, 4  ;;  %s105_s30 = int_to_ptr.vmem [resolvable:$true] %s104_s30  ;;  %s133_s16 = int_to_ptr.hbm [resolvable:$true] %s132_s16 }
  0x1b   :  { %110 = dma.hbm_to_vmem [thread:$0]  %s103_s26, 1024, %s105_s30, [#allocation12], %s4763_s27, %s4763_s27, %s4764_s29  }
  0x1c   :  { %s4770_s4 = smov [#allocation16]  }
  0x1d   :  { %s134_s5 = sshll.u32 %s4770_s4, 4  ;;  %s135_s5 = int_to_ptr.vmem [resolvable:$true] %s134_s5 }
  0x1e   :  { %140 = dma.hbm_to_vmem [thread:$0]  %s133_s16, 1024, %s135_s5, [#allocation15], %s4763_s27, %s4763_s27, %s4764_s29  }
  0x1f   :  { %4744 = dma.done.wait [#allocation3], 128  }
  0x20   :  { %4745 = vsyncadd [#allocation3], 4294967168 }
  0x21   :  { %4746 = dma.done.wait [#allocation6], 1088  }
  0x22   :  { %4747 = vsyncadd [#allocation6], 4294966208 }
  0x23   :  { %4748 = dma.done.wait [#allocation9], 28784  }
  0x24   :  { %4749 = vsyncadd [#allocation9], 4294938512 }
  0x25   :  { %4750 = dma.done.wait [#allocation12], 8192  }
  0x26   :  { %4751 = vsyncadd [#allocation12], 4294959104 }
  0x27   :  { %4752 = dma.done.wait [#allocation15], 2048  }
  0x28   :  { %4753 = vsyncadd [#allocation15], 4294965248  ;;  %v2938_v0 = vld [vmem:[#allocation5 + $0x20] sm:$0xf]  ;;  %v4178_v1 = vld [vmem:[#allocation5 + $0x2c] sm:$0xf0] }
  0x29   :  { %v4176_v2 = vld [vmem:[#allocation5 + $0x24] sm:$0xf]  ;;  %v2939_v3 = vor.u32 %v4178_v1, %v2938_v0  ;;  %v2940_v4 = vld [vmem:[#allocation5 + $0x30] sm:$0xf0]  ;;  %v2922_v5 = vld [vmem:[#allocation5] sm:$0xf] }
  0x2a   :  { %v4174_v6 = vld [vmem:[#allocation5 + $0xc] sm:$0xf0]  ;;  %v2943_v7 = vor.u32 %v4176_v2, %v2940_v4  ;;  %v4172_v8 = vld [vmem:[#allocation5 + $0x4] sm:$0xf]  ;;  %v2924_v9 = vld [vmem:[#allocation5 + $0x10] sm:$0xf0] }
  0x2b   :  { %v180_v10 = vld [vmem:[#allocation2] sm:$0xff]  ;;  %vm240_vm0 = vcmask 261120   ;;  %250 = vmatpush.bf16.msra.mxu2 %v2939_v3  ;;  %v2923_v11 = vor.u32 %v4174_v6, %v2922_v5  ;;  %v2946_v12 = vld [vmem:[#allocation5 + $0x28] sm:$0xf]  ;;  %v4177_v14 = vld [vmem:[#allocation5 + $0x2c] sm:$0xf]  ;;  %v2927_v15 = vor.u32 %v4172_v8, %v2924_v9 }
  0x2c   :  { %v4179_v13 = vld [vmem:[#allocation5 + $0x34] sm:$0xf0]  ;;  %263 = vmatpush.bf16.msra.mxu3 %v2943_v7  ;;  %v2948_v17 = vld [vmem:[#allocation5 + $0x38] sm:$0xf0]  ;;  %v2930_v18 = vld [vmem:[#allocation5 + $0x8] sm:$0xf]  ;;  %v4881_v24 = vpack.c.bf16 %v180_v10, %v180_v10 }
  0x2d   :  { %v2947_v16 = vor.u32 %v4179_v13, %v2946_v12  ;;  %v4175_v19 = vld [vmem:[#allocation5 + $0x14] sm:$0xf0]  ;;  %v2951_v20 = vor.u32 %v4177_v14, %v2948_v17  ;;  %v4173_v21 = vld [vmem:[#allocation5 + $0xc] sm:$0xf]  ;;  %v2932_v22 = vld [vmem:[#allocation5 + $0x18] sm:$0xf0] }
  0x2e   :  { %v3154_v23 = vld [vmem:[#allocation8 + $0x188] sm:$0xf]  ;;  %v4232_v25 = vld [vmem:[#allocation8 + $0x1a0] sm:$0xf0]  ;;  %v3126_v30 = vld [vmem:[#allocation8 + $0x150] sm:$0xf]  ;;  %v2931_v33 = vor.u32 %v4175_v19, %v2930_v18  ;;  %v2935_v35 = vor.u32 %v4173_v21, %v2932_v22 }
  0x2f   :  { %v3378_v26 = vld [vmem:[#allocation8 + $0x348] sm:$0xf]  ;;  %v4288_v27 = vld [vmem:[#allocation8 + $0x360] sm:$0xf0]  ;;  %251 = vmatpush.bf16.msra.mxu2 %v2923_v11  ;;  %v3155_v28 = vor.u32 %v4232_v25, %v3154_v23  ;;  %v4225_v31 = vld [vmem:[#allocation8 + $0x168] sm:$0xf0] }
  0x30   :  { %v3379_v29 = vor.u32 %v4288_v27, %v3378_v26  ;;  %v3350_v32 = vld [vmem:[#allocation8 + $0x310] sm:$0xf]  ;;  %264 = vmatpush.bf16.msra.mxu3 %v2927_v15  ;;  %v4281_v34 = vld [vmem:[#allocation8 + $0x328] sm:$0xf0]  ;;  %v3127_v36 = vor.u32 %v4225_v31, %v3126_v30  ;;  %v3098_v38 = vld [vmem:[#allocation8 + $0x118] sm:$0xf] }
  0x31   :  { %1728 = vmatpush.bf16.msra.mxu0 %v3155_v28  ;;  %v3351_v37 = vor.u32 %v4281_v34, %v3350_v32  ;;  %v4218_v39 = vld [vmem:[#allocation8 + $0x130] sm:$0xf0]  ;;  %v3322_v40 = vld [vmem:[#allocation8 + $0x2d8] sm:$0xf]  ;;  %v3602_v42 = vld [vmem:[#allocation8 + $0x508] sm:$0xf] }
  0x32   :  { %2952 = vmatmul.msk.bf16.vlgmr.msra.gmra.mxu2 %vm240_vm0, %v4881_v24  ;;  %1741 = vmatpush.bf16.msra.mxu1 %v3379_v29  ;;  %v4274_v41 = vld [vmem:[#allocation8 + $0x2f0] sm:$0xf0]  ;;  %v4344_v43 = vld [vmem:[#allocation8 + $0x520] sm:$0xf0]  ;;  %v3099_v44 = vor.u32 %v4218_v39, %v3098_v38  ;;  %v3070_v45 = vld [vmem:[#allocation8 + $0xe0] sm:$0xf] }
  0x33   :  { %276 = vmatpush.bf16.msrb.mxu2 %v2947_v16  ;;  %2953 = vmatmul.msk.bf16.vlgmr.msra.gmra.mxu3 %vm240_vm0, %v4881_v24  ;;  %v3603_v46 = vor.u32 %v4344_v43, %v3602_v42  ;;  %v3826_v47 = vld [vmem:[#allocation8 + $0x6c8] sm:$0xf]  ;;  %v4400_v48 = vld [vmem:[#allocation8 + $0x6e0] sm:$0xf0]  ;;  %v3323_v49 = vor.u32 %v4274_v41, %v3322_v40  ;;  %v4211_v50 = vld [vmem:[#allocation8 + $0xf8] sm:$0xf0] }
  0x34   :  { %289 = vmatpush.bf16.msrb.mxu3 %v2951_v20  ;;  %v3294_v51 = vld [vmem:[#allocation8 + $0x2a0] sm:$0xf]  ;;  %v4267_v52 = vld [vmem:[#allocation8 + $0x2b8] sm:$0xf0]  ;;  %v3827_v53 = vor.u32 %v4400_v48, %v3826_v47  ;;  %v3574_v54 = vld [vmem:[#allocation8 + $0x4d0] sm:$0xf]  ;;  %v3071_v59 = vor.u32 %v4211_v50, %v3070_v45 }
  0x35   :  { %1729 = vmatpush.bf16.msra.mxu0 %v3127_v36  ;;  %v4337_v55 = vld [vmem:[#allocation8 + $0x4e8] sm:$0xf0]  ;;  %v3798_v56 = vld [vmem:[#allocation8 + $0x690] sm:$0xf]  ;;  %v3042_v60 = vld [vmem:[#allocation8 + $0xa8] sm:$0xf]  ;;  %v3295_v0 = vor.u32 %v4267_v52, %v3294_v51 }
  0x36   :  { %1742 = vmatpush.bf16.msra.mxu1 %v3351_v37  ;;  %v3575_v57 = vor.u32 %v4337_v55, %v3574_v54  ;;  %v4393_v58 = vld [vmem:[#allocation8 + $0x6a8] sm:$0xf0]  ;;  %v4204_v61 = vld [vmem:[#allocation8 + $0xc0] sm:$0xf0]  ;;  %v3546_v63 = vld [vmem:[#allocation8 + $0x498] sm:$0xf] }
  0x37   :  { %277 = vmatpush.bf16.msrb.mxu2 %v2931_v33  ;;  %v3799_v62 = vor.u32 %v4393_v58, %v3798_v56  ;;  %v4330_v1 = vld [vmem:[#allocation8 + $0x4b0] sm:$0xf0]  ;;  %v3770_v2 = vld [vmem:[#allocation8 + $0x658] sm:$0xf]  ;;  %v3266_v4 = vld [vmem:[#allocation8 + $0x268] sm:$0xf]  ;;  %v3043_v10 = vor.u32 %v4204_v61, %v3042_v60 }
  0x38   :  { %290 = vmatpush.bf16.msrb.mxu3 %v2935_v35  ;;  %v4386_v3 = vld [vmem:[#allocation8 + $0x670] sm:$0xf0]  ;;  %v4260_v5 = vld [vmem:[#allocation8 + $0x280] sm:$0xf0]  ;;  %v3547_v6 = vor.u32 %v4330_v1, %v3546_v63  ;;  %v3518_v8 = vld [vmem:[#allocation8 + $0x460] sm:$0xf] }
  0x39   :  { %1730 = vmatpush.bf16.msra.mxu0 %v3099_v44  ;;  %v3771_v7 = vor.u32 %v4386_v3, %v3770_v2  ;;  %v4323_v9 = vld [vmem:[#allocation8 + $0x478] sm:$0xf0]  ;;  %v3742_v11 = vld [vmem:[#allocation8 + $0x620] sm:$0xf]  ;;  %v3267_v13 = vor.u32 %v4260_v5, %v3266_v4  ;;  %v3014_v14 = vld [vmem:[#allocation8 + $0x70] sm:$0xf] }
  0x3a   :  { %1743 = vmatpush.bf16.msra.mxu1 %v3323_v49  ;;  %v4379_v12 = vld [vmem:[#allocation8 + $0x638] sm:$0xf0]  ;;  %v4197_v15 = vld [vmem:[#allocation8 + $0x88] sm:$0xf0]  ;;  %v3238_v16 = vld [vmem:[#allocation8 + $0x230] sm:$0xf]  ;;  %v3519_v18 = vor.u32 %v4323_v9, %v3518_v8 }
  0x3b   :  { %1754 = vmatpush.bf16.msra.mxu2 %v3603_v46  ;;  %v4253_v17 = vld [vmem:[#allocation8 + $0x248] sm:$0xf0]  ;;  %v3743_v19 = vor.u32 %v4379_v12, %v3742_v11  ;;  %v3490_v20 = vld [vmem:[#allocation8 + $0x428] sm:$0xf]  ;;  %v4316_v21 = vld [vmem:[#allocation8 + $0x440] sm:$0xf0]  ;;  %v3015_v22 = vor.u32 %v4197_v15, %v3014_v14 }
  0x3c   :  { %1767 = vmatpush.bf16.msra.mxu3 %v3827_v53  ;;  %v3714_v23 = vld [vmem:[#allocation8 + $0x5e8] sm:$0xf]  ;;  %v4372_v25 = vld [vmem:[#allocation8 + $0x600] sm:$0xf0]  ;;  %v3239_v26 = vor.u32 %v4253_v17, %v3238_v16  ;;  %v2986_v27 = vld [vmem:[#allocation8 + $0x38] sm:$0xf]  ;;  %v3491_v31 = vor.u32 %v4316_v21, %v3490_v20 }
  0x3d   :  { %1731 = vmatpush.bf16.msra.mxu0 %v3071_v59  ;;  %v4190_v28 = vld [vmem:[#allocation8 + $0x50] sm:$0xf0]  ;;  %v3210_v29 = vld [vmem:[#allocation8 + $0x1f8] sm:$0xf]  ;;  %v3715_v32 = vor.u32 %v4372_v25, %v3714_v23  ;;  %v3462_v33 = vld [vmem:[#allocation8 + $0x3f0] sm:$0xf] }
  0x3e   :  { %1744 = vmatpush.bf16.msra.mxu1 %v3295_v0  ;;  %v4246_v30 = vld [vmem:[#allocation8 + $0x210] sm:$0xf0]  ;;  %v4309_v34 = vld [vmem:[#allocation8 + $0x408] sm:$0xf0]  ;;  %v2987_v35 = vor.u32 %v4190_v28, %v2986_v27  ;;  %v2958_v36 = vld [vmem:[#allocation8] sm:$0xf] }
  0x3f   :  { %1755 = vmatpush.bf16.msra.mxu2 %v3575_v57  ;;  %v3686_v37 = vld [vmem:[#allocation8 + $0x5b0] sm:$0xf]  ;;  %v4365_v38 = vld [vmem:[#allocation8 + $0x5c8] sm:$0xf0]  ;;  %v3211_v39 = vor.u32 %v4246_v30, %v3210_v29  ;;  %v4183_v40 = vld [vmem:[#allocation8 + $0x18] sm:$0xf0]  ;;  %v3463_v45 = vor.u32 %v4309_v34, %v3462_v33 }
  0x40   :  { %1768 = vmatpush.bf16.msra.mxu3 %v3799_v62  ;;  %v3182_v41 = vld [vmem:[#allocation8 + $0x1c0] sm:$0xf]  ;;  %v4239_v42 = vld [vmem:[#allocation8 + $0x1d8] sm:$0xf0]  ;;  %v4229_v43 = vld [vmem:[#allocation8 + $0x18c] sm:$0xf]  ;;  %v3687_v47 = vor.u32 %v4365_v38, %v3686_v37  ;;  %v2959_v50 = vor.u32 %v4183_v40, %v2958_v36 }
  0x41   :  { %1732 = vmatpush.bf16.msra.mxu0 %v3043_v10  ;;  %v4285_v44 = vld [vmem:[#allocation8 + $0x34c] sm:$0xf]  ;;  %v3380_v46 = vld [vmem:[#allocation8 + $0x364] sm:$0xf0]  ;;  %v3434_v48 = vld [vmem:[#allocation8 + $0x3b8] sm:$0xf]  ;;  %v3183_v53 = vor.u32 %v4239_v42, %v3182_v41 }
  0x42   :  { %2954 = vmatmul.msk.bf16.vlgmr.msrb.gmra.mxu2 %vm240_vm0, %v4881_v24  ;;  %1745 = vmatpush.bf16.msra.mxu1 %v3267_v13  ;;  %v4302_v49 = vld [vmem:[#allocation8 + $0x3d0] sm:$0xf0]  ;;  %v3658_v51 = vld [vmem:[#allocation8 + $0x578] sm:$0xf]  ;;  %v3128_v56 = vld [vmem:[#allocation8 + $0x16c] sm:$0xf0]  ;;  %v3383_v57 = vor.u32 %v4285_v44, %v3380_v46 }
  0x43   :  { %1756 = vmatpush.bf16.msra.mxu2 %v3547_v6  ;;  %2955 = vmatmul.msk.bf16.vlgmr.msrb.gmra.mxu3 %vm240_vm0, %v4881_v24  ;;  %v3156_v24 = vld [vmem:[#allocation8 + $0x1a4] sm:$0xf0]  ;;  %v4358_v52 = vld [vmem:[#allocation8 + $0x590] sm:$0xf0]  ;;  %v3352_v59 = vld [vmem:[#allocation8 + $0x32c] sm:$0xf0]  ;;  %v3435_v60 = vor.u32 %v4302_v49, %v3434_v48 }
  0x44   :  { %1769 = vmatpush.bf16.msra.mxu3 %v3771_v7  ;;  %v3159_v54 = vor.u32 %v4229_v43, %v3156_v24  ;;  %v4222_v55 = vld [vmem:[#allocation8 + $0x154] sm:$0xf]  ;;  %v3406_v61 = vld [vmem:[#allocation8 + $0x380] sm:$0xf]  ;;  %v3659_v62 = vor.u32 %v4358_v52, %v3658_v51  ;;  %v4295_v63 = vld [vmem:[#allocation8 + $0x398] sm:$0xf0] }
  0x45   :  { %1733 = vmatpush.bf16.msra.mxu0 %v3015_v22  ;;  %v4278_v58 = vld [vmem:[#allocation8 + $0x314] sm:$0xf]  ;;  %v3630_v0 = vld [vmem:[#allocation8 + $0x540] sm:$0xf]  ;;  %v4351_v1 = vld [vmem:[#allocation8 + $0x558] sm:$0xf0]  ;;  %v3131_v6 = vor.u32 %v4222_v55, %v3128_v56  ;;  %v3407_v10 = vor.u32 %v4295_v63, %v3406_v61 }
  0x46   :  { %1746 = vmatpush.bf16.msra.mxu1 %v3239_v26  ;;  %v4215_v2 = vld [vmem:[#allocation8 + $0x11c] sm:$0xf]  ;;  %v4341_v3 = vld [vmem:[#allocation8 + $0x50c] sm:$0xf]  ;;  %v3604_v4 = vld [vmem:[#allocation8 + $0x524] sm:$0xf0]  ;;  %v3355_v8 = vor.u32 %v4278_v58, %v3352_v59  ;;  %v3631_v13 = vor.u32 %v4351_v1, %v3630_v0 }
  0x47   :  { %1757 = vmatpush.bf16.msra.mxu2 %v3519_v18  ;;  %v4397_v5 = vld [vmem:[#allocation8 + $0x6cc] sm:$0xf]  ;;  %v3828_v7 = vld [vmem:[#allocation8 + $0x6e4] sm:$0xf0]  ;;  %v3100_v9 = vld [vmem:[#allocation8 + $0x134] sm:$0xf0]  ;;  %v3607_v14 = vor.u32 %v4341_v3, %v3604_v4 }
  0x48   :  { %1770 = vmatpush.bf16.msra.mxu3 %v3743_v19  ;;  %v4271_v11 = vld [vmem:[#allocation8 + $0x2dc] sm:$0xf]  ;;  %v3324_v12 = vld [vmem:[#allocation8 + $0x2f4] sm:$0xf0]  ;;  %v3831_v15 = vor.u32 %v4397_v5, %v3828_v7  ;;  %v4334_v16 = vld [vmem:[#allocation8 + $0x4d4] sm:$0xf]  ;;  %v3103_v18 = vor.u32 %v4215_v2, %v3100_v9 }
  0x49   :  { %1734 = vmatpush.bf16.msra.mxu0 %v2987_v35  ;;  %v3576_v17 = vld [vmem:[#allocation8 + $0x4ec] sm:$0xf0]  ;;  %v4390_v19 = vld [vmem:[#allocation8 + $0x694] sm:$0xf]  ;;  %v3327_v21 = vor.u32 %v4271_v11, %v3324_v12  ;;  %v4208_v22 = vld [vmem:[#allocation8 + $0xe4] sm:$0xf] }
  0x4a   :  { %1747 = vmatpush.bf16.msra.mxu1 %v3211_v39  ;;  %v3800_v20 = vld [vmem:[#allocation8 + $0x6ac] sm:$0xf0]  ;;  %v3072_v23 = vld [vmem:[#allocation8 + $0xfc] sm:$0xf0]  ;;  %v4264_v25 = vld [vmem:[#allocation8 + $0x2a4] sm:$0xf]  ;;  %v3579_v27 = vor.u32 %v4334_v16, %v3576_v17 }
  0x4b   :  { %1758 = vmatpush.bf16.msra.mxu2 %v3491_v31  ;;  %v3296_v26 = vld [vmem:[#allocation8 + $0x2bc] sm:$0xf0]  ;;  %v3803_v28 = vor.u32 %v4390_v19, %v3800_v20  ;;  %v3075_v29 = vor.u32 %v4208_v22, %v3072_v23  ;;  %v4201_v31 = vld [vmem:[#allocation8 + $0xac] sm:$0xf]  ;;  %v3268_v34 = vld [vmem:[#allocation8 + $0x284] sm:$0xf0] }
  0x4c   :  { %1771 = vmatpush.bf16.msra.mxu3 %v3715_v32  ;;  %v3299_v30 = vor.u32 %v4264_v25, %v3296_v26  ;;  %v3044_v32 = vld [vmem:[#allocation8 + $0xc4] sm:$0xf0]  ;;  %v4257_v33 = vld [vmem:[#allocation8 + $0x26c] sm:$0xf]  ;;  %v4194_v37 = vld [vmem:[#allocation8 + $0x74] sm:$0xf] }
  0x4d   :  { %1735 = vmatpush.bf16.msra.mxu0 %v2959_v50  ;;  %v3047_v35 = vor.u32 %v4201_v31, %v3044_v32  ;;  %v3271_v36 = vor.u32 %v4257_v33, %v3268_v34  ;;  %v3016_v38 = vld [vmem:[#allocation8 + $0x8c] sm:$0xf0]  ;;  %v4250_v39 = vld [vmem:[#allocation8 + $0x234] sm:$0xf]  ;;  %v4187_v43 = vld [vmem:[#allocation8 + $0x3c] sm:$0xf] }
  0x4e   :  { %1748 = vmatpush.bf16.msra.mxu1 %v3183_v53  ;;  %v3240_v40 = vld [vmem:[#allocation8 + $0x24c] sm:$0xf0]  ;;  %v3019_v41 = vor.u32 %v4194_v37, %v3016_v38  ;;  %v2988_v24 = vld [vmem:[#allocation8 + $0x54] sm:$0xf0]  ;;  %v4383_v50 = vld [vmem:[#allocation8 + $0x65c] sm:$0xf] }
  0x4f   :  { %1759 = vmatpush.bf16.msra.mxu2 %v3463_v45  ;;  %v3243_v42 = vor.u32 %v4250_v39, %v3240_v40  ;;  %v2991_v44 = vor.u32 %v4187_v43, %v2988_v24  ;;  %v4243_v45 = vld [vmem:[#allocation8 + $0x1fc] sm:$0xf]  ;;  %v3212_v46 = vld [vmem:[#allocation8 + $0x214] sm:$0xf0]  ;;  %v2960_v55 = vld [vmem:[#allocation8 + $0x1c] sm:$0xf0] }
  0x50   :  { %1772 = vmatpush.bf16.msra.mxu3 %v3687_v47  ;;  %v4327_v47 = vld [vmem:[#allocation8 + $0x49c] sm:$0xf]  ;;  %v3215_v48 = vor.u32 %v4243_v45, %v3212_v46  ;;  %v3548_v49 = vld [vmem:[#allocation8 + $0x4b4] sm:$0xf0]  ;;  %v4236_v56 = vld [vmem:[#allocation8 + $0x1c4] sm:$0xf] }
  0x51   :  { %1780 = vmatpush.bf16.msrb.mxu0 %v3159_v54  ;;  %v3772_v51 = vld [vmem:[#allocation8 + $0x674] sm:$0xf0]  ;;  %v3551_v52 = vor.u32 %v4327_v47, %v3548_v49  ;;  %v4180_v54 = vld [vmem:[#allocation8 + $0x4] sm:$0xf]  ;;  %v3184_v58 = vld [vmem:[#allocation8 + $0x1dc] sm:$0xf0] }
  0x52   :  { %1793 = vmatpush.bf16.msrb.mxu1 %v3383_v57  ;;  %v3775_v53 = vor.u32 %v4383_v50, %v3772_v51  ;;  %v2963_v57 = vor.u32 %v4180_v54, %v2960_v55  ;;  %v4320_v59 = vld [vmem:[#allocation8 + $0x464] sm:$0xf]  ;;  %v3187_v61 = vor.u32 %v4236_v56, %v3184_v58  ;;  %v3744_v0 = vld [vmem:[#allocation8 + $0x63c] sm:$0xf0]  ;;  %v4313_v2 = vld [vmem:[#allocation8 + $0x42c] sm:$0xf] }
  0x53   :  { %1760 = vmatpush.bf16.msra.mxu2 %v3435_v60  ;;  %v3520_v60 = vld [vmem:[#allocation8 + $0x47c] sm:$0xf0]  ;;  %v4376_v63 = vld [vmem:[#allocation8 + $0x624] sm:$0xf]  ;;  %v3492_v3 = vld [vmem:[#allocation8 + $0x444] sm:$0xf0] }
  0x54   :  { %1773 = vmatpush.bf16.msra.mxu3 %v3659_v62  ;;  %v3523_v62 = vor.u32 %v4320_v59, %v3520_v60  ;;  %v3747_v1 = vor.u32 %v4376_v63, %v3744_v0  ;;  %v4369_v4 = vld [vmem:[#allocation8 + $0x5ec] sm:$0xf]  ;;  %v3495_v5 = vor.u32 %v4313_v2, %v3492_v3  ;;  %v3464_v9 = vld [vmem:[#allocation8 + $0x40c] sm:$0xf0]  ;;  %v4355_v17 = vld [vmem:[#allocation8 + $0x57c] sm:$0xf] }
  0x55   :  { %1781 = vmatpush.bf16.msrb.mxu0 %v3131_v6  ;;  %v3716_v6 = vld [vmem:[#allocation8 + $0x604] sm:$0xf0]  ;;  %v3688_v12 = vld [vmem:[#allocation8 + $0x5cc] sm:$0xf0]  ;;  %v4292_v20 = vld [vmem:[#allocation8 + $0x384] sm:$0xf] }
  0x56   :  { %1794 = vmatpush.bf16.msrb.mxu1 %v3355_v8  ;;  %v3719_v7 = vor.u32 %v4369_v4, %v3716_v6  ;;  %v4306_v8 = vld [vmem:[#allocation8 + $0x3f4] sm:$0xf]  ;;  %v4348_v22 = vld [vmem:[#allocation8 + $0x544] sm:$0xf]  ;;  %v3632_v25 = vld [vmem:[#allocation8 + $0x55c] sm:$0xf0] }
  0x57   :  { %1761 = vmatpush.bf16.msra.mxu2 %v3407_v10  ;;  %v4362_v10 = vld [vmem:[#allocation8 + $0x5b4] sm:$0xf]  ;;  %v3467_v11 = vor.u32 %v4306_v8, %v3464_v9  ;;  %v3635_v26 = vor.u32 %v4348_v22, %v3632_v25  ;;  %v3162_v33 = vld [vmem:[#allocation8 + $0x190] sm:$0xf]  ;;  %v4233_v34 = vld [vmem:[#allocation8 + $0x1a8] sm:$0xf0] }
  0x58   :  { %1774 = vmatpush.bf16.msra.mxu3 %v3631_v13  ;;  %v3691_v13 = vor.u32 %v4362_v10, %v3688_v12  ;;  %v4289_v37 = vld [vmem:[#allocation8 + $0x368] sm:$0xf0]  ;;  %v3163_v40 = vor.u32 %v4233_v34, %v3162_v33  ;;  %v3134_v43 = vld [vmem:[#allocation8 + $0x158] sm:$0xf]  ;;  %v4226_v24 = vld [vmem:[#allocation8 + $0x170] sm:$0xf0] }
  0x59   :  { %1782 = vmatpush.bf16.msrb.mxu0 %v3103_v18  ;;  %v3660_v18 = vld [vmem:[#allocation8 + $0x594] sm:$0xf0]  ;;  %v4282_v46 = vld [vmem:[#allocation8 + $0x330] sm:$0xf0]  ;;  %v3106_v51 = vld [vmem:[#allocation8 + $0x120] sm:$0xf] }
  0x5a   :  { %1795 = vmatpush.bf16.msrb.mxu1 %v3327_v21  ;;  %v3663_v19 = vor.u32 %v4355_v17, %v3660_v18  ;;  %v3408_v21 = vld [vmem:[#allocation8 + $0x39c] sm:$0xf0]  ;;  %v3358_v45 = vld [vmem:[#allocation8 + $0x318] sm:$0xf]  ;;  %v4275_v54 = vld [vmem:[#allocation8 + $0x2f8] sm:$0xf0] }
  0x5b   :  { %1806 = vmatpush.bf16.msrb.mxu2 %v3607_v14  ;;  %v4299_v14 = vld [vmem:[#allocation8 + $0x3bc] sm:$0xf]  ;;  %v3411_v23 = vor.u32 %v4292_v20, %v3408_v21  ;;  %v3359_v50 = vor.u32 %v4282_v46, %v3358_v45  ;;  %v3078_v58 = vld [vmem:[#allocation8 + $0xe8] sm:$0xf]  ;;  %v4212_v59 = vld [vmem:[#allocation8 + $0x100] sm:$0xf0] }
  0x5c   :  { %1819 = vmatpush.bf16.msrb.mxu3 %v3831_v15  ;;  %v3436_v15 = vld [vmem:[#allocation8 + $0x3d4] sm:$0xf0]  ;;  %v3079_v0 = vor.u32 %v4212_v59, %v3078_v58  ;;  %v3050_v4 = vld [vmem:[#allocation8 + $0xb0] sm:$0xf]  ;;  %v4261_v8 = vld [vmem:[#allocation8 + $0x288] sm:$0xf0] }
  0x5d   :  { %1783 = vmatpush.bf16.msrb.mxu0 %v3075_v29  ;;  %v3439_v16 = vor.u32 %v4299_v14, %v3436_v15  ;;  %v3274_v6 = vld [vmem:[#allocation8 + $0x270] sm:$0xf]  ;;  %v4345_v10 = vld [vmem:[#allocation8 + $0x528] sm:$0xf0]  ;;  %v3022_v18 = vld [vmem:[#allocation8 + $0x78] sm:$0xf] }
  0x5e   :  { %1796 = vmatpush.bf16.msrb.mxu1 %v3299_v30  ;;  %v3610_v9 = vld [vmem:[#allocation8 + $0x510] sm:$0xf]  ;;  %v3275_v17 = vor.u32 %v4261_v8, %v3274_v6  ;;  %v4254_v25 = vld [vmem:[#allocation8 + $0x250] sm:$0xf0]  ;;  %v2994_v34 = vld [vmem:[#allocation8 + $0x40] sm:$0xf] }
  0x5f   :  { %1807 = vmatpush.bf16.msrb.mxu2 %v3579_v27  ;;  %v189_v27 = vld [vmem:[#allocation7] sm:$0xf]  ;;  %v3834_v12 = vld [vmem:[#allocation8 + $0x6d0] sm:$0xf]  ;;  %v3611_v21 = vor.u32 %v4345_v10, %v3610_v9  ;;  %v4286_v59 = vld [vmem:[#allocation8 + $0x354] sm:$0xf] }
  0x60   :  { %1820 = vmatpush.bf16.msrb.mxu3 %v3803_v28  ;;  %v192_v28 = vperm.slane %v189_v27, 0  ;;  %v193_v29 = vperm.slane %v189_v27, 1  ;;  %v195_v60 = vperm.slane %v189_v27, 3  ;;  %v3164_v58 = vld [vmem:[#allocation8 + $0x1ac] sm:$0xf0]  ;;  %s4771_s18 = smov [#allocation17]  }
  0x61   :  { %1784 = vmatpush.bf16.msrb.mxu0 %v3047_v35  ;;  %v4373_v6 = vld [vmem:[#allocation8 + $0x608] sm:$0xf0]  ;;  %v3136_v8 = vld [vmem:[#allocation8 + $0x174] sm:$0xf0]  ;;  %v4279_v9 = vld [vmem:[#allocation8 + $0x31c] sm:$0xf] }
  0x62   :  { %1797 = vmatpush.bf16.msrb.mxu1 %v3271_v36  ;;  %v3386_v36 = vld [vmem:[#allocation8 + $0x350] sm:$0xf]  ;;  %v3360_v10 = vld [vmem:[#allocation8 + $0x334] sm:$0xf0]  ;;  %s2904_s19 = sshll.u32 %s4771_s18, 4  ;;  %s2906_s1 = sshll.u32 %s4988_s13, 4  ;;  %s2905_s19 = int_to_ptr.vmem [resolvable:$true] %s2904_s19  ;;  %s2907_s1 = int_to_ptr.hbm [resolvable:$true] %s2906_s1 }
  0x63   :  { %1808 = vmatpush.bf16.msrb.mxu2 %v3551_v52  ;;  %v4219_v52 = vld [vmem:[#allocation8 + $0x138] sm:$0xf0] }
  0x64   :  { %1821 = vmatpush.bf16.msrb.mxu3 %v3775_v53  ;;  %v3330_v53 = vld [vmem:[#allocation8 + $0x2e0] sm:$0xf]  ;;  %v3107_v55 = vor.u32 %v4219_v52, %v3106_v51  ;;  %v4240_v52 = vld [vmem:[#allocation8 + $0x1e0] sm:$0xf0] }
  0x65   :  { %1785 = vmatpush.bf16.msrb.mxu0 %v3019_v41  ;;  %v3331_v56 = vor.u32 %v4275_v54, %v3330_v53  ;;  %v3526_v53 = vld [vmem:[#allocation8 + $0x468] sm:$0xf]  ;;  %v4324_v54 = vld [vmem:[#allocation8 + $0x480] sm:$0xf0] }
  0x66   :  { %1798 = vmatpush.bf16.msrb.mxu1 %v3243_v42  ;;  %v3387_v42 = vor.u32 %v4289_v37, %v3386_v36 }
  0x67   :  { %1809 = vmatpush.bf16.msrb.mxu2 %v3523_v62  ;;  %v4268_v62 = vld [vmem:[#allocation8 + $0x2c0] sm:$0xf0] }
  0x68   :  { %1822 = vmatpush.bf16.msrb.mxu3 %v3747_v1 }
  0x69   :  { %1786 = vmatpush.bf16.msrb.mxu0 %v2991_v44 }
  0x6a   :  { %1799 = vmatpush.bf16.msrb.mxu1 %v3215_v48  ;;  %v3135_v48 = vor.u32 %v4226_v24, %v3134_v43  ;;  %v3778_v43 = vld [vmem:[#allocation8 + $0x660] sm:$0xf]  ;;  %v4387_v24 = vld [vmem:[#allocation8 + $0x678] sm:$0xf0] }
  0x6b   :  { %1810 = vmatpush.bf16.msrb.mxu2 %v3495_v5  ;;  %v4205_v5 = vld [vmem:[#allocation8 + $0xc8] sm:$0xf0]  ;;  %v3779_v51 = vor.u32 %v4387_v24, %v3778_v43  ;;  %v3638_v43 = vld [vmem:[#allocation8 + $0x548] sm:$0xf] }
  0x6c   :  { %1823 = vmatpush.bf16.msrb.mxu3 %v3719_v7 }
  0x6d   :  { %1787 = vmatpush.bf16.msrb.mxu0 %v2963_v57  ;;  %v194_v57 = vperm.slane %v189_v27, 2  ;;  %v4338_v27 = vld [vmem:[#allocation8 + $0x4f0] sm:$0xf0] }
  0x6e   :  { %1800 = vmatpush.bf16.msrb.mxu1 %v3187_v61  ;;  %v3302_v61 = vld [vmem:[#allocation8 + $0x2a8] sm:$0xf] }
  0x6f   :  { %1811 = vmatpush.bf16.msrb.mxu2 %v3467_v11  ;;  %v3303_v3 = vor.u32 %v4268_v62, %v3302_v61 }
  0x70   :  { %1824 = vmatpush.bf16.msrb.mxu3 %v3691_v13  ;;  %v4401_v13 = vld [vmem:[#allocation8 + $0x6e8] sm:$0xf0] }
  0x71   :  { %v3835_v22 = vor.u32 %v4401_v13, %v3834_v12  ;;  %v3470_v13 = vld [vmem:[#allocation8 + $0x3f8] sm:$0xf] }
  0x73   :  { %1812 = vmatpush.bf16.msrb.mxu2 %v3439_v16  ;;  %v3051_v16 = vor.u32 %v4205_v5, %v3050_v4  ;;  %v3722_v5 = vld [vmem:[#allocation8 + $0x5f0] sm:$0xf] }
  0x74   :  { %1825 = vmatpush.bf16.msrb.mxu3 %v3663_v19  ;;  %v4198_v19 = vld [vmem:[#allocation8 + $0x90] sm:$0xf0]  ;;  %v3723_v12 = vor.u32 %v4373_v6, %v3722_v5 }
  0x77   :  { %1813 = vmatpush.bf16.msrb.mxu2 %v3411_v23  ;;  %v3246_v23 = vld [vmem:[#allocation8 + $0x238] sm:$0xf] }
  0x78   :  { %1826 = vmatpush.bf16.msrb.mxu3 %v3635_v26  ;;  %v3582_v26 = vld [vmem:[#allocation8 + $0x4d8] sm:$0xf]  ;;  %v3247_v33 = vor.u32 %v4254_v25, %v3246_v23  ;;  %v4272_v23 = vld [vmem:[#allocation8 + $0x2e4] sm:$0xf]  ;;  %v3332_v25 = vld [vmem:[#allocation8 + $0x2fc] sm:$0xf0] }
  0x79   :  { %v3583_v36 = vor.u32 %v4338_v27, %v3582_v26 }
  0xb5   :  { %v253_v30 = vpop.f32.mrf.mxu2 }
  0xb6   :  { %v254_v31 = vadd.f32 %v253_v30, %v192_v28  ;;  %v266_v32 = vpop.f32.mrf.mxu3  ;;  %v3806_v28 = vld [vmem:[#allocation8 + $0x698] sm:$0xf] }
  0xb7   :  { %v267_v35 = vadd.f32 %v266_v32, %v193_v29  ;;  %v4394_v29 = vld [vmem:[#allocation8 + $0x6b0] sm:$0xf0]  ;;  %v3023_v32 = vor.u32 %v4198_v19, %v3022_v18  ;;  %v3694_v18 = vld [vmem:[#allocation8 + $0x5b8] sm:$0xf] }
  0xb8   :  { %v296_v38 = vmax.f32 %v254_v31, 0.0  ;;  %v3807_v37 = vor.u32 %v4394_v29, %v3806_v28  ;;  %v4366_v19 = vld [vmem:[#allocation8 + $0x5d0] sm:$0xf0]  ;;  %v3442_v28 = vld [vmem:[#allocation8 + $0x3c0] sm:$0xf] }
  0xb9   :  { %v297_v39 = vmax.f32 %v267_v35, 0.0  ;;  %v4191_v35 = vld [vmem:[#allocation8 + $0x58] sm:$0xf0]  ;;  %v3695_v27 = vor.u32 %v4366_v19, %v3694_v18 }
  0xba   :  { %v4891_v41 = vpack.c.bf16 %v296_v38, %v296_v38  ;;  %v3218_v38 = vld [vmem:[#allocation8 + $0x200] sm:$0xf]  ;;  %v2995_v45 = vor.u32 %v4191_v35, %v2994_v34  ;;  %v4303_v29 = vld [vmem:[#allocation8 + $0x3d8] sm:$0xf0]  ;;  %v4209_v34 = vld [vmem:[#allocation8 + $0xec] sm:$0xf] }
  0xbb   :  { %v4893_v44 = vpack.c.bf16 %v297_v39, %v297_v39  ;;  %v4247_v39 = vld [vmem:[#allocation8 + $0x218] sm:$0xf0]  ;;  %v3080_v35 = vld [vmem:[#allocation8 + $0x104] sm:$0xf0] }
  0xbc   :  { %1736 = vmatmul.bf16.vlgmr.msra.gmra.mxu0 %v4891_v41  ;;  %v3219_v46 = vor.u32 %v4247_v39, %v3218_v38  ;;  %v3443_v38 = vor.u32 %v4303_v29, %v3442_v28  ;;  %v3083_v24 = vor.u32 %v4209_v34, %v3080_v35  ;;  %v4321_v28 = vld [vmem:[#allocation8 + $0x46c] sm:$0xf]  ;;  %v3528_v29 = vld [vmem:[#allocation8 + $0x484] sm:$0xf0]  ;;  %v3394_v34 = vld [vmem:[#allocation8 + $0x358] sm:$0xf] }
  0xbd   :  { %1749 = vmatmul.bf16.vlgmr.msra.gmra.mxu1 %v4893_v44  ;;  %1832 = vmatpush.bf16.msra.mxu0 %v3163_v40  ;;  %v255_v47 = vpop.f32.mrf.mxu2  ;;  %v3554_v40 = vld [vmem:[#allocation8 + $0x4a0] sm:$0xf]  ;;  %v4290_v35 = vld [vmem:[#allocation8 + $0x370] sm:$0xf0] }
  0xbe   :  { %1845 = vmatpush.bf16.msra.mxu1 %v3387_v42  ;;  %v268_v49 = vpop.f32.mrf.mxu3  ;;  %v4331_v42 = vld [vmem:[#allocation8 + $0x4b8] sm:$0xf0]  ;;  %v2966_v47 = vld [vmem:[#allocation8 + $0x8] sm:$0xf] }
  0xbf   :  { %v3190_v49 = vld [vmem:[#allocation8 + $0x1c8] sm:$0xf] }
  0xc0   :  { %v3191_v62 = vor.u32 %v4240_v52, %v3190_v49  ;;  %v4258_v49 = vld [vmem:[#allocation8 + $0x274] sm:$0xf]  ;;  %v3612_v52 = vld [vmem:[#allocation8 + $0x52c] sm:$0xf0] }
  0xc1   :  { %1833 = vmatpush.bf16.msra.mxu0 %v3135_v48  ;;  %v4184_v48 = vld [vmem:[#allocation8 + $0x20] sm:$0xf0] }
  0xc2   :  { %1846 = vmatpush.bf16.msra.mxu1 %v3359_v50  ;;  %v3555_v50 = vor.u32 %v4331_v42, %v3554_v40  ;;  %v2967_v61 = vor.u32 %v4184_v48, %v2966_v47  ;;  %v3414_v40 = vld [vmem:[#allocation8 + $0x388] sm:$0xf]  ;;  %v4296_v42 = vld [vmem:[#allocation8 + $0x3a0] sm:$0xf0]  ;;  %v4202_v47 = vld [vmem:[#allocation8 + $0xb4] sm:$0xf] }
  0xc3   :  { %v3052_v48 = vld [vmem:[#allocation8 + $0xcc] sm:$0xf0] }
  0xc5   :  { %1834 = vmatpush.bf16.msra.mxu0 %v3107_v55  ;;  %v279_v63 = vpop.f32.mrf.mxu2  ;;  %v3750_v55 = vld [vmem:[#allocation8 + $0x628] sm:$0xf] }
  0xc6   :  { %1847 = vmatpush.bf16.msra.mxu1 %v3331_v56  ;;  %v280_v1 = vadd.f32 %v279_v63, %v194_v57  ;;  %v292_v2 = vpop.f32.mrf.mxu3  ;;  %v4380_v56 = vld [vmem:[#allocation8 + $0x640] sm:$0xf0]  ;;  %v4230_v57 = vld [vmem:[#allocation8 + $0x194] sm:$0xf]  ;;  %v3527_v63 = vor.u32 %v4324_v54, %v3526_v53  ;;  %v3836_v54 = vld [vmem:[#allocation8 + $0x6ec] sm:$0xf0] }
  0xc7   :  { %v293_v7 = vadd.f32 %v292_v2, %v195_v60  ;;  %v3388_v60 = vld [vmem:[#allocation8 + $0x36c] sm:$0xf0]  ;;  %v4317_v2 = vld [vmem:[#allocation8 + $0x448] sm:$0xf0]  ;;  %v4398_v53 = vld [vmem:[#allocation8 + $0x6d4] sm:$0xf] }
  0xc8   :  { %v298_v11 = vmax.f32 %v280_v1, 0.0  ;;  %v3498_v1 = vld [vmem:[#allocation8 + $0x430] sm:$0xf]  ;;  %v3391_v4 = vor.u32 %v4286_v59, %v3388_v60  ;;  %v4195_v59 = vld [vmem:[#allocation8 + $0x7c] sm:$0xf] }
  0xc9   :  { %v299_v14 = vmax.f32 %v293_v7, 0.0  ;;  %1835 = vmatpush.bf16.msra.mxu0 %v3079_v0  ;;  %v3751_v0 = vor.u32 %v4380_v56, %v3750_v55  ;;  %v4223_v7 = vld [vmem:[#allocation8 + $0x15c] sm:$0xf]  ;;  %v3415_v55 = vor.u32 %v4296_v42, %v3414_v40  ;;  %v3024_v60 = vld [vmem:[#allocation8 + $0x94] sm:$0xf0] }
  0xca   :  { %v4897_v15 = vpack.c.bf16 %v298_v11, %v298_v11  ;;  %1848 = vmatpush.bf16.msra.mxu1 %v3303_v3  ;;  %v3167_v3 = vor.u32 %v4230_v57, %v3164_v58  ;;  %v3499_v11 = vor.u32 %v4317_v2, %v3498_v1  ;;  %v3055_v57 = vor.u32 %v4202_v47, %v3052_v48  ;;  %v4335_v1 = vld [vmem:[#allocation8 + $0x4dc] sm:$0xf]  ;;  %v3584_v2 = vld [vmem:[#allocation8 + $0x4f4] sm:$0xf0]  ;;  %v4314_v40 = vld [vmem:[#allocation8 + $0x434] sm:$0xf] }
  0xcb   :  { %v4899_v20 = vpack.c.bf16 %v299_v14, %v299_v14  ;;  %v4310_v14 = vld [vmem:[#allocation8 + $0x410] sm:$0xf0]  ;;  %v3027_v5 = vor.u32 %v4195_v59, %v3024_v60  ;;  %v3500_v42 = vld [vmem:[#allocation8 + $0x44c] sm:$0xf0]  ;;  %v3142_v47 = vld [vmem:[#allocation8 + $0x160] sm:$0xf] }
  0xcc   :  { %1762 = vmatmul.bf16.vlgmr.msra.gmra.mxu2 %v4897_v15  ;;  %1788 = vmatmul.bf16.vlgmr.msrb.gmra.mxu0 %v4891_v41  ;;  %v3471_v26 = vor.u32 %v4310_v14, %v3470_v13  ;;  %v4328_v13 = vld [vmem:[#allocation8 + $0x4a4] sm:$0xf]  ;;  %v3556_v14 = vld [vmem:[#allocation8 + $0x4bc] sm:$0xf0]  ;;  %v4227_v48 = vld [vmem:[#allocation8 + $0x178] sm:$0xf0] }
  0xcd   :  { %1775 = vmatmul.bf16.vlgmr.msra.gmra.mxu3 %v4899_v20  ;;  %1801 = vmatmul.bf16.vlgmr.msrb.gmra.mxu1 %v4893_v44  ;;  %v281_v30 = vpop.f32.mrf.mxu2  ;;  %v3114_v59 = vld [vmem:[#allocation8 + $0x128] sm:$0xf]  ;;  %v4220_v60 = vld [vmem:[#allocation8 + $0x140] sm:$0xf0] }
  0xce   :  { %1836 = vmatpush.bf16.msra.mxu0 %v3051_v16  ;;  %1849 = vmatpush.bf16.msra.mxu1 %v3275_v17  ;;  %v294_v31 = vpop.f32.mrf.mxu3  ;;  %v3139_v16 = vor.u32 %v4223_v7, %v3136_v8  ;;  %v3363_v17 = vor.u32 %v4279_v9, %v3360_v10  ;;  %v4188_v7 = vld [vmem:[#allocation8 + $0x44] sm:$0xf]  ;;  %v2996_v8 = vld [vmem:[#allocation8 + $0x5c] sm:$0xf0]  ;;  %v3587_v9 = vor.u32 %v4335_v1, %v3584_v2 }
  0xcf   :  { %1858 = vmatpush.bf16.msra.mxu2 %v3611_v21  ;;  %1871 = vmatpush.bf16.msra.mxu3 %v3835_v22  ;;  %v4216_v21 = vld [vmem:[#allocation8 + $0x124] sm:$0xf]  ;;  %v3108_v22 = vld [vmem:[#allocation8 + $0x13c] sm:$0xf0]  ;;  %v3335_v31 = vor.u32 %v4272_v23, %v3332_v25  ;;  %v2999_v18 = vor.u32 %v4188_v7, %v2996_v8  ;;  %v4237_v23 = vld [vmem:[#allocation8 + $0x1cc] sm:$0xf]  ;;  %v3559_v25 = vor.u32 %v4328_v13, %v3556_v14 }
  0xd0   :  { %v3111_v30 = vor.u32 %v4216_v21, %v3108_v22  ;;  %v4181_v21 = vld [vmem:[#allocation8 + $0xc] sm:$0xf]  ;;  %v2968_v22 = vld [vmem:[#allocation8 + $0x24] sm:$0xf0]  ;;  %v4300_v1 = vld [vmem:[#allocation8 + $0x3c4] sm:$0xf] }
  0xd1   :  { %v3444_v2 = vld [vmem:[#allocation8 + $0x3dc] sm:$0xf0]  ;;  %v3086_v7 = vld [vmem:[#allocation8 + $0xf0] sm:$0xf]  ;;  %v4213_v8 = vld [vmem:[#allocation8 + $0x108] sm:$0xf0] }
  0xd2   :  { %1837 = vmatpush.bf16.msra.mxu0 %v3023_v32  ;;  %1850 = vmatpush.bf16.msra.mxu1 %v3247_v33  ;;  %v3666_v32 = vld [vmem:[#allocation8 + $0x580] sm:$0xf]  ;;  %v4359_v33 = vld [vmem:[#allocation8 + $0x598] sm:$0xf0]  ;;  %v4293_v13 = vld [vmem:[#allocation8 + $0x38c] sm:$0xf] }
  0xd3   :  { %1859 = vmatpush.bf16.msra.mxu2 %v3583_v36  ;;  %1872 = vmatpush.bf16.msra.mxu3 %v3807_v37  ;;  %v4265_v36 = vld [vmem:[#allocation8 + $0x2ac] sm:$0xf]  ;;  %v3304_v37 = vld [vmem:[#allocation8 + $0x2c4] sm:$0xf0]  ;;  %v3667_v39 = vor.u32 %v4359_v33, %v3666_v32  ;;  %v3170_v32 = vld [vmem:[#allocation8 + $0x198] sm:$0xf] }
  0xd4   :  { %v4234_v33 = vld [vmem:[#allocation8 + $0x1b0] sm:$0xf0]  ;;  %v3416_v14 = vld [vmem:[#allocation8 + $0x3a4] sm:$0xf0] }
  0xd6   :  { %1838 = vmatpush.bf16.msra.mxu0 %v2995_v45  ;;  %1851 = vmatpush.bf16.msra.mxu1 %v3219_v46  ;;  %v3307_v45 = vor.u32 %v4265_v36, %v3304_v37  ;;  %v4352_v46 = vld [vmem:[#allocation8 + $0x560] sm:$0xf0]  ;;  %v2971_v36 = vor.u32 %v4181_v21, %v2968_v22  ;;  %v3058_v21 = vld [vmem:[#allocation8 + $0xb8] sm:$0xf]  ;;  %v4206_v22 = vld [vmem:[#allocation8 + $0xd0] sm:$0xf0] }
  0xd7   :  { %1860 = vmatpush.bf16.msra.mxu2 %v3555_v50  ;;  %1873 = vmatpush.bf16.msra.mxu3 %v3779_v51  ;;  %v3276_v50 = vld [vmem:[#allocation8 + $0x28c] sm:$0xf0]  ;;  %v4342_v51 = vld [vmem:[#allocation8 + $0x514] sm:$0xf]  ;;  %v3639_v56 = vor.u32 %v4352_v46, %v3638_v43  ;;  %v3171_v43 = vor.u32 %v4234_v33, %v3170_v32  ;;  %v3059_v32 = vor.u32 %v4206_v22, %v3058_v21  ;;  %v4224_v21 = vld [vmem:[#allocation8 + $0x164] sm:$0xf] }
  0xd8   :  { %v3279_v58 = vor.u32 %v4258_v49, %v3276_v50  ;;  %v3724_v46 = vld [vmem:[#allocation8 + $0x60c] sm:$0xf0]  ;;  %v3366_v49 = vld [vmem:[#allocation8 + $0x320] sm:$0xf]  ;;  %v4283_v50 = vld [vmem:[#allocation8 + $0x338] sm:$0xf0] }
  0xd9   :  { %v3144_v22 = vld [vmem:[#allocation8 + $0x17c] sm:$0xf0] }
  0xda   :  { %1839 = vmatpush.bf16.msra.mxu0 %v2967_v61  ;;  %1852 = vmatpush.bf16.msra.mxu1 %v3191_v62  ;;  %v3615_v61 = vor.u32 %v4342_v51, %v3612_v52  ;;  %v3839_v62 = vor.u32 %v4398_v53, %v3836_v54  ;;  %v3503_v51 = vor.u32 %v4314_v40, %v3500_v42  ;;  %v4307_v53 = vld [vmem:[#allocation8 + $0x3fc] sm:$0xf]  ;;  %v3472_v54 = vld [vmem:[#allocation8 + $0x414] sm:$0xf0]  ;;  %v3590_v40 = vld [vmem:[#allocation8 + $0x4e0] sm:$0xf] }
  0xdb   :  { %1861 = vmatpush.bf16.msra.mxu2 %v3527_v63  ;;  %1874 = vmatpush.bf16.msra.mxu3 %v3751_v0  ;;  %v4251_v63 = vld [vmem:[#allocation8 + $0x23c] sm:$0xf]  ;;  %v3248_v0 = vld [vmem:[#allocation8 + $0x254] sm:$0xf0] }
  0xdc   :  { %1814 = vmatmul.bf16.vlgmr.msrb.gmra.mxu2 %v4897_v15  ;;  %v3251_v6 = vor.u32 %v4251_v63, %v3248_v0  ;;  %v3475_v63 = vor.u32 %v4307_v53, %v3472_v54  ;;  %v4339_v42 = vld [vmem:[#allocation8 + $0x4f8] sm:$0xf0]  ;;  %v3562_v53 = vld [vmem:[#allocation8 + $0x4a8] sm:$0xf]  ;;  %v4332_v54 = vld [vmem:[#allocation8 + $0x4c0] sm:$0xf0] }
  0xdd   :  { %1827 = vmatmul.bf16.vlgmr.msrb.gmra.mxu3 %v4899_v20  ;;  %1840 = vmatmul.bf16.vlgmr.msra.gmra.mxu0 %v4891_v41 }
  0xde   :  { %1884 = vmatpush.bf16.msrb.mxu0 %v3167_v3  ;;  %1897 = vmatpush.bf16.msrb.mxu1 %v3391_v4  ;;  %v4391_v3 = vld [vmem:[#allocation8 + $0x69c] sm:$0xf]  ;;  %v3808_v4 = vld [vmem:[#allocation8 + $0x6b4] sm:$0xf0] }
  0xdf   :  { %1853 = vmatmul.bf16.vlgmr.msra.gmra.mxu1 %v4893_v44  ;;  %1862 = vmatpush.bf16.msra.mxu2 %v3499_v11  ;;  %v3811_v10 = vor.u32 %v4391_v3, %v3808_v4  ;;  %v4244_v11 = vld [vmem:[#allocation8 + $0x204] sm:$0xf]  ;;  %v3115_v3 = vor.u32 %v4220_v60, %v3114_v59  ;;  %v2974_v59 = vld [vmem:[#allocation8 + $0x10] sm:$0xf]  ;;  %v4185_v60 = vld [vmem:[#allocation8 + $0x28] sm:$0xf0] }
  0xe0   :  { %1875 = vmatpush.bf16.msra.mxu3 %v3723_v12  ;;  %v3220_v12 = vld [vmem:[#allocation8 + $0x21c] sm:$0xf0] }
  0xe1   :  { %v3223_v19 = vor.u32 %v4244_v11, %v3220_v12  ;;  %v3447_v11 = vor.u32 %v4300_v1, %v3444_v2  ;;  %v3534_v1 = vld [vmem:[#allocation8 + $0x470] sm:$0xf]  ;;  %v4325_v2 = vld [vmem:[#allocation8 + $0x488] sm:$0xf0] }
  0xe2   :  { %1885 = vmatpush.bf16.msrb.mxu0 %v3139_v16  ;;  %1898 = vmatpush.bf16.msrb.mxu1 %v3363_v17  ;;  %v4384_v16 = vld [vmem:[#allocation8 + $0x664] sm:$0xf]  ;;  %v3780_v17 = vld [vmem:[#allocation8 + $0x67c] sm:$0xf0] }
  0xe3   :  { %1863 = vmatpush.bf16.msra.mxu2 %v3471_v26  ;;  %v3783_v26 = vor.u32 %v4384_v16, %v3780_v17  ;;  %v4349_v16 = vld [vmem:[#allocation8 + $0x54c] sm:$0xf]  ;;  %v3087_v17 = vor.u32 %v4213_v8, %v3086_v7  ;;  %v4287_v7 = vld [vmem:[#allocation8 + $0x35c] sm:$0xf]  ;;  %v3396_v8 = vld [vmem:[#allocation8 + $0x374] sm:$0xf0] }
  0xe4   :  { %1876 = vmatpush.bf16.msra.mxu3 %v3695_v27  ;;  %v3192_v27 = vld [vmem:[#allocation8 + $0x1e4] sm:$0xf0] }
  0xe5   :  { %v3195_v37 = vor.u32 %v4237_v23, %v3192_v27  ;;  %v3282_v23 = vld [vmem:[#allocation8 + $0x278] sm:$0xf]  ;;  %v4346_v27 = vld [vmem:[#allocation8 + $0x530] sm:$0xf0] }
  0xe6   :  { %1886 = vmatpush.bf16.msrb.mxu0 %v3111_v30  ;;  %1899 = vmatpush.bf16.msrb.mxu1 %v3335_v31  ;;  %v4377_v30 = vld [vmem:[#allocation8 + $0x62c] sm:$0xf]  ;;  %v3752_v31 = vld [vmem:[#allocation8 + $0x644] sm:$0xf0] }
  0xe7   :  { %1864 = vmatpush.bf16.msra.mxu2 %v3443_v38  ;;  %v3531_v38 = vor.u32 %v4321_v28, %v3528_v29  ;;  %v3842_v28 = vld [vmem:[#allocation8 + $0x6d8] sm:$0xf]  ;;  %v4402_v29 = vld [vmem:[#allocation8 + $0x6f0] sm:$0xf0] }
  0xe8   :  { %1877 = vmatpush.bf16.msra.mxu3 %v3667_v39  ;;  %v3755_v39 = vor.u32 %v4377_v30, %v3752_v31  ;;  %v3419_v30 = vor.u32 %v4293_v13, %v3416_v14  ;;  %v3506_v13 = vld [vmem:[#allocation8 + $0x438] sm:$0xf]  ;;  %v4318_v14 = vld [vmem:[#allocation8 + $0x450] sm:$0xf0] }
  0xea   :  { %1887 = vmatpush.bf16.msrb.mxu0 %v3083_v24  ;;  %1900 = vmatpush.bf16.msrb.mxu1 %v3307_v45  ;;  %v3395_v24 = vor.u32 %v4290_v35, %v3394_v34  ;;  %v4370_v45 = vld [vmem:[#allocation8 + $0x5f4] sm:$0xf]  ;;  %v3030_v34 = vld [vmem:[#allocation8 + $0x80] sm:$0xf]  ;;  %v4199_v35 = vld [vmem:[#allocation8 + $0x98] sm:$0xf0] }
  0xeb   :  { %1865 = vmatpush.bf16.msra.mxu2 %v3415_v55  ;;  %v3727_v52 = vor.u32 %v4370_v45, %v3724_v46  ;;  %v3143_v55 = vor.u32 %v4227_v48, %v3142_v47  ;;  %v3031_v45 = vor.u32 %v4199_v35, %v3030_v34  ;;  %v3002_v47 = vld [vmem:[#allocation8 + $0x48] sm:$0xf]  ;;  %v4192_v48 = vld [vmem:[#allocation8 + $0x60] sm:$0xf0]  ;;  %v4217_v34 = vld [vmem:[#allocation8 + $0x12c] sm:$0xf] }
  0xec   :  { %1878 = vmatpush.bf16.msra.mxu3 %v3639_v56  ;;  %v3367_v56 = vor.u32 %v4283_v50, %v3366_v49  ;;  %v3591_v49 = vor.u32 %v4339_v42, %v3590_v40  ;;  %v3116_v35 = vld [vmem:[#allocation8 + $0x144] sm:$0xf0]  ;;  %v4304_v42 = vld [vmem:[#allocation8 + $0x3e0] sm:$0xf0] }
  0xed   :  { %v3450_v40 = vld [vmem:[#allocation8 + $0x3c8] sm:$0xf] }
  0xee   :  { %1888 = vmatpush.bf16.msrb.mxu0 %v3055_v57  ;;  %1901 = vmatpush.bf16.msrb.mxu1 %v3279_v58  ;;  %v4363_v57 = vld [vmem:[#allocation8 + $0x5bc] sm:$0xf]  ;;  %v3696_v58 = vld [vmem:[#allocation8 + $0x5d4] sm:$0xf0] }
  0xef   :  { %1910 = vmatpush.bf16.msrb.mxu2 %v3615_v61  ;;  %1879 = vmatmul.bf16.vlgmr.msra.gmra.mxu3 %v4899_v20  ;;  %v3338_v61 = vld [vmem:[#allocation8 + $0x2e8] sm:$0xf]  ;;  %v3699_v0 = vor.u32 %v4363_v57, %v3696_v58  ;;  %v3003_v57 = vor.u32 %v4192_v48, %v3002_v47  ;;  %v4210_v47 = vld [vmem:[#allocation8 + $0xf4] sm:$0xf]  ;;  %v3088_v48 = vld [vmem:[#allocation8 + $0x10c] sm:$0xf0] }
  0xf0   :  { %1923 = vmatpush.bf16.msrb.mxu3 %v3839_v62  ;;  %1866 = vmatmul.bf16.vlgmr.msra.gmra.mxu2 %v4897_v15  ;;  %v4276_v62 = vld [vmem:[#allocation8 + $0x300] sm:$0xf0] }
  0xf1   :  { %v3339_v4 = vor.u32 %v4276_v62, %v3338_v61  ;;  %v3198_v61 = vld [vmem:[#allocation8 + $0x1d0] sm:$0xf]  ;;  %v3563_v62 = vor.u32 %v4332_v54, %v3562_v53  ;;  %v4297_v54 = vld [vmem:[#allocation8 + $0x3a8] sm:$0xf0] }
  0xf2   :  { %1889 = vmatpush.bf16.msrb.mxu0 %v3027_v5  ;;  %1902 = vmatpush.bf16.msrb.mxu1 %v3251_v6  ;;  %v4356_v5 = vld [vmem:[#allocation8 + $0x584] sm:$0xf]  ;;  %v3668_v6 = vld [vmem:[#allocation8 + $0x59c] sm:$0xf0]  ;;  %v3422_v53 = vld [vmem:[#allocation8 + $0x390] sm:$0xf] }
  0xf3   :  { %1911 = vmatpush.bf16.msrb.mxu2 %v3587_v9  ;;  %v3310_v9 = vld [vmem:[#allocation8 + $0x2b0] sm:$0xf]  ;;  %v3671_v12 = vor.u32 %v4356_v5, %v3668_v6  ;;  %v4231_v5 = vld [vmem:[#allocation8 + $0x19c] sm:$0xf]  ;;  %v3172_v6 = vld [vmem:[#allocation8 + $0x1b4] sm:$0xf0] }
  0xf4   :  { %1924 = vmatpush.bf16.msrb.mxu3 %v3811_v10  ;;  %v4269_v10 = vld [vmem:[#allocation8 + $0x2c8] sm:$0xf0] }
  0xf6   :  { %1890 = vmatpush.bf16.msrb.mxu0 %v2999_v18  ;;  %1903 = vmatpush.bf16.msrb.mxu1 %v3223_v19  ;;  %v3311_v18 = vor.u32 %v4269_v10, %v3310_v9  ;;  %v3640_v19 = vld [vmem:[#allocation8 + $0x564] sm:$0xf0]  ;;  %v2975_v9 = vor.u32 %v4185_v60, %v2974_v59  ;;  %v4203_v59 = vld [vmem:[#allocation8 + $0xbc] sm:$0xf]  ;;  %v3060_v60 = vld [vmem:[#allocation8 + $0xd4] sm:$0xf0] }
  0xf7   :  { %1912 = vmatpush.bf16.msrb.mxu2 %v3559_v25  ;;  %v4262_v25 = vld [vmem:[#allocation8 + $0x290] sm:$0xf0]  ;;  %v3643_v31 = vor.u32 %v4349_v16, %v3640_v19  ;;  %v3175_v16 = vor.u32 %v4231_v5, %v3172_v6  ;;  %v3063_v5 = vor.u32 %v4203_v59, %v3060_v60  ;;  %v3150_v59 = vld [vmem:[#allocation8 + $0x168] sm:$0xf]  ;;  %v4228_v60 = vld [vmem:[#allocation8 + $0x180] sm:$0xf0] }
  0xf8   :  { %1925 = vmatpush.bf16.msrb.mxu3 %v3783_v26  ;;  %v3618_v26 = vld [vmem:[#allocation8 + $0x518] sm:$0xf]  ;;  %v3283_v33 = vor.u32 %v4262_v25, %v3282_v23  ;;  %v4374_v19 = vld [vmem:[#allocation8 + $0x610] sm:$0xf0]  ;;  %v4280_v23 = vld [vmem:[#allocation8 + $0x324] sm:$0xf] }
  0xf9   :  { %v3368_v25 = vld [vmem:[#allocation8 + $0x33c] sm:$0xf0] }
  0xfa   :  { %1891 = vmatpush.bf16.msrb.mxu0 %v2971_v36  ;;  %1904 = vmatpush.bf16.msrb.mxu1 %v3195_v37  ;;  %v3619_v36 = vor.u32 %v4346_v27, %v3618_v26  ;;  %v3843_v37 = vor.u32 %v4402_v29, %v3842_v28  ;;  %v3507_v26 = vor.u32 %v4318_v14, %v3506_v13  ;;  %v3478_v28 = vld [vmem:[#allocation8 + $0x400] sm:$0xf]  ;;  %v4311_v29 = vld [vmem:[#allocation8 + $0x418] sm:$0xf0]  ;;  %v4336_v13 = vld [vmem:[#allocation8 + $0x4e4] sm:$0xf] }
  0xfb   :  { %1913 = vmatpush.bf16.msrb.mxu2 %v3531_v38  ;;  %v3254_v38 = vld [vmem:[#allocation8 + $0x240] sm:$0xf] }
  0xfc   :  { %1926 = vmatpush.bf16.msrb.mxu3 %v3755_v39  ;;  %v4255_v39 = vld [vmem:[#allocation8 + $0x258] sm:$0xf0]  ;;  %v3592_v14 = vld [vmem:[#allocation8 + $0x4fc] sm:$0xf0] }
  0xfd   :  { %1892 = vmatmul.bf16.vlgmr.msrb.gmra.mxu0 %v4891_v41  ;;  %1905 = vmatmul.bf16.vlgmr.msrb.gmra.mxu1 %v4893_v44  ;;  %v3255_v46 = vor.u32 %v4255_v39, %v3254_v38  ;;  %v3479_v38 = vor.u32 %v4311_v29, %v3478_v28  ;;  %v4329_v28 = vld [vmem:[#allocation8 + $0x4ac] sm:$0xf]  ;;  %v3564_v29 = vld [vmem:[#allocation8 + $0x4c4] sm:$0xf0] }
  0xfe   :  { %1936 = vmatpush.bf16.msra.mxu0 %v3171_v43  ;;  %1949 = vmatpush.bf16.msra.mxu1 %v3395_v24  ;;  %v3814_v43 = vld [vmem:[#allocation8 + $0x6a0] sm:$0xf]  ;;  %v4395_v24 = vld [vmem:[#allocation8 + $0x6b8] sm:$0xf0] }
  0xff   :  { %1914 = vmatpush.bf16.msrb.mxu2 %v3503_v51  ;;  %v3815_v50 = vor.u32 %v4395_v24, %v3814_v43  ;;  %v3226_v51 = vld [vmem:[#allocation8 + $0x208] sm:$0xf]  ;;  %v3119_v43 = vor.u32 %v4217_v34, %v3116_v35  ;;  %v4182_v34 = vld [vmem:[#allocation8 + $0x14] sm:$0xf]  ;;  %v2976_v35 = vld [vmem:[#allocation8 + $0x2c] sm:$0xf0] }
 0x100   :  { %1927 = vmatpush.bf16.msrb.mxu3 %v3727_v52  ;;  %v4248_v52 = vld [vmem:[#allocation8 + $0x220] sm:$0xf0] }
 0x101   :  { %v3227_v58 = vor.u32 %v4248_v52, %v3226_v51  ;;  %v3451_v51 = vor.u32 %v4304_v42, %v3450_v40  ;;  %v4322_v40 = vld [vmem:[#allocation8 + $0x474] sm:$0xf]  ;;  %v3536_v42 = vld [vmem:[#allocation8 + $0x48c] sm:$0xf0] }
 0x102   :  { %1937 = vmatpush.bf16.msra.mxu0 %v3143_v55  ;;  %1950 = vmatpush.bf16.msra.mxu1 %v3367_v56  ;;  %v3786_v55 = vld [vmem:[#allocation8 + $0x668] sm:$0xf]  ;;  %v4388_v56 = vld [vmem:[#allocation8 + $0x680] sm:$0xf0] }
 0x103   :  { %1915 = vmatpush.bf16.msrb.mxu2 %v3475_v63  ;;  %v3787_v63 = vor.u32 %v4388_v56, %v3786_v55  ;;  %v3646_v55 = vld [vmem:[#allocation8 + $0x550] sm:$0xf]  ;;  %v3091_v56 = vor.u32 %v4210_v47, %v3088_v48  ;;  %v3402_v47 = vld [vmem:[#allocation8 + $0x360] sm:$0xf]  ;;  %v4291_v48 = vld [vmem:[#allocation8 + $0x378] sm:$0xf0] }
 0x104   :  { %1928 = vmatpush.bf16.msrb.mxu3 %v3699_v0  ;;  %v4241_v0 = vld [vmem:[#allocation8 + $0x1e8] sm:$0xf0] }
 0x105   :  { %v3199_v10 = vor.u32 %v4241_v0, %v3198_v61  ;;  %v4259_v61 = vld [vmem:[#allocation8 + $0x27c] sm:$0xf]  ;;  %v3620_v0 = vld [vmem:[#allocation8 + $0x534] sm:$0xf0] }
 0x106   :  { %1938 = vmatpush.bf16.msra.mxu0 %v3115_v3  ;;  %1951 = vmatpush.bf16.msra.mxu1 %v3339_v4  ;;  %v3758_v3 = vld [vmem:[#allocation8 + $0x630] sm:$0xf]  ;;  %v4381_v4 = vld [vmem:[#allocation8 + $0x648] sm:$0xf0] }
 0x107   :  { %1916 = vmatpush.bf16.msrb.mxu2 %v3447_v11  ;;  %v3535_v11 = vor.u32 %v4325_v2, %v3534_v1  ;;  %v4399_v1 = vld [vmem:[#allocation8 + $0x6dc] sm:$0xf]  ;;  %v3844_v2 = vld [vmem:[#allocation8 + $0x6f4] sm:$0xf0] }
 0x108   :  { %1929 = vmatpush.bf16.msrb.mxu3 %v3671_v12  ;;  %v3759_v12 = vor.u32 %v4381_v4, %v3758_v3  ;;  %v3423_v3 = vor.u32 %v4297_v54, %v3422_v53  ;;  %v4315_v53 = vld [vmem:[#allocation8 + $0x43c] sm:$0xf]  ;;  %v3508_v54 = vld [vmem:[#allocation8 + $0x454] sm:$0xf0] }
 0x10a   :  { %1939 = vmatpush.bf16.msra.mxu0 %v3087_v17  ;;  %1952 = vmatpush.bf16.msra.mxu1 %v3311_v18  ;;  %v3399_v17 = vor.u32 %v4287_v7, %v3396_v8  ;;  %v3730_v18 = vld [vmem:[#allocation8 + $0x5f8] sm:$0xf]  ;;  %v4196_v7 = vld [vmem:[#allocation8 + $0x84] sm:$0xf]  ;;  %v3032_v8 = vld [vmem:[#allocation8 + $0x9c] sm:$0xf0] }
 0x10b   :  { %1917 = vmatpush.bf16.msrb.mxu2 %v3419_v30  ;;  %v3731_v27 = vor.u32 %v4374_v19, %v3730_v18  ;;  %v3147_v30 = vor.u32 %v4224_v21, %v3144_v22  ;;  %v3035_v18 = vor.u32 %v4196_v7, %v3032_v8  ;;  %v4189_v21 = vld [vmem:[#allocation8 + $0x4c] sm:$0xf]  ;;  %v3004_v22 = vld [vmem:[#allocation8 + $0x64] sm:$0xf0]  ;;  %v3122_v7 = vld [vmem:[#allocation8 + $0x130] sm:$0xf] }
 0x10c   :  { %1930 = vmatpush.bf16.msrb.mxu3 %v3643_v31  ;;  %v3371_v31 = vor.u32 %v4280_v23, %v3368_v25  ;;  %v3595_v23 = vor.u32 %v4336_v13, %v3592_v14  ;;  %v4221_v8 = vld [vmem:[#allocation8 + $0x148] sm:$0xf0] }
 0x10d   :  { %v4301_v14 = vld [vmem:[#allocation8 + $0x3cc] sm:$0xf] }
 0x10e   :  { %1940 = vmatpush.bf16.msra.mxu0 %v3059_v32  ;;  %1953 = vmatpush.bf16.msra.mxu1 %v3283_v33  ;;  %v3702_v32 = vld [vmem:[#allocation8 + $0x5c0] sm:$0xf]  ;;  %v4367_v33 = vld [vmem:[#allocation8 + $0x5d8] sm:$0xf0] }
 0x10f   :  { %1962 = vmatpush.bf16.msra.mxu2 %v3619_v36  ;;  %1931 = vmatmul.bf16.vlgmr.msrb.gmra.mxu3 %v4899_v20  ;;  %v4273_v36 = vld [vmem:[#allocation8 + $0x2ec] sm:$0xf]  ;;  %v3703_v39 = vor.u32 %v4367_v33, %v3702_v32  ;;  %v3007_v32 = vor.u32 %v4189_v21, %v3004_v22  ;;  %v3676_v22 = vld [vmem:[#allocation8 + $0x5a4] sm:$0xf0] }
 0x110   :  { %1975 = vmatpush.bf16.msra.mxu3 %v3843_v37  ;;  %1918 = vmatmul.bf16.vlgmr.msrb.gmra.mxu2 %v4897_v15  ;;  %v3340_v37 = vld [vmem:[#allocation8 + $0x304] sm:$0xf0]  ;;  %v4357_v21 = vld [vmem:[#allocation8 + $0x58c] sm:$0xf] }
 0x111   :  { %v3343_v24 = vor.u32 %v4273_v36, %v3340_v37  ;;  %v4238_v36 = vld [vmem:[#allocation8 + $0x1d4] sm:$0xf]  ;;  %v3567_v37 = vor.u32 %v4329_v28, %v3564_v29  ;;  %v3679_v29 = vor.u32 %v4357_v21, %v3676_v22  ;;  %v3206_v21 = vld [vmem:[#allocation8 + $0x1d8] sm:$0xf] }
 0x112   :  { %1941 = vmatpush.bf16.msra.mxu0 %v3031_v45  ;;  %1954 = vmatpush.bf16.msra.mxu1 %v3255_v46  ;;  %v3674_v45 = vld [vmem:[#allocation8 + $0x588] sm:$0xf]  ;;  %v4360_v46 = vld [vmem:[#allocation8 + $0x5a0] sm:$0xf0]  ;;  %v4242_v22 = vld [vmem:[#allocation8 + $0x1f0] sm:$0xf0] }
 0x113   :  { %1963 = vmatpush.bf16.msra.mxu2 %v3591_v49  ;;  %v4266_v49 = vld [vmem:[#allocation8 + $0x2b4] sm:$0xf]  ;;  %v3675_v52 = vor.u32 %v4360_v46, %v3674_v45  ;;  %v3178_v45 = vld [vmem:[#allocation8 + $0x1a0] sm:$0xf]  ;;  %v4235_v46 = vld [vmem:[#allocation8 + $0x1b8] sm:$0xf0] }
 0x114   :  { %1976 = vmatpush.bf16.msra.mxu3 %v3815_v50  ;;  %v3312_v50 = vld [vmem:[#allocation8 + $0x2cc] sm:$0xf0] }
 0x116   :  { %1942 = vmatpush.bf16.msra.mxu0 %v3003_v57  ;;  %1955 = vmatpush.bf16.msra.mxu1 %v3227_v58  ;;  %v3315_v57 = vor.u32 %v4266_v49, %v3312_v50  ;;  %v4353_v58 = vld [vmem:[#allocation8 + $0x568] sm:$0xf0]  ;;  %v2979_v49 = vor.u32 %v4182_v34, %v2976_v35  ;;  %v3648_v35 = vld [vmem:[#allocation8 + $0x56c] sm:$0xf0] }
 0x117   :  { %1964 = vmatpush.bf16.msra.mxu2 %v3563_v62  ;;  %v3284_v62 = vld [vmem:[#allocation8 + $0x294] sm:$0xf0]  ;;  %v3647_v4 = vor.u32 %v4353_v58, %v3646_v55  ;;  %v3179_v55 = vor.u32 %v4235_v46, %v3178_v45 }
 0x118   :  { %1977 = vmatpush.bf16.msra.mxu3 %v3787_v63  ;;  %v4343_v63 = vld [vmem:[#allocation8 + $0x51c] sm:$0xf]  ;;  %v3287_v6 = vor.u32 %v4259_v61, %v3284_v62  ;;  %v3732_v58 = vld [vmem:[#allocation8 + $0x614] sm:$0xf0]  ;;  %v3374_v61 = vld [vmem:[#allocation8 + $0x328] sm:$0xf] }
 0x119   :  { %v4284_v62 = vld [vmem:[#allocation8 + $0x340] sm:$0xf0] }
 0x11a   :  { %1943 = vmatpush.bf16.msra.mxu0 %v2975_v9  ;;  %1956 = vmatpush.bf16.msra.mxu1 %v3199_v10  ;;  %v3623_v9 = vor.u32 %v4343_v63, %v3620_v0  ;;  %v3847_v10 = vor.u32 %v4399_v1, %v3844_v2  ;;  %v3511_v63 = vor.u32 %v4315_v53, %v3508_v54  ;;  %v4308_v1 = vld [vmem:[#allocation8 + $0x404] sm:$0xf]  ;;  %v3480_v2 = vld [vmem:[#allocation8 + $0x41c] sm:$0xf0] }
 0x11b   :  { %1965 = vmatpush.bf16.msra.mxu2 %v3535_v11  ;;  %v4252_v11 = vld [vmem:[#allocation8 + $0x244] sm:$0xf] }
 0x11c   :  { %1978 = vmatpush.bf16.msra.mxu3 %v3759_v12  ;;  %v3256_v12 = vld [vmem:[#allocation8 + $0x25c] sm:$0xf0] }
 0x11d   :  { %1944 = vmatmul.bf16.vlgmr.msra.gmra.mxu0 %v4891_v41  ;;  %1957 = vmatmul.bf16.vlgmr.msra.gmra.mxu1 %v4893_v44  ;;  %v3259_v19 = vor.u32 %v4252_v11, %v3256_v12  ;;  %v3483_v11 = vor.u32 %v4308_v1, %v3480_v2 }
 0x11e   :  { %1988 = vmatpush.bf16.msrb.mxu0 %v3175_v16  ;;  %2001 = vmatpush.bf16.msrb.mxu1 %v3399_v17  ;;  %v4392_v16 = vld [vmem:[#allocation8 + $0x6a4] sm:$0xf]  ;;  %v3816_v17 = vld [vmem:[#allocation8 + $0x6bc] sm:$0xf0] }
 0x11f   :  { %1966 = vmatpush.bf16.msra.mxu2 %v3507_v26  ;;  %v3819_v25 = vor.u32 %v4392_v16, %v3816_v17  ;;  %v4245_v26 = vld [vmem:[#allocation8 + $0x20c] sm:$0xf]  ;;  %v3452_v16 = vld [vmem:[#allocation8 + $0x3e4] sm:$0xf0]  ;;  %v3123_v17 = vor.u32 %v4221_v8, %v3122_v7  ;;  %v3794_v7 = vld [vmem:[#allocation8 + $0x670] sm:$0xf] }
 0x120   :  { %1979 = vmatpush.bf16.msra.mxu3 %v3731_v27  ;;  %v3228_v27 = vld [vmem:[#allocation8 + $0x224] sm:$0xf0]  ;;  %v3455_v28 = vor.u32 %v4301_v14, %v3452_v16  ;;  %v4389_v8 = vld [vmem:[#allocation8 + $0x688] sm:$0xf0]  ;;  %v2982_v14 = vld [vmem:[#allocation8 + $0x18] sm:$0xf] }
 0x121   :  { %v3231_v33 = vor.u32 %v4245_v26, %v3228_v27  ;;  %v3318_v26 = vld [vmem:[#allocation8 + $0x2b8] sm:$0xf]  ;;  %v4270_v27 = vld [vmem:[#allocation8 + $0x2d0] sm:$0xf0] }
 0x122   :  { %1989 = vmatpush.bf16.msrb.mxu0 %v3147_v30  ;;  %2002 = vmatpush.bf16.msrb.mxu1 %v3371_v31  ;;  %v4385_v30 = vld [vmem:[#allocation8 + $0x66c] sm:$0xf]  ;;  %v3788_v31 = vld [vmem:[#allocation8 + $0x684] sm:$0xf0]  ;;  %v3319_v34 = vor.u32 %v4270_v27, %v3318_v26  ;;  %v4186_v16 = vld [vmem:[#allocation8 + $0x30] sm:$0xf0] }
 0x123   :  { %1967 = vmatpush.bf16.msra.mxu2 %v3479_v38  ;;  %v3791_v38 = vor.u32 %v4385_v30, %v3788_v31  ;;  %v4294_v30 = vld [vmem:[#allocation8 + $0x394] sm:$0xf]  ;;  %v3424_v31 = vld [vmem:[#allocation8 + $0x3ac] sm:$0xf0]  ;;  %v3766_v26 = vld [vmem:[#allocation8 + $0x638] sm:$0xf] }
 0x124   :  { %1980 = vmatpush.bf16.msra.mxu3 %v3703_v39  ;;  %v3200_v39 = vld [vmem:[#allocation8 + $0x1ec] sm:$0xf0]  ;;  %v3427_v45 = vor.u32 %v4294_v30, %v3424_v31  ;;  %v4382_v27 = vld [vmem:[#allocation8 + $0x650] sm:$0xf0] }
 0x125   :  { %v3203_v50 = vor.u32 %v4238_v36, %v3200_v39  ;;  %v3066_v36 = vld [vmem:[#allocation8 + $0xc0] sm:$0xf]  ;;  %v4263_v39 = vld [vmem:[#allocation8 + $0x298] sm:$0xf0]  ;;  %v3767_v31 = vor.u32 %v4382_v27, %v3766_v26 }
 0x126   :  { %1990 = vmatpush.bf16.msrb.mxu0 %v3119_v43  ;;  %2003 = vmatpush.bf16.msrb.mxu1 %v3343_v24  ;;  %v4378_v43 = vld [vmem:[#allocation8 + $0x634] sm:$0xf]  ;;  %v3760_v24 = vld [vmem:[#allocation8 + $0x64c] sm:$0xf0]  ;;  %v4406_v27 = vld [vmem:[#allocation11 + $0x10] sm:$0xff] }
 0x127   :  { %1968 = vmatpush.bf16.msra.mxu2 %v3451_v51  ;;  %v3539_v51 = vor.u32 %v4322_v40, %v3536_v42  ;;  %v3626_v40 = vld [vmem:[#allocation8 + $0x520] sm:$0xf]  ;;  %v4347_v42 = vld [vmem:[#allocation8 + $0x538] sm:$0xf0] }
 0x128   :  { %1981 = vmatpush.bf16.msra.mxu3 %v3675_v52  ;;  %v3763_v52 = vor.u32 %v4378_v43, %v3760_v24  ;;  %v3850_v43 = vld [vmem:[#allocation8 + $0x6e0] sm:$0xf]  ;;  %v4403_v24 = vld [vmem:[#allocation8 + $0x6f8] sm:$0xf0]  ;;  %v3627_v53 = vor.u32 %v4347_v42, %v3626_v40 }
 0x129   :  { %v3851_v54 = vor.u32 %v4403_v24, %v3850_v43 }
 0x12a   :  { %1991 = vmatpush.bf16.msrb.mxu0 %v3091_v56  ;;  %2004 = vmatpush.bf16.msrb.mxu1 %v3315_v57  ;;  %v3403_v56 = vor.u32 %v4291_v48, %v3402_v47  ;;  %v4371_v57 = vld [vmem:[#allocation8 + $0x5fc] sm:$0xf] }
 0x12b   :  { %1969 = vmatpush.bf16.msra.mxu2 %v3423_v3  ;;  %v3735_v0 = vor.u32 %v4371_v57, %v3732_v58  ;;  %v3151_v3 = vor.u32 %v4228_v60, %v3150_v59  ;;  %v3598_v57 = vld [vmem:[#allocation8 + $0x4e8] sm:$0xf]  ;;  %v4340_v58 = vld [vmem:[#allocation8 + $0x500] sm:$0xf0] }
 0x12c   :  { %1982 = vmatpush.bf16.msra.mxu3 %v3647_v4  ;;  %v3375_v4 = vor.u32 %v4284_v62, %v3374_v61  ;;  %v3822_v59 = vld [vmem:[#allocation8 + $0x6a8] sm:$0xf]  ;;  %v4396_v60 = vld [vmem:[#allocation8 + $0x6c0] sm:$0xf0]  ;;  %v3599_v1 = vor.u32 %v4340_v58, %v3598_v57  ;;  %v3458_v57 = vld [vmem:[#allocation8 + $0x3d0] sm:$0xf] }
 0x12d   :  { %v3823_v2 = vor.u32 %v4396_v60, %v3822_v59  ;;  %v4305_v59 = vld [vmem:[#allocation8 + $0x3e8] sm:$0xf0]  ;;  %v3682_v60 = vld [vmem:[#allocation8 + $0x590] sm:$0xf] }
 0x12e   :  { %1992 = vmatpush.bf16.msrb.mxu0 %v3063_v5  ;;  %2005 = vmatpush.bf16.msrb.mxu1 %v3287_v6  ;;  %v4364_v5 = vld [vmem:[#allocation8 + $0x5c4] sm:$0xf]  ;;  %v3704_v6 = vld [vmem:[#allocation8 + $0x5dc] sm:$0xf0] }
 0x12f   :  { %2014 = vmatpush.bf16.msrb.mxu2 %v3623_v9  ;;  %1983 = vmatmul.bf16.vlgmr.msra.gmra.mxu3 %v4899_v20  ;;  %v3346_v9 = vld [vmem:[#allocation8 + $0x2f0] sm:$0xf]  ;;  %v3707_v12 = vor.u32 %v4364_v5, %v3704_v6  ;;  %v4333_v6 = vld [vmem:[#allocation8 + $0x4c8] sm:$0xf0] }
 0x130   :  { %2027 = vmatpush.bf16.msrb.mxu3 %v3847_v10  ;;  %1970 = vmatmul.bf16.vlgmr.msra.gmra.mxu2 %v4897_v15  ;;  %v4277_v10 = vld [vmem:[#allocation8 + $0x308] sm:$0xf0]  ;;  %v3570_v5 = vld [vmem:[#allocation8 + $0x4b0] sm:$0xf] }
 0x132   :  { %1993 = vmatpush.bf16.msrb.mxu0 %v3035_v18  ;;  %2006 = vmatpush.bf16.msrb.mxu1 %v3259_v19  ;;  %v3347_v18 = vor.u32 %v4277_v10, %v3346_v9 }
 0x133   :  { %2015 = vmatpush.bf16.msrb.mxu2 %v3595_v23  ;;  %v3094_v23 = vld [vmem:[#allocation8 + $0xf8] sm:$0xf] }
 0x134   :  { %2028 = vmatpush.bf16.msrb.mxu3 %v3819_v25  ;;  %v4214_v25 = vld [vmem:[#allocation8 + $0x110] sm:$0xf0] }
 0x136   :  { %1994 = vmatpush.bf16.msrb.mxu0 %v3007_v32  ;;  %2007 = vmatpush.bf16.msrb.mxu1 %v3231_v33  ;;  %v4350_v32 = vld [vmem:[#allocation8 + $0x554] sm:$0xf]  ;;  %v3095_v33 = vor.u32 %v4214_v25, %v3094_v23  ;;  %v3542_v23 = vld [vmem:[#allocation8 + $0x478] sm:$0xf] }
 0x137   :  { %2016 = vmatpush.bf16.msrb.mxu2 %v3567_v37  ;;  %v4207_v37 = vld [vmem:[#allocation8 + $0xd8] sm:$0xf0]  ;;  %v3651_v46 = vor.u32 %v4350_v32, %v3648_v35  ;;  %v4326_v25 = vld [vmem:[#allocation8 + $0x490] sm:$0xf0]  ;;  %v4411_v32 = vld [vmem:[#allocation11 + $0x38] sm:$0xff] }
 0x138   :  { %2029 = vmatpush.bf16.msrb.mxu3 %v3791_v38  ;;  %v3290_v38 = vld [vmem:[#allocation8 + $0x280] sm:$0xf]  ;;  %v3067_v48 = vor.u32 %v4207_v37, %v3066_v36  ;;  %v3543_v30 = vor.u32 %v4326_v25, %v3542_v23  ;;  %v4319_v37 = vld [vmem:[#allocation8 + $0x458] sm:$0xf0] }
 0x139   :  { %v4921_v13 = vpop.f32.mrf.mxu0  ;;  %v3514_v35 = vld [vmem:[#allocation8 + $0x440] sm:$0xf] }
 0x13a   :  { %1995 = vmatpush.bf16.msrb.mxu0 %v2979_v49  ;;  %2008 = vmatpush.bf16.msrb.mxu1 %v3203_v50  ;;  %v4923_v19 = vpop.f32.mrf.mxu1  ;;  %v3291_v49 = vor.u32 %v4263_v39, %v3290_v38  ;;  %v3738_v38 = vld [vmem:[#allocation8 + $0x600] sm:$0xf]  ;;  %v4375_v39 = vld [vmem:[#allocation8 + $0x618] sm:$0xf0]  ;;  %v3515_v43 = vor.u32 %v4319_v37, %v3514_v35 }
 0x13b   :  { %2017 = vmatpush.bf16.msrb.mxu2 %v3539_v51  ;;  %v3038_v51 = vld [vmem:[#allocation8 + $0x88] sm:$0xf]  ;;  %v3739_v24 = vor.u32 %v4375_v39, %v3738_v38  ;;  %v4435_v23 = vld [vmem:[#allocation11 + $0xf8] sm:$0xff]  ;;  %v4433_v39 = vld [vmem:[#allocation11 + $0xe8] sm:$0xff] }
 0x13c   :  { %2030 = vmatpush.bf16.msrb.mxu3 %v3763_v52  ;;  %v4200_v52 = vld [vmem:[#allocation8 + $0xa0] sm:$0xf0] }
 0x13d   :  { %1996 = vmatmul.bf16.vlgmr.msrb.gmra.mxu0 %v4891_v41  ;;  %2009 = vmatmul.bf16.vlgmr.msrb.gmra.mxu1 %v4893_v44  ;;  %v3039_v61 = vor.u32 %v4200_v52, %v3038_v51  ;;  %v4937_v51 = vld [vmem:[#allocation10] sm:$0xff] }
 0x13e   :  { %2040 = vmatpush.bf16.msra.mxu0 %v3179_v55  ;;  %2053 = vmatpush.bf16.msra.mxu1 %v3403_v56  ;;  %v3262_v55 = vld [vmem:[#allocation8 + $0x248] sm:$0xf]  ;;  %v4256_v56 = vld [vmem:[#allocation8 + $0x260] sm:$0xf0] }
 0x13f   :  { %2018 = vmatpush.bf16.msrb.mxu2 %v3511_v63  ;;  %v3263_v62 = vor.u32 %v4256_v56, %v3262_v55  ;;  %v3010_v63 = vld [vmem:[#allocation8 + $0x50] sm:$0xf] }
 0x140   :  { %2031 = vmatpush.bf16.msrb.mxu3 %v3735_v0  ;;  %v4193_v0 = vld [vmem:[#allocation8 + $0x68] sm:$0xf0]  ;;  %v4417_v55 = vld [vmem:[#allocation11 + $0x68] sm:$0xff] }
 0x141   :  { %v1739_v47 = vpop.f32.mrf.mxu0  ;;  %v3011_v10 = vor.u32 %v4193_v0, %v3010_v63 }
 0x142   :  { %2041 = vmatpush.bf16.msra.mxu0 %v3151_v3  ;;  %2054 = vmatpush.bf16.msra.mxu1 %v3375_v4  ;;  %v1752_v50 = vpop.f32.mrf.mxu1  ;;  %v3234_v3 = vld [vmem:[#allocation8 + $0x210] sm:$0xf]  ;;  %v4249_v4 = vld [vmem:[#allocation8 + $0x228] sm:$0xf0]  ;;  %v3486_v47 = vld [vmem:[#allocation8 + $0x408] sm:$0xf] }
 0x143   :  { %2019 = vmatpush.bf16.msrb.mxu2 %v3483_v11  ;;  %v3235_v11 = vor.u32 %v4249_v4, %v3234_v3  ;;  %v4368_v50 = vld [vmem:[#allocation8 + $0x5e0] sm:$0xf0]  ;;  %v4416_v3 = vld [vmem:[#allocation11 + $0x60] sm:$0xff]  ;;  %v3430_v4 = vld [vmem:[#allocation8 + $0x398] sm:$0xf] }
 0x144   :  { %2032 = vmatpush.bf16.msrb.mxu3 %v3707_v12 }
 0x146   :  { %2042 = vmatpush.bf16.msra.mxu0 %v3123_v17  ;;  %2055 = vmatpush.bf16.msra.mxu1 %v3347_v18  ;;  %v3571_v17 = vor.u32 %v4333_v6, %v3570_v5  ;;  %v3795_v18 = vor.u32 %v4389_v8, %v3794_v7  ;;  %v4298_v5 = vld [vmem:[#allocation8 + $0x3b0] sm:$0xf0]  ;;  %v3654_v6 = vld [vmem:[#allocation8 + $0x558] sm:$0xf] }
 0x147   :  { %2020 = vmatpush.bf16.msrb.mxu2 %v3455_v28  ;;  %v2983_v28 = vor.u32 %v4186_v16, %v2982_v14  ;;  %v4354_v7 = vld [vmem:[#allocation8 + $0x570] sm:$0xf0]  ;;  %v4407_v16 = vld [vmem:[#allocation11 + $0x18] sm:$0xff] }
 0x148   :  { %2033 = vmatpush.bf16.msrb.mxu3 %v3679_v29  ;;  %v3207_v29 = vor.u32 %v4242_v22, %v3206_v21  ;;  %v3655_v14 = vor.u32 %v4354_v7, %v3654_v6  ;;  %v4427_v22 = vld [vmem:[#allocation11 + $0xb8] sm:$0xff]  ;;  %v4440_v7 = vld [vmem:[#allocation11 + $0x120] sm:$0xff] }
 0x149   :  { %v4927_v9 = vpop.f32.mrf.mxu0 }
 0x14a   :  { %2043 = vmatpush.bf16.msra.mxu0 %v3095_v33  ;;  %2056 = vmatpush.bf16.msra.mxu1 %v3319_v34  ;;  %v4929_v12 = vpop.f32.mrf.mxu1  ;;  %v4419_v33 = vld [vmem:[#allocation11 + $0x78] sm:$0xff] }
 0x14b   :  { %2021 = vmatpush.bf16.msrb.mxu2 %v3427_v45  ;;  %v4410_v45 = vld [vmem:[#allocation11 + $0x30] sm:$0xff] }
 0x14c   :  { %2034 = vmatpush.bf16.msrb.mxu3 %v3651_v46  ;;  %v4418_v46 = vld [vmem:[#allocation11 + $0x70] sm:$0xff] }
 0x14e   :  { %2044 = vmatpush.bf16.msra.mxu0 %v3067_v48  ;;  %2057 = vmatpush.bf16.msra.mxu1 %v3291_v49  ;;  %v4312_v48 = vld [vmem:[#allocation8 + $0x420] sm:$0xf0]  ;;  %v3710_v49 = vld [vmem:[#allocation8 + $0x5c8] sm:$0xf] }
 0x14f   :  { %2066 = vmatpush.bf16.msra.mxu2 %v3627_v53  ;;  %2035 = vmatmul.bf16.vlgmr.msrb.gmra.mxu3 %v4899_v20  ;;  %v4931_v34 = vpop.f32.mrf.mxu2  ;;  %v3487_v52 = vor.u32 %v4312_v48, %v3486_v47  ;;  %v3711_v53 = vor.u32 %v4368_v50, %v3710_v49  ;;  %v4423_v48 = vld [vmem:[#allocation11 + $0x98] sm:$0xff] }
 0x150   :  { %2079 = vmatpush.bf16.msra.mxu3 %v3851_v54  ;;  %2022 = vmatmul.bf16.vlgmr.msrb.gmra.mxu2 %v4897_v15  ;;  %v4933_v36 = vpop.f32.mrf.mxu3  ;;  %v4409_v54 = vld [vmem:[#allocation11 + $0x28] sm:$0xff] }
 0x151   :  { %v1791_v40 = vpop.f32.mrf.mxu0 }
 0x152   :  { %2045 = vmatpush.bf16.msra.mxu0 %v3039_v61  ;;  %2058 = vmatpush.bf16.msra.mxu1 %v3263_v62  ;;  %v1804_v42 = vpop.f32.mrf.mxu1  ;;  %v4361_v61 = vld [vmem:[#allocation8 + $0x5a8] sm:$0xf0]  ;;  %v3459_v62 = vor.u32 %v4305_v59, %v3458_v57  ;;  %v564_v40 = vperm.slane %v4937_v51, 2  ;;  %v4443_v59 = vld [vmem:[#allocation11 + $0x138] sm:$0xff] }
 0x153   :  { %2067 = vmatpush.bf16.msra.mxu2 %v3599_v1  ;;  %v3683_v63 = vor.u32 %v4361_v61, %v3682_v60  ;;  %v4412_v42 = vld [vmem:[#allocation11 + $0x40] sm:$0xff]  ;;  %v4421_v60 = vld [vmem:[#allocation11 + $0x88] sm:$0xff] }
 0x154   :  { %2080 = vmatpush.bf16.msra.mxu3 %v3823_v2  ;;  %v4408_v2 = vld [vmem:[#allocation11 + $0x20] sm:$0xff] }
 0x156   :  { %2046 = vmatpush.bf16.msra.mxu0 %v3011_v10  ;;  %2059 = vmatpush.bf16.msra.mxu1 %v3235_v11  ;;  %v3431_v11 = vor.u32 %v4298_v5, %v3430_v4 }
 0x157   :  { %2068 = vmatpush.bf16.msra.mxu2 %v3571_v17  ;;  %v1765_v56 = vpop.f32.mrf.mxu2  ;;  %v4415_v17 = vld [vmem:[#allocation11 + $0x58] sm:$0xff] }
 0x158   :  { %2081 = vmatpush.bf16.msra.mxu3 %v3795_v18  ;;  %v1778_v58 = vpop.f32.mrf.mxu3 }
 0x15a   :  { %2047 = vmatpush.bf16.msra.mxu0 %v2983_v28  ;;  %2060 = vmatpush.bf16.msra.mxu1 %v3207_v29  ;;  %v4941_v0 = vpop.f32.mrf.mxu0  ;;  %v4414_v28 = vld [vmem:[#allocation11 + $0x50] sm:$0xff] }
 0x15b   :  { %2069 = vmatpush.bf16.msra.mxu2 %v3543_v30 }
 0x15c   :  { %2082 = vmatpush.bf16.msra.mxu3 %v3767_v31  ;;  %v4943_v1 = vpop.f32.mrf.mxu1  ;;  %v4426_v31 = vld [vmem:[#allocation11 + $0xb0] sm:$0xff] }
 0x15d   :  { %2048 = vmatmul.bf16.vlgmr.msra.gmra.mxu0 %v4891_v41  ;;  %2061 = vmatmul.bf16.vlgmr.msra.gmra.mxu1 %v4893_v44  ;;  %v562_v41 = vperm.slane %v4937_v51, 0  ;;  %v563_v44 = vperm.slane %v4937_v51, 1 }
 0x15e   :  { %2558 = vmatpush.bf16.msrb.mxu0 %v4411_v32  ;;  %2571 = vmatpush.bf16.msrb.mxu1 %v4419_v33  ;;  %v4434_v32 = vld [vmem:[#allocation11 + $0xf0] sm:$0xff] }
 0x15f   :  { %2070 = vmatpush.bf16.msra.mxu2 %v3515_v43  ;;  %v1738_v8 = vadd.f32 %v4921_v13, %v562_v41  ;;  %v1790_v10 = vadd.f32 %v4927_v9, %v563_v44  ;;  %v1815_v18 = vpop.f32.mrf.mxu2  ;;  %v4429_v44 = vld [vmem:[#allocation11 + $0xc8] sm:$0xff] }
 0x160   :  { %2083 = vmatpush.bf16.msra.mxu3 %v3739_v24  ;;  %v1828_v21 = vpop.f32.mrf.mxu3  ;;  %v4424_v24 = vld [vmem:[#allocation11 + $0xa0] sm:$0xff] }
 0x161   :  { %v1751_v25 = vadd.f32 %v4923_v19, %v1738_v8  ;;  %v1803_v26 = vadd.f32 %v4929_v12, %v1790_v10  ;;  %v4405_v19 = vld [vmem:[#allocation11 + $0x8] sm:$0xff]  ;;  %v565_v8 = vperm.slane %v4937_v51, 3  ;;  %v4439_v10 = vld [vmem:[#allocation11 + $0x118] sm:$0xff] }
 0x162   :  { %2559 = vmatpush.bf16.msrb.mxu0 %v4410_v45  ;;  %2572 = vmatpush.bf16.msrb.mxu1 %v4418_v46  ;;  %v1843_v13 = vpop.f32.mrf.mxu0  ;;  %v4413_v12 = vld [vmem:[#allocation11 + $0x48] sm:$0xff]  ;;  %v4432_v45 = vld [vmem:[#allocation11 + $0xe0] sm:$0xff]  ;;  %v1842_v46 = vadd.f32 %v4941_v0, %v564_v40 }
 0x163   :  { %2071 = vmatpush.bf16.msra.mxu2 %v3487_v52  ;;  %v1764_v29 = vadd.f32 %v4931_v34, %v1751_v25  ;;  %v1816_v30 = vadd.f32 %v1815_v18, %v1803_v26  ;;  %v4425_v34 = vld [vmem:[#allocation11 + $0xa8] sm:$0xff]  ;;  %v4431_v52 = vld [vmem:[#allocation11 + $0xd8] sm:$0xff]  ;;  %v4420_v0 = vld [vmem:[#allocation11 + $0x80] sm:$0xff] }
 0x164   :  { %2084 = vmatpush.bf16.msra.mxu3 %v3711_v53  ;;  %v1856_v9 = vpop.f32.mrf.mxu1  ;;  %v1855_v53 = vadd.f32 %v4943_v1, %v1842_v46  ;;  %v4428_v1 = vld [vmem:[#allocation11 + $0xc0] sm:$0xff]  ;;  %v4451_v13 = vld [vmem:[#allocation11 + $0x178] sm:$0xff] }
 0x165   :  { %v1777_v37 = vadd.f32 %v4933_v36, %v1764_v29  ;;  %v1829_v38 = vadd.f32 %v1828_v21, %v1816_v30  ;;  %v4436_v26 = vld [vmem:[#allocation11 + $0x100] sm:$0xff]  ;;  %v4459_v46 = vld [vmem:[#allocation11 + $0x1b8] sm:$0xff] }
 0x166   :  { %2560 = vmatpush.bf16.msrb.mxu0 %v4409_v54  ;;  %2573 = vmatpush.bf16.msrb.mxu1 %v4417_v55  ;;  %v4422_v54 = vld [vmem:[#allocation11 + $0x90] sm:$0xff] }
 0x167   :  { %2072 = vmatpush.bf16.msra.mxu2 %v3459_v62  ;;  %v1817_v33 = vpop.f32.mrf.mxu2  ;;  %v2093_v43 = vmax.f32 %v1829_v38, 0.0  ;;  %v4430_v55 = vld [vmem:[#allocation11 + $0xd0] sm:$0xff] }
 0x168   :  { %2085 = vmatpush.bf16.msra.mxu3 %v3683_v63  ;;  %v1830_v35 = vpop.f32.mrf.mxu3  ;;  %v4442_v63 = vld [vmem:[#allocation11 + $0x130] sm:$0xff]  ;;  %v4448_v33 = vld [vmem:[#allocation11 + $0x160] sm:$0xff] }
 0x169   :  { %v2213_v47 = vpack.c.bf16 %v2093_v43, %v2093_v43  ;;  %v4447_v35 = vld [vmem:[#allocation11 + $0x158] sm:$0xff]  ;;  %v4446_v38 = vld [vmem:[#allocation11 + $0x150] sm:$0xff] }
 0x16a   :  { %2561 = vmatpush.bf16.msrb.mxu0 %v4408_v2  ;;  %2574 = vmatpush.bf16.msrb.mxu1 %v4416_v3  ;;  %v4441_v3 = vld [vmem:[#allocation11 + $0x128] sm:$0xff] }
 0x16b   :  { %2073 = vmatpush.bf16.msra.mxu2 %v3431_v11 }
 0x16c   :  { %2086 = vmatpush.bf16.msra.mxu3 %v3655_v14  ;;  %v4438_v14 = vld [vmem:[#allocation11 + $0x110] sm:$0xff] }
 0x16e   :  { %2562 = vmatpush.bf16.msrb.mxu0 %v4407_v16  ;;  %2575 = vmatpush.bf16.msrb.mxu1 %v4415_v17 }
 0x16f   :  { %2584 = vmatpush.bf16.msrb.mxu2 %v4427_v22  ;;  %2087 = vmatmul.bf16.vlgmr.msra.gmra.mxu3 %v4899_v20  ;;  %v2092_v20 = vmax.f32 %v1777_v37, 0.0  ;;  %v4437_v22 = vld [vmem:[#allocation11 + $0x108] sm:$0xff]  ;;  %v566_v37 = vperm.slane %v4937_v51, 4 }
 0x170   :  { %2597 = vmatpush.bf16.msrb.mxu3 %v4435_v23  ;;  %2074 = vmatmul.bf16.vlgmr.msra.gmra.mxu2 %v4897_v15  ;;  %v4404_v15 = vld [vmem:[#allocation11] sm:$0xff] }
 0x171   :  { %v2212_v36 = vpack.c.bf16 %v2092_v20, %v2092_v20 }
 0x172   :  { %2563 = vmatpush.bf16.msrb.mxu0 %v4406_v27  ;;  %2576 = vmatpush.bf16.msrb.mxu1 %v4414_v28  ;;  %v1880_v50 = vpop.f32.mrf.mxu3 }
 0x173   :  { %2585 = vmatpush.bf16.msrb.mxu2 %v4426_v31  ;;  %v1867_v49 = vpop.f32.mrf.mxu2  ;;  %v4450_v31 = vld [vmem:[#allocation11 + $0x170] sm:$0xff] }
 0x174   :  { %2598 = vmatpush.bf16.msrb.mxu3 %v4434_v32  ;;  %v1868_v56 = vadd.f32 %v1867_v49, %v1855_v53  ;;  %v4449_v32 = vld [vmem:[#allocation11 + $0x168] sm:$0xff] }
 0x175   :  { %v4457_v53 = vld [vmem:[#allocation11 + $0x1a8] sm:$0xff] }
 0x176   :  { %2564 = vmatpush.bf16.msrb.mxu0 %v4405_v19  ;;  %2577 = vmatpush.bf16.msrb.mxu1 %v4413_v12  ;;  %v1881_v62 = vadd.f32 %v1880_v50, %v1868_v56  ;;  %v4456_v56 = vld [vmem:[#allocation11 + $0x1a0] sm:$0xff] }
 0x177   :  { %2586 = vmatpush.bf16.msrb.mxu2 %v4425_v34 }
 0x178   :  { %2599 = vmatpush.bf16.msrb.mxu3 %v4433_v39  ;;  %v2094_v2 = vmax.f32 %v1881_v62, 0.0 }
 0x17a   :  { %2565 = vmatpush.bf16.msrb.mxu0 %v4404_v15  ;;  %2578 = vmatpush.bf16.msrb.mxu1 %v4412_v42  ;;  %v1893_v57 = vpop.f32.mrf.mxu0  ;;  %v1906_v58 = vpop.f32.mrf.mxu1  ;;  %v2214_v6 = vpack.c.bf16 %v2094_v2, %v2094_v2  ;;  %v4445_v42 = vld [vmem:[#allocation11 + $0x148] sm:$0xff] }
 0x17b   :  { %2587 = vmatpush.bf16.msrb.mxu2 %v4424_v24  ;;  %v1869_v61 = vpop.f32.mrf.mxu2  ;;  %v1882_v41 = vpop.f32.mrf.mxu3  ;;  %v1894_v11 = vadd.f32 %v1893_v57, %v565_v8  ;;  %v4444_v24 = vld [vmem:[#allocation11 + $0x140] sm:$0xff]  ;;  %v4455_v57 = vld [vmem:[#allocation11 + $0x198] sm:$0xff] }
 0x17c   :  { %2600 = vmatpush.bf16.msrb.mxu3 %v4432_v45  ;;  %v4453_v41 = vld [vmem:[#allocation11 + $0x188] sm:$0xff] }
 0x17d   :  { %2566 = vmatmul.bf16.vlgmr.msrb.gmra.mxu0 %v2212_v36  ;;  %2579 = vmatmul.bf16.vlgmr.msrb.gmra.mxu1 %v2213_v47  ;;  %v1907_v16 = vadd.f32 %v1906_v58, %v1894_v11  ;;  %v567_v58 = vperm.slane %v4937_v51, 5  ;;  %v568_v11 = vperm.slane %v4937_v51, 6 }
 0x17e   :  { %2610 = vmatpush.bf16.msra.mxu0 %v4443_v59  ;;  %2623 = vmatpush.bf16.msra.mxu1 %v4451_v13  ;;  %v4454_v59 = vld [vmem:[#allocation11 + $0x190] sm:$0xff] }
 0x17f   :  { %2588 = vmatpush.bf16.msrb.mxu2 %v4423_v48 }
 0x180   :  { %2601 = vmatpush.bf16.msrb.mxu3 %v4431_v52  ;;  %v4458_v52 = vld [vmem:[#allocation11 + $0x1b0] sm:$0xff] }
 0x182   :  { %2611 = vmatpush.bf16.msra.mxu0 %v4442_v63  ;;  %v1895_v4 = vpop.f32.mrf.mxu0  ;;  %v1908_v5 = vpop.f32.mrf.mxu1  ;;  %2624 = vmatpush.bf16.msra.mxu1 %v4450_v31 }
 0x183   :  { %2589 = vmatpush.bf16.msrb.mxu2 %v4422_v54 }
 0x184   :  { %2602 = vmatpush.bf16.msrb.mxu3 %v4430_v55 }
 0x186   :  { %2612 = vmatpush.bf16.msra.mxu0 %v4441_v3  ;;  %2625 = vmatpush.bf16.msra.mxu1 %v4449_v32 }
 0x187   :  { %2590 = vmatpush.bf16.msrb.mxu2 %v4421_v60 }
 0x188   :  { %2603 = vmatpush.bf16.msrb.mxu3 %v4429_v44 }
 0x18a   :  { %2613 = vmatpush.bf16.msra.mxu0 %v4440_v7  ;;  %2626 = vmatpush.bf16.msra.mxu1 %v4448_v33 }
 0x18b   :  { %2591 = vmatpush.bf16.msrb.mxu2 %v4420_v0 }
 0x18c   :  { %2604 = vmatpush.bf16.msrb.mxu3 %v4428_v1  ;;  %v4452_v1 = vld [vmem:[#allocation11 + $0x180] sm:$0xff] }
 0x18e   :  { %2592 = vmatmul.bf16.vlgmr.msrb.gmra.mxu2 %v2214_v6  ;;  %2614 = vmatpush.bf16.msra.mxu0 %v4439_v10 }
 0x18f   :  { %2627 = vmatpush.bf16.msra.mxu1 %v4447_v35  ;;  %2636 = vmatpush.bf16.msra.mxu2 %v4459_v46  ;;  %v4460_v46 = vld [vmem:[#allocation13] sm:$0xff] }
 0x192   :  { %2615 = vmatpush.bf16.msra.mxu0 %v4438_v14  ;;  %v1932_v18 = vpop.f32.mrf.mxu3 }
 0x193   :  { %v1919_v17 = vpop.f32.mrf.mxu2  ;;  %2628 = vmatpush.bf16.msra.mxu1 %v4446_v38  ;;  %2637 = vmatpush.bf16.msra.mxu2 %v4458_v52  ;;  %v4471_v52 = vld [vmem:[#allocation14 + $0x18] sm:$0xff] }
 0x194   :  { %v1920_v21 = vadd.f32 %v1919_v17, %v1907_v16 }
 0x196   :  { %v1933_v23 = vadd.f32 %v1932_v18, %v1920_v21  ;;  %2616 = vmatpush.bf16.msra.mxu0 %v4437_v22 }
 0x197   :  { %2629 = vmatpush.bf16.msra.mxu1 %v4445_v42  ;;  %2638 = vmatpush.bf16.msra.mxu2 %v4457_v53  ;;  %v4464_v42 = vld [vmem:[#allocation13 + $0x20] sm:$0xff]  ;;  %v4470_v53 = vld [vmem:[#allocation14 + $0x10] sm:$0xff] }
 0x198   :  { %v2095_v25 = vmax.f32 %v1933_v23, 0.0  ;;  %v4500_v23 = vld [vmem:[%s4981_s6] ss:$0 sm:$0xff] }
 0x19a   :  { %v2215_v9 = vpack.c.bf16 %v2095_v25, %v2095_v25  ;;  %v1945_v27 = vpop.f32.mrf.mxu0  ;;  %v1958_v28 = vpop.f32.mrf.mxu1  ;;  %2617 = vmatpush.bf16.msra.mxu0 %v4436_v26 }
 0x19b   :  { %v1921_v29 = vpop.f32.mrf.mxu2  ;;  %v1934_v30 = vpop.f32.mrf.mxu3  ;;  %v1946_v34 = vadd.f32 %v1945_v27, %v566_v37  ;;  %2630 = vmatpush.bf16.msra.mxu1 %v4444_v24  ;;  %2639 = vmatpush.bf16.msra.mxu2 %v4456_v56 }
 0x19c   :  { %2605 = vmatmul.bf16.vlgmr.msrb.gmra.mxu3 %v2215_v9 }
 0x19d   :  { %v1959_v39 = vadd.f32 %v1958_v28, %v1946_v34  ;;  %v4467_v34 = vld [vmem:[#allocation13 + $0x38] sm:$0xff] }
 0x19e   :  { %2719 = vmatpush.bf16.msra.mxu3 %v4467_v34 }
 0x19f   :  { %2640 = vmatpush.bf16.msra.mxu2 %v4455_v57 }
 0x1a2   :  { %v1947_v19 = vpop.f32.mrf.mxu0  ;;  %v1960_v12 = vpop.f32.mrf.mxu1 }
 0x1a3   :  { %2641 = vmatpush.bf16.msra.mxu2 %v4454_v59 }
 0x1a7   :  { %2642 = vmatpush.bf16.msra.mxu2 %v4453_v41  ;;  %v4468_v41 = vld [vmem:[#allocation14] sm:$0xff] }
 0x1ab   :  { %2643 = vmatpush.bf16.msra.mxu2 %v4452_v1  ;;  %v4479_v1 = vld [vmem:[#allocation16 + $0x18] sm:$0xff] }
 0x1b2   :  { %v1984_v15 = vpop.f32.mrf.mxu3 }
 0x1b3   :  { %v1971_v40 = vpop.f32.mrf.mxu2 }
 0x1b4   :  { %v1972_v20 = vadd.f32 %v1971_v40, %v1959_v39  ;;  %v4466_v40 = vld [vmem:[#allocation13 + $0x30] sm:$0xff] }
 0x1b5   :  { %2720 = vmatpush.bf16.msra.mxu3 %v4466_v40 }
 0x1b6   :  { %v1985_v43 = vadd.f32 %v1984_v15, %v1972_v20  ;;  %v4465_v15 = vld [vmem:[#allocation13 + $0x28] sm:$0xff]  ;;  %v4463_v20 = vld [vmem:[#allocation13 + $0x18] sm:$0xff] }
 0x1b8   :  { %v2096_v45 = vmax.f32 %v1985_v43, 0.0  ;;  %v4462_v43 = vld [vmem:[#allocation13 + $0x10] sm:$0xff] }
 0x1b9   :  { %2721 = vmatpush.bf16.msra.mxu3 %v4465_v15 }
 0x1ba   :  { %v2216_v36 = vpack.c.bf16 %v2096_v45, %v2096_v45  ;;  %v1997_v47 = vpop.f32.mrf.mxu0  ;;  %v2010_v48 = vpop.f32.mrf.mxu1  ;;  %v4461_v45 = vld [vmem:[#allocation13 + $0x8] sm:$0xff] }
 0x1bb   :  { %v1973_v49 = vpop.f32.mrf.mxu2  ;;  %v1986_v50 = vpop.f32.mrf.mxu3  ;;  %v1998_v60 = vadd.f32 %v1997_v47, %v567_v58  ;;  %v4475_v47 = vld [vmem:[#allocation14 + $0x38] sm:$0xff] }
 0x1bc   :  { %2618 = vmatmul.bf16.vlgmr.msra.gmra.mxu0 %v2216_v36  ;;  %v4473_v49 = vld [vmem:[#allocation14 + $0x28] sm:$0xff]  ;;  %v4472_v50 = vld [vmem:[#allocation14 + $0x20] sm:$0xff] }
 0x1bd   :  { %v2011_v61 = vadd.f32 %v2010_v48, %v1998_v60  ;;  %2722 = vmatpush.bf16.msra.mxu3 %v4464_v42  ;;  %2802 = vmatpush.bf16.msrb.mxu0 %v4475_v47  ;;  %v4474_v48 = vld [vmem:[#allocation14 + $0x30] sm:$0xff] }
 0x1c1   :  { %2723 = vmatpush.bf16.msra.mxu3 %v4463_v20  ;;  %2803 = vmatpush.bf16.msrb.mxu0 %v4474_v48 }
 0x1c2   :  { %v1999_v54 = vpop.f32.mrf.mxu0  ;;  %v2012_v55 = vpop.f32.mrf.mxu1 }
 0x1c5   :  { %2724 = vmatpush.bf16.msra.mxu3 %v4462_v43  ;;  %2804 = vmatpush.bf16.msrb.mxu0 %v4473_v49 }
 0x1c9   :  { %2725 = vmatpush.bf16.msra.mxu3 %v4461_v45  ;;  %2805 = vmatpush.bf16.msrb.mxu0 %v4472_v50 }
 0x1cd   :  { %2726 = vmatpush.bf16.msra.mxu3 %v4460_v46  ;;  %2806 = vmatpush.bf16.msrb.mxu0 %v4471_v52 }
 0x1d1   :  { %2807 = vmatpush.bf16.msrb.mxu0 %v4470_v53 }
 0x1d2   :  { %v2036_v62 = vpop.f32.mrf.mxu3 }
 0x1d3   :  { %v2023_v44 = vpop.f32.mrf.mxu2 }
 0x1d4   :  { %v2024_v63 = vadd.f32 %v2023_v44, %v2011_v61  ;;  %v4469_v61 = vld [vmem:[#allocation14 + $0x8] sm:$0xff]  ;;  %v4483_v44 = vld [vmem:[#allocation16 + $0x38] sm:$0xff] }
 0x1d5   :  { %2808 = vmatpush.bf16.msrb.mxu0 %v4469_v61  ;;  %2885 = vmatpush.bf16.msrb.mxu1 %v4483_v44 }
 0x1d6   :  { %v2037_v0 = vadd.f32 %v2036_v62, %v2024_v63  ;;  %v4482_v62 = vld [vmem:[#allocation16 + $0x30] sm:$0xff]  ;;  %v4481_v63 = vld [vmem:[#allocation16 + $0x28] sm:$0xff] }
 0x1d8   :  { %v2097_v2 = vmax.f32 %v2037_v0, 0.0  ;;  %v4480_v0 = vld [vmem:[#allocation16 + $0x20] sm:$0xff] }
 0x1d9   :  { %2809 = vmatpush.bf16.msrb.mxu0 %v4468_v41  ;;  %2886 = vmatpush.bf16.msrb.mxu1 %v4482_v62 }
 0x1da   :  { %v2217_v3 = vpack.c.bf16 %v2097_v2, %v2097_v2  ;;  %v2049_v4 = vpop.f32.mrf.mxu0  ;;  %v2062_v5 = vpop.f32.mrf.mxu1  ;;  %v4478_v2 = vld [vmem:[#allocation16 + $0x10] sm:$0xff] }
 0x1db   :  { %v2025_v6 = vpop.f32.mrf.mxu2  ;;  %v2038_v7 = vpop.f32.mrf.mxu3  ;;  %v2050_v14 = vadd.f32 %v2049_v4, %v568_v11  ;;  %v4476_v11 = vld [vmem:[#allocation16] sm:$0xff] }
 0x1dc   :  { %2631 = vmatmul.bf16.vlgmr.msra.gmra.mxu1 %v2217_v3  ;;  %v4501_v3 = vld [vmem:[%s4983_s8] ss:$0 sm:$0xff] }
 0x1dd   :  { %v2063_v16 = vadd.f32 %v2062_v5, %v2050_v14  ;;  %2887 = vmatpush.bf16.msrb.mxu1 %v4481_v63  ;;  %v4502_v14 = vld [vmem:[%s4985_s10] ss:$0 sm:$0xff] }
 0x1e1   :  { %2888 = vmatpush.bf16.msrb.mxu1 %v4480_v0 }
 0x1e2   :  { %v2051_v8 = vpop.f32.mrf.mxu0  ;;  %v2064_v10 = vpop.f32.mrf.mxu1 }
 0x1e3   :  { %v4477_v10 = vld [vmem:[#allocation16 + $0x8] sm:$0xff] }
 0x1e5   :  { %2889 = vmatpush.bf16.msrb.mxu1 %v4479_v1 }
 0x1e9   :  { %2890 = vmatpush.bf16.msrb.mxu1 %v4478_v2 }
 0x1ed   :  { %2891 = vmatpush.bf16.msrb.mxu1 %v4477_v10 }
 0x1f1   :  { %2892 = vmatpush.bf16.msrb.mxu1 %v4476_v11 }
 0x1f2   :  { %v2088_v18 = vpop.f32.mrf.mxu3 }
 0x1f3   :  { %v2075_v17 = vpop.f32.mrf.mxu2 }
 0x1f4   :  { %v2076_v21 = vadd.f32 %v2075_v17, %v2063_v16 }
 0x1f6   :  { %v2089_v22 = vadd.f32 %v2088_v18, %v2076_v21 }
 0x1f8   :  { %v2098_v25 = vmax.f32 %v2089_v22, 0.0 }
 0x1fa   :  { %v2218_v26 = vpack.c.bf16 %v2098_v25, %v2098_v25  ;;  %v2567_v13 = vpop.f32.mrf.mxu0  ;;  %v2580_v9 = vpop.f32.mrf.mxu1 }
 0x1fb   :  { %v2568_v27 = vadd.f32 %v4500_v23, %v2567_v13  ;;  %v2077_v28 = vpop.f32.mrf.mxu2  ;;  %v2090_v29 = vpop.f32.mrf.mxu3  ;;  %v4503_v23 = vld [vmem:[%s4987_s12] ss:$0 sm:$0xff] }
 0x1fc   :  { %2644 = vmatmul.bf16.vlgmr.msra.gmra.mxu2 %v2218_v26 }
 0x1fd   :  { %v2581_v30 = vadd.f32 %v2580_v9, %v2568_v27 }
 0x202   :  { %v2569_v51 = vpop.f32.mrf.mxu0  ;;  %v2582_v31 = vpop.f32.mrf.mxu1 }
 0x211   :  { %v2593_v32 = vpop.f32.mrf.mxu2 }
 0x212   :  { %v2594_v19 = vadd.f32 %v2593_v32, %v2581_v30 }
 0x219   :  { %v2595_v12 = vpop.f32.mrf.mxu2 }
 0x21f   :  { %v2606_v33 = vpop.f32.mrf.mxu3 }
 0x220   :  { %v2607_v35 = vadd.f32 %v2606_v33, %v2594_v19 }
 0x227   :  { %v2608_v37 = vpop.f32.mrf.mxu3 }
 0x239   :  { %v2619_v38 = vpop.f32.mrf.mxu0 }
 0x23a   :  { %v2620_v54 = vadd.f32 %v2619_v38, %v2607_v35 }
 0x241   :  { %v2621_v39 = vpop.f32.mrf.mxu0 }
 0x259   :  { %v2632_v24 = vpop.f32.mrf.mxu1 }
 0x25a   :  { %v2633_v55 = vadd.f32 %v2632_v24, %v2620_v54 }
 0x261   :  { %v2634_v36 = vpop.f32.mrf.mxu1 }
 0x27f   :  { %v2645_v56 = vpop.f32.mrf.mxu2 }
 0x280   :  { %v2646_v57 = vadd.f32 %v2645_v56, %v2633_v55 }
 0x282   :  { %v2649_v58 = vmax.f32 %v2646_v57, 0.0 }
 0x284   :  { %v2667_v59 = vpack.c.bf16 %v2649_v58, %v2649_v58 }
 0x286   :  { %2727 = vmatmul.bf16.vlgmr.msra.gmra.mxu3 %v2667_v59 }
 0x287   :  { %v2647_v60 = vpop.f32.mrf.mxu2 }
 0x309   :  { %v2728_v4 = vpop.f32.mrf.mxu3 }
 0x30a   :  { %v2729_v5 = vadd.f32 %v4501_v3, %v2728_v4 }
 0x30c   :  { %v2732_v6 = vmax.f32 %v2729_v5, 0.0 }
 0x30e   :  { %v2750_v7 = vpack.c.bf16 %v2732_v6, %v2732_v6 }
 0x310   :  { %2810 = vmatmul.bf16.vlgmr.msrb.gmra.mxu0 %v2750_v7 }
 0x311   :  { %v2730_v8 = vpop.f32.mrf.mxu3 }
 0x38d   :  { %v2811_v16 = vpop.f32.mrf.mxu0 }
 0x38e   :  { %v2812_v17 = vadd.f32 %v4502_v14, %v2811_v16 }
 0x390   :  { %v2815_v18 = vmax.f32 %v2812_v17, 0.0 }
 0x392   :  { %v2833_v21 = vpack.c.bf16 %v2815_v18, %v2815_v18 }
 0x394   :  { %2893 = vmatmul.bf16.vlgmr.msrb.gmra.mxu1 %v2833_v21 }
 0x395   :  { %v2813_v22 = vpop.f32.mrf.mxu0 }
 0x411   :  { %v2894_v25 = vpop.f32.mrf.mxu1 }
 0x412   :  { %v2895_v26 = vadd.f32 %v4503_v23, %v2894_v25 }
 0x414   :  { %2898 = vst [vmem:[#allocation17] sm:$0xff] %v2895_v26 }
 0x415   :  { %2909 = dma.vmem_to_hbm [thread:$0]  %s2905_s19, 128, %s2907_s1, [#allocation4]  }
 0x419   :  { %v2896_v13 = vpop.f32.mrf.mxu1 }
 0x41a   :  { %4754 = dma.done.wait [#allocation4], 128  }
 0x41b   :  { %4755 = vsyncadd [#allocation4], 4294967168 }
 0x41c   :  { %2914 = vsyncpa [#allocation3], 1 }
 0x41d   :  { %2915 = vsyncpa [#allocation6], 1 }
 0x41e   :  { %2916 = vsyncpa [#allocation9], 1 }
 0x41f   :  { %2917 = vsyncpa [#allocation12], 1 }
 0x420   :  { %2918 = vsyncpa [#allocation15], 1 }
 0x421   :  { %2919 = vsyncpa [#allocation4], 1 }

// kernel: tpu_custom_call.1
= control target key start
LH: loop header
LB: loop body
LE: loop exit
PB: predicated region body
PF: predicated region fallthrough
CT: control target
= control target key end

     0   :  { %18 = vsyncpa [#allocation3], 0  ;;  %s4975_s0 = inlined_call_operand.hbm [shape: f32[8,32], index: 0, kind: input, shape index: {}]   ;;  %s4976_s1 = inlined_call_operand.hbm [shape: bf16[32,512], index: 1, kind: input, shape index: {}]   ;;  %s4977_s2 = inlined_call_operand.hbm [shape: f32[1,512], index: 2, kind: input, shape index: {}]   ;;  %s4978_s3 = inlined_call_operand.hbm [shape: bf16[512,896], index: 3, kind: input, shape index: {}]   ;;  %s4979_s4 = inlined_call_operand.hbm [shape: f32[1,896], index: 4, kind: input, shape index: {}]   ;;  %s4980_s5 = inlined_call_operand.hbm [shape: bf16[896,128], index: 5, kind: input, shape index: {}]   ;;  %s4981_s6 = inlined_call_operand.vmem [shape: f32[1,128], index: 6, kind: input, shape index: {}]   ;;  %s4982_s7 = inlined_call_operand.hbm [shape: bf16[128,128], index: 7, kind: input, shape index: {}]   ;;  %s4983_s8 = inlined_call_operand.vmem [shape: f32[1,128], index: 8, kind: input, shape index: {}]   ;;  %s4984_s9 = inlined_call_operand.hbm [shape: bf16[128,128], index: 9, kind: input, shape index: {}]   ;;  %s4985_s10 = inlined_call_operand.vmem [shape: f32[1,128], index: 10, kind: input, shape index: {}]   ;;  %s4986_s11 = inlined_call_operand.hbm [shape: bf16[128,128], index: 11, kind: input, shape index: {}]   ;;  %s4987_s12 = inlined_call_operand.vmem [shape: f32[1,128], index: 12, kind: input, shape index: {}]   ;;  %s4988_s13 = inlined_call_operand.hbm [shape: f32[8,128], index: 13, kind: output, shape index: {}]  }
   0x1   :  { %19 = vsyncpa [#allocation6], 0 }
   0x2   :  { %20 = vsyncpa [#allocation9], 0 }
   0x3   :  { %21 = vsyncpa [#allocation12], 0 }
   0x4   :  { %22 = vsyncpa [#allocation15], 0  ;;  %s39_s27 = sshll.u32 %s4976_s1, 4  ;;  %s40_s27 = int_to_ptr.hbm [resolvable:$true] %s39_s27 }
   0x5   :  { %23 = vsyncpa [#allocation4], 0  ;;  %s4756_s28 = smov [#allocation5]   ;;  %s63_s15 = sshll.u32 %s4978_s3, 4  ;;  %s64_s15 = int_to_ptr.hbm [resolvable:$true] %s63_s15 }
   0x6   :  { %s41_s29 = sshll.u32 %s4756_s28, 4  ;;  %s4757_s16 = smov 256   ;;  %s42_s29 = int_to_ptr.vmem [resolvable:$true] %s41_s29 }
   0x7   :  { %s4758_s17 = smov 16   ;;  %s4759_s18 = smov [#allocation8]  }
   0x8   :  { %47 = dma.hbm_to_vmem [thread:$0]  %s40_s27, 1024, %s42_s29, [#allocation6], %s4757_s16, %s4757_s16, %s4758_s17  }
   0x9   :  { %s65_s19 = sshll.u32 %s4759_s18, 4  ;;  %s4760_s20 = smov 448   ;;  %s66_s19 = int_to_ptr.vmem [resolvable:$true] %s65_s19 }
   0xa   :  { %s4761_s21 = smov 28   ;;  %s87_s23 = sshll.u32 %s4980_s5, 4  ;;  %s88_s23 = int_to_ptr.hbm [resolvable:$true] %s87_s23 }
   0xb   :  { %71 = dma.hbm_to_vmem [thread:$0]  %s64_s15, 28672, %s66_s19, [#allocation9], %s4760_s20, %s4760_s20, %s4761_s21  }
   0xc   :  { %s4762_s24 = smov [#allocation11]   ;;  %s117_s28 = sshll.u32 %s4984_s9, 4  ;;  %s118_s28 = int_to_ptr.hbm [resolvable:$true] %s117_s28 }
   0xd   :  { %s89_s25 = sshll.u32 %s4762_s24, 4  ;;  %s4763_s27 = smov 64   ;;  %s90_s25 = int_to_ptr.vmem [resolvable:$true] %s89_s25 }
   0xe   :  { %s4764_s29 = smov 4   ;;  %s4765_s30 = smov [#allocation14]  }
   0xf   :  { %95 = dma.hbm_to_vmem [thread:$0]  %s88_s23, 7168, %s90_s25, [#allocation12], %s4763_s27, %s4763_s27, %s4764_s29  }
  0x10   :  { %s119_s14 = sshll.u32 %s4765_s30, 4  ;;  %s29_s5 = sshll.u32 %s4975_s0, 4  ;;  %s120_s14 = int_to_ptr.vmem [resolvable:$true] %s119_s14  ;;  %s30_s5 = int_to_ptr.hbm [resolvable:$true] %s29_s5 }
  0x11   :  { %125 = dma.hbm_to_vmem [thread:$0]  %s118_s28, 1024, %s120_s14, [#allocation15], %s4763_s27, %s4763_s27, %s4764_s29  }
  0x12   :  { %s53_s18 = sshll.u32 %s4977_s2, 4  ;;  %s4766_s19 = smov [#allocation2]   ;;  %s54_s18 = int_to_ptr.hbm [resolvable:$true] %s53_s18 }
  0x13   :  { %s31_s20 = sshll.u32 %s4766_s19, 4  ;;  %s4767_s21 = smov [#allocation7]   ;;  %s32_s20 = int_to_ptr.vmem [resolvable:$true] %s31_s20 }
  0x14   :  { %34 = dma.hbm_to_vmem [thread:$0]  %s30_s5, 128, %s32_s20, [#allocation3]  }
  0x15   :  { %s55_s1 = sshll.u32 %s4767_s21, 4  ;;  %s77_s0 = sshll.u32 %s4979_s4, 4  ;;  %s56_s1 = int_to_ptr.vmem [resolvable:$true] %s55_s1  ;;  %s78_s0 = int_to_ptr.hbm [resolvable:$true] %s77_s0 }
  0x16   :  { %58 = dma.hbm_to_vmem [thread:$0]  %s54_s18, 64, %s56_s1, [#allocation6]  }
  0x17   :  { %s102_s26 = sshll.u32 %s4982_s7, 4  ;;  %s4768_s3 = smov [#allocation10]   ;;  %s103_s26 = int_to_ptr.hbm [resolvable:$true] %s102_s26 }
  0x18   :  { %s79_s2 = sshll.u32 %s4768_s3, 4  ;;  %s4769_s28 = smov [#allocation13]   ;;  %s80_s2 = int_to_ptr.vmem [resolvable:$true] %s79_s2 }
  0x19   :  { %82 = dma.hbm_to_vmem [thread:$0]  %s78_s0, 112, %s80_s2, [#allocation9]  }
  0x1a   :  { %s104_s30 = sshll.u32 %s4769_s28, 4  ;;  %s132_s16 = sshll.u32 %s4986_s11, 4  ;;  %s105_s30 = int_to_ptr.vmem [resolvable:$true] %s104_s30  ;;  %s133_s16 = int_to_ptr.hbm [resolvable:$true] %s132_s16 }
  0x1b   :  { %110 = dma.hbm_to_vmem [thread:$0]  %s103_s26, 1024, %s105_s30, [#allocation12], %s4763_s27, %s4763_s27, %s4764_s29  }
  0x1c   :  { %s4770_s4 = smov [#allocation16]  }
  0x1d   :  { %s134_s5 = sshll.u32 %s4770_s4, 4  ;;  %s135_s5 = int_to_ptr.vmem [resolvable:$true] %s134_s5 }
  0x1e   :  { %140 = dma.hbm_to_vmem [thread:$0]  %s133_s16, 1024, %s135_s5, [#allocation15], %s4763_s27, %s4763_s27, %s4764_s29  }
  0x1f   :  { %4744 = dma.done.wait [#allocation3], 128  }
  0x20   :  { %4745 = vsyncadd [#allocation3], 4294967168 }
  0x21   :  { %4746 = dma.done.wait [#allocation6], 1088  }
  0x22   :  { %4747 = vsyncadd [#allocation6], 4294966208 }
  0x23   :  { %4748 = dma.done.wait [#allocation9], 28784  }
  0x24   :  { %4749 = vsyncadd [#allocation9], 4294938512 }
  0x25   :  { %4750 = dma.done.wait [#allocation12], 8192  }
  0x26   :  { %4751 = vsyncadd [#allocation12], 4294959104 }
  0x27   :  { %4752 = dma.done.wait [#allocation15], 2048  }
  0x28   :  { %4753 = vsyncadd [#allocation15], 4294965248  ;;  %v2938_v0 = vld [vmem:[#allocation5 + $0x20] sm:$0xf]  ;;  %v4178_v1 = vld [vmem:[#allocation5 + $0x2c] sm:$0xf0] }
  0x29   :  { %v4176_v2 = vld [vmem:[#allocation5 + $0x24] sm:$0xf]  ;;  %v2939_v3 = vor.u32 %v4178_v1, %v2938_v0  ;;  %v2940_v4 = vld [vmem:[#allocation5 + $0x30] sm:$0xf0]  ;;  %v2922_v5 = vld [vmem:[#allocation5] sm:$0xf] }
  0x2a   :  { %v4174_v6 = vld [vmem:[#allocation5 + $0xc] sm:$0xf0]  ;;  %v2943_v7 = vor.u32 %v4176_v2, %v2940_v4  ;;  %v4172_v8 = vld [vmem:[#allocation5 + $0x4] sm:$0xf]  ;;  %v2924_v9 = vld [vmem:[#allocation5 + $0x10] sm:$0xf0] }
  0x2b   :  { %v180_v10 = vld [vmem:[#allocation2] sm:$0xff]  ;;  %vm240_vm0 = vcmask 261120   ;;  %250 = vmatpush.bf16.msra.mxu2 %v2939_v3  ;;  %v2923_v11 = vor.u32 %v4174_v6, %v2922_v5  ;;  %v2946_v12 = vld [vmem:[#allocation5 + $0x28] sm:$0xf]  ;;  %v4177_v14 = vld [vmem:[#allocation5 + $0x2c] sm:$0xf]  ;;  %v2927_v15 = vor.u32 %v4172_v8, %v2924_v9 }
  0x2c   :  { %v4179_v13 = vld [vmem:[#allocation5 + $0x34] sm:$0xf0]  ;;  %263 = vmatpush.bf16.msra.mxu3 %v2943_v7  ;;  %v2948_v17 = vld [vmem:[#allocation5 + $0x38] sm:$0xf0]  ;;  %v2930_v18 = vld [vmem:[#allocation5 + $0x8] sm:$0xf]  ;;  %v4881_v24 = vpack.c.bf16 %v180_v10, %v180_v10 }
  0x2d   :  { %v2947_v16 = vor.u32 %v4179_v13, %v2946_v12  ;;  %v4175_v19 = vld [vmem:[#allocation5 + $0x14] sm:$0xf0]  ;;  %v2951_v20 = vor.u32 %v4177_v14, %v2948_v17  ;;  %v4173_v21 = vld [vmem:[#allocation5 + $0xc] sm:$0xf]  ;;  %v2932_v22 = vld [vmem:[#allocation5 + $0x18] sm:$0xf0] }
  0x2e   :  { %v3154_v23 = vld [vmem:[#allocation8 + $0x188] sm:$0xf]  ;;  %v4232_v25 = vld [vmem:[#allocation8 + $0x1a0] sm:$0xf0]  ;;  %v3126_v30 = vld [vmem:[#allocation8 + $0x150] sm:$0xf]  ;;  %v2931_v33 = vor.u32 %v4175_v19, %v2930_v18  ;;  %v2935_v35 = vor.u32 %v4173_v21, %v2932_v22 }
  0x2f   :  { %v3378_v26 = vld [vmem:[#allocation8 + $0x348] sm:$0xf]  ;;  %v4288_v27 = vld [vmem:[#allocation8 + $0x360] sm:$0xf0]  ;;  %251 = vmatpush.bf16.msra.mxu2 %v2923_v11  ;;  %v3155_v28 = vor.u32 %v4232_v25, %v3154_v23  ;;  %v4225_v31 = vld [vmem:[#allocation8 + $0x168] sm:$0xf0] }
  0x30   :  { %v3379_v29 = vor.u32 %v4288_v27, %v3378_v26  ;;  %v3350_v32 = vld [vmem:[#allocation8 + $0x310] sm:$0xf]  ;;  %264 = vmatpush.bf16.msra.mxu3 %v2927_v15  ;;  %v4281_v34 = vld [vmem:[#allocation8 + $0x328] sm:$0xf0]  ;;  %v3127_v36 = vor.u32 %v4225_v31, %v3126_v30  ;;  %v3098_v38 = vld [vmem:[#allocation8 + $0x118] sm:$0xf] }
  0x31   :  { %1728 = vmatpush.bf16.msra.mxu0 %v3155_v28  ;;  %v3351_v37 = vor.u32 %v4281_v34, %v3350_v32  ;;  %v4218_v39 = vld [vmem:[#allocation8 + $0x130] sm:$0xf0]  ;;  %v3322_v40 = vld [vmem:[#allocation8 + $0x2d8] sm:$0xf]  ;;  %v3602_v42 = vld [vmem:[#allocation8 + $0x508] sm:$0xf] }
  0x32   :  { %2952 = vmatmul.msk.bf16.vlgmr.msra.gmra.mxu2 %vm240_vm0, %v4881_v24  ;;  %1741 = vmatpush.bf16.msra.mxu1 %v3379_v29  ;;  %v4274_v41 = vld [vmem:[#allocation8 + $0x2f0] sm:$0xf0]  ;;  %v4344_v43 = vld [vmem:[#allocation8 + $0x520] sm:$0xf0]  ;;  %v3099_v44 = vor.u32 %v4218_v39, %v3098_v38  ;;  %v3070_v45 = vld [vmem:[#allocation8 + $0xe0] sm:$0xf] }
  0x33   :  { %276 = vmatpush.bf16.msrb.mxu2 %v2947_v16  ;;  %2953 = vmatmul.msk.bf16.vlgmr.msra.gmra.mxu3 %vm240_vm0, %v4881_v24  ;;  %v3603_v46 = vor.u32 %v4344_v43, %v3602_v42  ;;  %v3826_v47 = vld [vmem:[#allocation8 + $0x6c8] sm:$0xf]  ;;  %v4400_v48 = vld [vmem:[#allocation8 + $0x6e0] sm:$0xf0]  ;;  %v3323_v49 = vor.u32 %v4274_v41, %v3322_v40  ;;  %v4211_v50 = vld [vmem:[#allocation8 + $0xf8] sm:$0xf0] }
  0x34   :  { %289 = vmatpush.bf16.msrb.mxu3 %v2951_v20  ;;  %v3294_v51 = vld [vmem:[#allocation8 + $0x2a0] sm:$0xf]  ;;  %v4267_v52 = vld [vmem:[#allocation8 + $0x2b8] sm:$0xf0]  ;;  %v3827_v53 = vor.u32 %v4400_v48, %v3826_v47  ;;  %v3574_v54 = vld [vmem:[#allocation8 + $0x4d0] sm:$0xf]  ;;  %v3071_v59 = vor.u32 %v4211_v50, %v3070_v45 }
  0x35   :  { %1729 = vmatpush.bf16.msra.mxu0 %v3127_v36  ;;  %v4337_v55 = vld [vmem:[#allocation8 + $0x4e8] sm:$0xf0]  ;;  %v3798_v56 = vld [vmem:[#allocation8 + $0x690] sm:$0xf]  ;;  %v3042_v60 = vld [vmem:[#allocation8 + $0xa8] sm:$0xf]  ;;  %v3295_v0 = vor.u32 %v4267_v52, %v3294_v51 }
  0x36   :  { %1742 = vmatpush.bf16.msra.mxu1 %v3351_v37  ;;  %v3575_v57 = vor.u32 %v4337_v55, %v3574_v54  ;;  %v4393_v58 = vld [vmem:[#allocation8 + $0x6a8] sm:$0xf0]  ;;  %v4204_v61 = vld [vmem:[#allocation8 + $0xc0] sm:$0xf0]  ;;  %v3546_v63 = vld [vmem:[#allocation8 + $0x498] sm:$0xf] }
  0x37   :  { %277 = vmatpush.bf16.msrb.mxu2 %v2931_v33  ;;  %v3799_v62 = vor.u32 %v4393_v58, %v3798_v56  ;;  %v4330_v1 = vld [vmem:[#allocation8 + $0x4b0] sm:$0xf0]  ;;  %v3770_v2 = vld [vmem:[#allocation8 + $0x658] sm:$0xf]  ;;  %v3266_v4 = vld [vmem:[#allocation8 + $0x268] sm:$0xf]  ;;  %v3043_v10 = vor.u32 %v4204_v61, %v3042_v60 }
  0x38   :  { %290 = vmatpush.bf16.msrb.mxu3 %v2935_v35  ;;  %v4386_v3 = vld [vmem:[#allocation8 + $0x670] sm:$0xf0]  ;;  %v4260_v5 = vld [vmem:[#allocation8 + $0x280] sm:$0xf0]  ;;  %v3547_v6 = vor.u32 %v4330_v1, %v3546_v63  ;;  %v3518_v8 = vld [vmem:[#allocation8 + $0x460] sm:$0xf] }
  0x39   :  { %1730 = vmatpush.bf16.msra.mxu0 %v3099_v44  ;;  %v3771_v7 = vor.u32 %v4386_v3, %v3770_v2  ;;  %v4323_v9 = vld [vmem:[#allocation8 + $0x478] sm:$0xf0]  ;;  %v3742_v11 = vld [vmem:[#allocation8 + $0x620] sm:$0xf]  ;;  %v3267_v13 = vor.u32 %v4260_v5, %v3266_v4  ;;  %v3014_v14 = vld [vmem:[#allocation8 + $0x70] sm:$0xf] }
  0x3a   :  { %1743 = vmatpush.bf16.msra.mxu1 %v3323_v49  ;;  %v4379_v12 = vld [vmem:[#allocation8 + $0x638] sm:$0xf0]  ;;  %v4197_v15 = vld [vmem:[#allocation8 + $0x88] sm:$0xf0]  ;;  %v3238_v16 = vld [vmem:[#allocation8 + $0x230] sm:$0xf]  ;;  %v3519_v18 = vor.u32 %v4323_v9, %v3518_v8 }
  0x3b   :  { %1754 = vmatpush.bf16.msra.mxu2 %v3603_v46  ;;  %v4253_v17 = vld [vmem:[#allocation8 + $0x248] sm:$0xf0]  ;;  %v3743_v19 = vor.u32 %v4379_v12, %v3742_v11  ;;  %v3490_v20 = vld [vmem:[#allocation8 + $0x428] sm:$0xf]  ;;  %v4316_v21 = vld [vmem:[#allocation8 + $0x440] sm:$0xf0]  ;;  %v3015_v22 = vor.u32 %v4197_v15, %v3014_v14 }
  0x3c   :  { %1767 = vmatpush.bf16.msra.mxu3 %v3827_v53  ;;  %v3714_v23 = vld [vmem:[#allocation8 + $0x5e8] sm:$0xf]  ;;  %v4372_v25 = vld [vmem:[#allocation8 + $0x600] sm:$0xf0]  ;;  %v3239_v26 = vor.u32 %v4253_v17, %v3238_v16  ;;  %v2986_v27 = vld [vmem:[#allocation8 + $0x38] sm:$0xf]  ;;  %v3491_v31 = vor.u32 %v4316_v21, %v3490_v20 }
  0x3d   :  { %1731 = vmatpush.bf16.msra.mxu0 %v3071_v59  ;;  %v4190_v28 = vld [vmem:[#allocation8 + $0x50] sm:$0xf0]  ;;  %v3210_v29 = vld [vmem:[#allocation8 + $0x1f8] sm:$0xf]  ;;  %v3715_v32 = vor.u32 %v4372_v25, %v3714_v23  ;;  %v3462_v33 = vld [vmem:[#allocation8 + $0x3f0] sm:$0xf] }
  0x3e   :  { %1744 = vmatpush.bf16.msra.mxu1 %v3295_v0  ;;  %v4246_v30 = vld [vmem:[#allocation8 + $0x210] sm:$0xf0]  ;;  %v4309_v34 = vld [vmem:[#allocation8 + $0x408] sm:$0xf0]  ;;  %v2987_v35 = vor.u32 %v4190_v28, %v2986_v27  ;;  %v2958_v36 = vld [vmem:[#allocation8] sm:$0xf] }
  0x3f   :  { %1755 = vmatpush.bf16.msra.mxu2 %v3575_v57  ;;  %v3686_v37 = vld [vmem:[#allocation8 + $0x5b0] sm:$0xf]  ;;  %v4365_v38 = vld [vmem:[#allocation8 + $0x5c8] sm:$0xf0]  ;;  %v3211_v39 = vor.u32 %v4246_v30, %v3210_v29  ;;  %v4183_v40 = vld [vmem:[#allocation8 + $0x18] sm:$0xf0]  ;;  %v3463_v45 = vor.u32 %v4309_v34, %v3462_v33 }
  0x40   :  { %1768 = vmatpush.bf16.msra.mxu3 %v3799_v62  ;;  %v3182_v41 = vld [vmem:[#allocation8 + $0x1c0] sm:$0xf]  ;;  %v4239_v42 = vld [vmem:[#allocation8 + $0x1d8] sm:$0xf0]  ;;  %v4229_v43 = vld [vmem:[#allocation8 + $0x18c] sm:$0xf]  ;;  %v3687_v47 = vor.u32 %v4365_v38, %v3686_v37  ;;  %v2959_v50 = vor.u32 %v4183_v40, %v2958_v36 }
  0x41   :  { %1732 = vmatpush.bf16.msra.mxu0 %v3043_v10  ;;  %v4285_v44 = vld [vmem:[#allocation8 + $0x34c] sm:$0xf]  ;;  %v3380_v46 = vld [vmem:[#allocation8 + $0x364] sm:$0xf0]  ;;  %v3434_v48 = vld [vmem:[#allocation8 + $0x3b8] sm:$0xf]  ;;  %v3183_v53 = vor.u32 %v4239_v42, %v3182_v41 }
  0x42   :  { %2954 = vmatmul.msk.bf16.vlgmr.msrb.gmra.mxu2 %vm240_vm0, %v4881_v24  ;;  %1745 = vmatpush.bf16.msra.mxu1 %v3267_v13  ;;  %v4302_v49 = vld [vmem:[#allocation8 + $0x3d0] sm:$0xf0]  ;;  %v3658_v51 = vld [vmem:[#allocation8 + $0x578] sm:$0xf]  ;;  %v3128_v56 = vld [vmem:[#allocation8 + $0x16c] sm:$0xf0]  ;;  %v3383_v57 = vor.u32 %v4285_v44, %v3380_v46 }
  0x43   :  { %1756 = vmatpush.bf16.msra.mxu2 %v3547_v6  ;;  %2955 = vmatmul.msk.bf16.vlgmr.msrb.gmra.mxu3 %vm240_vm0, %v4881_v24  ;;  %v3156_v24 = vld [vmem:[#allocation8 + $0x1a4] sm:$0xf0]  ;;  %v4358_v52 = vld [vmem:[#allocation8 + $0x590] sm:$0xf0]  ;;  %v3352_v59 = vld [vmem:[#allocation8 + $0x32c] sm:$0xf0]  ;;  %v3435_v60 = vor.u32 %v4302_v49, %v3434_v48 }
  0x44   :  { %1769 = vmatpush.bf16.msra.mxu3 %v3771_v7  ;;  %v3159_v54 = vor.u32 %v4229_v43, %v3156_v24  ;;  %v4222_v55 = vld [vmem:[#allocation8 + $0x154] sm:$0xf]  ;;  %v3406_v61 = vld [vmem:[#allocation8 + $0x380] sm:$0xf]  ;;  %v3659_v62 = vor.u32 %v4358_v52, %v3658_v51  ;;  %v4295_v63 = vld [vmem:[#allocation8 + $0x398] sm:$0xf0] }
  0x45   :  { %1733 = vmatpush.bf16.msra.mxu0 %v3015_v22  ;;  %v4278_v58 = vld [vmem:[#allocation8 + $0x314] sm:$0xf]  ;;  %v3630_v0 = vld [vmem:[#allocation8 + $0x540] sm:$0xf]  ;;  %v4351_v1 = vld [vmem:[#allocation8 + $0x558] sm:$0xf0]  ;;  %v3131_v6 = vor.u32 %v4222_v55, %v3128_v56  ;;  %v3407_v10 = vor.u32 %v4295_v63, %v3406_v61 }
  0x46   :  { %1746 = vmatpush.bf16.msra.mxu1 %v3239_v26  ;;  %v4215_v2 = vld [vmem:[#allocation8 + $0x11c] sm:$0xf]  ;;  %v4341_v3 = vld [vmem:[#allocation8 + $0x50c] sm:$0xf]  ;;  %v3604_v4 = vld [vmem:[#allocation8 + $0x524] sm:$0xf0]  ;;  %v3355_v8 = vor.u32 %v4278_v58, %v3352_v59  ;;  %v3631_v13 = vor.u32 %v4351_v1, %v3630_v0 }
  0x47   :  { %1757 = vmatpush.bf16.msra.mxu2 %v3519_v18  ;;  %v4397_v5 = vld [vmem:[#allocation8 + $0x6cc] sm:$0xf]  ;;  %v3828_v7 = vld [vmem:[#allocation8 + $0x6e4] sm:$0xf0]  ;;  %v3100_v9 = vld [vmem:[#allocation8 + $0x134] sm:$0xf0]  ;;  %v3607_v14 = vor.u32 %v4341_v3, %v3604_v4 }
  0x48   :  { %1770 = vmatpush.bf16.msra.mxu3 %v3743_v19  ;;  %v4271_v11 = vld [vmem:[#allocation8 + $0x2dc] sm:$0xf]  ;;  %v3324_v12 = vld [vmem:[#allocation8 + $0x2f4] sm:$0xf0]  ;;  %v3831_v15 = vor.u32 %v4397_v5, %v3828_v7  ;;  %v4334_v16 = vld [vmem:[#allocation8 + $0x4d4] sm:$0xf]  ;;  %v3103_v18 = vor.u32 %v4215_v2, %v3100_v9 }
  0x49   :  { %1734 = vmatpush.bf16.msra.mxu0 %v2987_v35  ;;  %v3576_v17 = vld [vmem:[#allocation8 + $0x4ec] sm:$0xf0]  ;;  %v4390_v19 = vld [vmem:[#allocation8 + $0x694] sm:$0xf]  ;;  %v3327_v21 = vor.u32 %v4271_v11, %v3324_v12  ;;  %v4208_v22 = vld [vmem:[#allocation8 + $0xe4] sm:$0xf] }
  0x4a   :  { %1747 = vmatpush.bf16.msra.mxu1 %v3211_v39  ;;  %v3800_v20 = vld [vmem:[#allocation8 + $0x6ac] sm:$0xf0]  ;;  %v3072_v23 = vld [vmem:[#allocation8 + $0xfc] sm:$0xf0]  ;;  %v4264_v25 = vld [vmem:[#allocation8 + $0x2a4] sm:$0xf]  ;;  %v3579_v27 = vor.u32 %v4334_v16, %v3576_v17 }
  0x4b   :  { %1758 = vmatpush.bf16.msra.mxu2 %v3491_v31  ;;  %v3296_v26 = vld [vmem:[#allocation8 + $0x2bc] sm:$0xf0]  ;;  %v3803_v28 = vor.u32 %v4390_v19, %v3800_v20  ;;  %v3075_v29 = vor.u32 %v4208_v22, %v3072_v23  ;;  %v4201_v31 = vld [vmem:[#allocation8 + $0xac] sm:$0xf]  ;;  %v3268_v34 = vld [vmem:[#allocation8 + $0x284] sm:$0xf0] }
  0x4c   :  { %1771 = vmatpush.bf16.msra.mxu3 %v3715_v32  ;;  %v3299_v30 = vor.u32 %v4264_v25, %v3296_v26  ;;  %v3044_v32 = vld [vmem:[#allocation8 + $0xc4] sm:$0xf0]  ;;  %v4257_v33 = vld [vmem:[#allocation8 + $0x26c] sm:$0xf]  ;;  %v4194_v37 = vld [vmem:[#allocation8 + $0x74] sm:$0xf] }
  0x4d   :  { %1735 = vmatpush.bf16.msra.mxu0 %v2959_v50  ;;  %v3047_v35 = vor.u32 %v4201_v31, %v3044_v32  ;;  %v3271_v36 = vor.u32 %v4257_v33, %v3268_v34  ;;  %v3016_v38 = vld [vmem:[#allocation8 + $0x8c] sm:$0xf0]  ;;  %v4250_v39 = vld [vmem:[#allocation8 + $0x234] sm:$0xf]  ;;  %v4187_v43 = vld [vmem:[#allocation8 + $0x3c] sm:$0xf] }
  0x4e   :  { %1748 = vmatpush.bf16.msra.mxu1 %v3183_v53  ;;  %v3240_v40 = vld [vmem:[#allocation8 + $0x24c] sm:$0xf0]  ;;  %v3019_v41 = vor.u32 %v4194_v37, %v3016_v38  ;;  %v2988_v24 = vld [vmem:[#allocation8 + $0x54] sm:$0xf0]  ;;  %v4383_v50 = vld [vmem:[#allocation8 + $0x65c] sm:$0xf] }
  0x4f   :  { %1759 = vmatpush.bf16.msra.mxu2 %v3463_v45  ;;  %v3243_v42 = vor.u32 %v4250_v39, %v3240_v40  ;;  %v2991_v44 = vor.u32 %v4187_v43, %v2988_v24  ;;  %v4243_v45 = vld [vmem:[#allocation8 + $0x1fc] sm:$0xf]  ;;  %v3212_v46 = vld [vmem:[#allocation8 + $0x214] sm:$0xf0]  ;;  %v2960_v55 = vld [vmem:[#allocation8 + $0x1c] sm:$0xf0] }
  0x50   :  { %1772 = vmatpush.bf16.msra.mxu3 %v3687_v47  ;;  %v4327_v47 = vld [vmem:[#allocation8 + $0x49c] sm:$0xf]  ;;  %v3215_v48 = vor.u32 %v4243_v45, %v3212_v46  ;;  %v3548_v49 = vld [vmem:[#allocation8 + $0x4b4] sm:$0xf0]  ;;  %v4236_v56 = vld [vmem:[#allocation8 + $0x1c4] sm:$0xf] }
  0x51   :  { %1780 = vmatpush.bf16.msrb.mxu0 %v3159_v54  ;;  %v3772_v51 = vld [vmem:[#allocation8 + $0x674] sm:$0xf0]  ;;  %v3551_v52 = vor.u32 %v4327_v47, %v3548_v49  ;;  %v4180_v54 = vld [vmem:[#allocation8 + $0x4] sm:$0xf]  ;;  %v3184_v58 = vld [vmem:[#allocation8 + $0x1dc] sm:$0xf0] }
  0x52   :  { %1793 = vmatpush.bf16.msrb.mxu1 %v3383_v57  ;;  %v3775_v53 = vor.u32 %v4383_v50, %v3772_v51  ;;  %v2963_v57 = vor.u32 %v4180_v54, %v2960_v55  ;;  %v4320_v59 = vld [vmem:[#allocation8 + $0x464] sm:$0xf]  ;;  %v3187_v61 = vor.u32 %v4236_v56, %v3184_v58  ;;  %v3744_v0 = vld [vmem:[#allocation8 + $0x63c] sm:$0xf0]  ;;  %v4313_v2 = vld [vmem:[#allocation8 + $0x42c] sm:$0xf] }
  0x53   :  { %1760 = vmatpush.bf16.msra.mxu2 %v3435_v60  ;;  %v3520_v60 = vld [vmem:[#allocation8 + $0x47c] sm:$0xf0]  ;;  %v4376_v63 = vld [vmem:[#allocation8 + $0x624] sm:$0xf]  ;;  %v3492_v3 = vld [vmem:[#allocation8 + $0x444] sm:$0xf0] }
  0x54   :  { %1773 = vmatpush.bf16.msra.mxu3 %v3659_v62  ;;  %v3523_v62 = vor.u32 %v4320_v59, %v3520_v60  ;;  %v3747_v1 = vor.u32 %v4376_v63, %v3744_v0  ;;  %v4369_v4 = vld [vmem:[#allocation8 + $0x5ec] sm:$0xf]  ;;  %v3495_v5 = vor.u32 %v4313_v2, %v3492_v3  ;;  %v3464_v9 = vld [vmem:[#allocation8 + $0x40c] sm:$0xf0]  ;;  %v4355_v17 = vld [vmem:[#allocation8 + $0x57c] sm:$0xf] }
  0x55   :  { %1781 = vmatpush.bf16.msrb.mxu0 %v3131_v6  ;;  %v3716_v6 = vld [vmem:[#allocation8 + $0x604] sm:$0xf0]  ;;  %v3688_v12 = vld [vmem:[#allocation8 + $0x5cc] sm:$0xf0]  ;;  %v4292_v20 = vld [vmem:[#allocation8 + $0x384] sm:$0xf] }
  0x56   :  { %1794 = vmatpush.bf16.msrb.mxu1 %v3355_v8  ;;  %v3719_v7 = vor.u32 %v4369_v4, %v3716_v6  ;;  %v4306_v8 = vld [vmem:[#allocation8 + $0x3f4] sm:$0xf]  ;;  %v4348_v22 = vld [vmem:[#allocation8 + $0x544] sm:$0xf]  ;;  %v3632_v25 = vld [vmem:[#allocation8 + $0x55c] sm:$0xf0] }
  0x57   :  { %1761 = vmatpush.bf16.msra.mxu2 %v3407_v10  ;;  %v4362_v10 = vld [vmem:[#allocation8 + $0x5b4] sm:$0xf]  ;;  %v3467_v11 = vor.u32 %v4306_v8, %v3464_v9  ;;  %v3635_v26 = vor.u32 %v4348_v22, %v3632_v25  ;;  %v3162_v33 = vld [vmem:[#allocation8 + $0x190] sm:$0xf]  ;;  %v4233_v34 = vld [vmem:[#allocation8 + $0x1a8] sm:$0xf0] }
  0x58   :  { %1774 = vmatpush.bf16.msra.mxu3 %v3631_v13  ;;  %v3691_v13 = vor.u32 %v4362_v10, %v3688_v12  ;;  %v4289_v37 = vld [vmem:[#allocation8 + $0x368] sm:$0xf0]  ;;  %v3163_v40 = vor.u32 %v4233_v34, %v3162_v33  ;;  %v3134_v43 = vld [vmem:[#allocation8 + $0x158] sm:$0xf]  ;;  %v4226_v24 = vld [vmem:[#allocation8 + $0x170] sm:$0xf0] }
  0x59   :  { %1782 = vmatpush.bf16.msrb.mxu0 %v3103_v18  ;;  %v3660_v18 = vld [vmem:[#allocation8 + $0x594] sm:$0xf0]  ;;  %v4282_v46 = vld [vmem:[#allocation8 + $0x330] sm:$0xf0]  ;;  %v3106_v51 = vld [vmem:[#allocation8 + $0x120] sm:$0xf] }
  0x5a   :  { %1795 = vmatpush.bf16.msrb.mxu1 %v3327_v21  ;;  %v3663_v19 = vor.u32 %v4355_v17, %v3660_v18  ;;  %v3408_v21 = vld [vmem:[#allocation8 + $0x39c] sm:$0xf0]  ;;  %v3358_v45 = vld [vmem:[#allocation8 + $0x318] sm:$0xf]  ;;  %v4275_v54 = vld [vmem:[#allocation8 + $0x2f8] sm:$0xf0] }
  0x5b   :  { %1806 = vmatpush.bf16.msrb.mxu2 %v3607_v14  ;;  %v4299_v14 = vld [vmem:[#allocation8 + $0x3bc] sm:$0xf]  ;;  %v3411_v23 = vor.u32 %v4292_v20, %v3408_v21  ;;  %v3359_v50 = vor.u32 %v4282_v46, %v3358_v45  ;;  %v3078_v58 = vld [vmem:[#allocation8 + $0xe8] sm:$0xf]  ;;  %v4212_v59 = vld [vmem:[#allocation8 + $0x100] sm:$0xf0] }
  0x5c   :  { %1819 = vmatpush.bf16.msrb.mxu3 %v3831_v15  ;;  %v3436_v15 = vld [vmem:[#allocation8 + $0x3d4] sm:$0xf0]  ;;  %v3079_v0 = vor.u32 %v4212_v59, %v3078_v58  ;;  %v3050_v4 = vld [vmem:[#allocation8 + $0xb0] sm:$0xf]  ;;  %v4261_v8 = vld [vmem:[#allocation8 + $0x288] sm:$0xf0] }
  0x5d   :  { %1783 = vmatpush.bf16.msrb.mxu0 %v3075_v29  ;;  %v3439_v16 = vor.u32 %v4299_v14, %v3436_v15  ;;  %v3274_v6 = vld [vmem:[#allocation8 + $0x270] sm:$0xf]  ;;  %v4345_v10 = vld [vmem:[#allocation8 + $0x528] sm:$0xf0]  ;;  %v3022_v18 = vld [vmem:[#allocation8 + $0x78] sm:$0xf] }
  0x5e   :  { %1796 = vmatpush.bf16.msrb.mxu1 %v3299_v30  ;;  %v3610_v9 = vld [vmem:[#allocation8 + $0x510] sm:$0xf]  ;;  %v3275_v17 = vor.u32 %v4261_v8, %v3274_v6  ;;  %v4254_v25 = vld [vmem:[#allocation8 + $0x250] sm:$0xf0]  ;;  %v2994_v34 = vld [vmem:[#allocation8 + $0x40] sm:$0xf] }
  0x5f   :  { %1807 = vmatpush.bf16.msrb.mxu2 %v3579_v27  ;;  %v189_v27 = vld [vmem:[#allocation7] sm:$0xf]  ;;  %v3834_v12 = vld [vmem:[#allocation8 + $0x6d0] sm:$0xf]  ;;  %v3611_v21 = vor.u32 %v4345_v10, %v3610_v9  ;;  %v4286_v59 = vld [vmem:[#allocation8 + $0x354] sm:$0xf] }
  0x60   :  { %1820 = vmatpush.bf16.msrb.mxu3 %v3803_v28  ;;  %v192_v28 = vperm.slane %v189_v27, 0  ;;  %v193_v29 = vperm.slane %v189_v27, 1  ;;  %v195_v60 = vperm.slane %v189_v27, 3  ;;  %v3164_v58 = vld [vmem:[#allocation8 + $0x1ac] sm:$0xf0]  ;;  %s4771_s18 = smov [#allocation17]  }
  0x61   :  { %1784 = vmatpush.bf16.msrb.mxu0 %v3047_v35  ;;  %v4373_v6 = vld [vmem:[#allocation8 + $0x608] sm:$0xf0]  ;;  %v3136_v8 = vld [vmem:[#allocation8 + $0x174] sm:$0xf0]  ;;  %v4279_v9 = vld [vmem:[#allocation8 + $0x31c] sm:$0xf] }
  0x62   :  { %1797 = vmatpush.bf16.msrb.mxu1 %v3271_v36  ;;  %v3386_v36 = vld [vmem:[#allocation8 + $0x350] sm:$0xf]  ;;  %v3360_v10 = vld [vmem:[#allocation8 + $0x334] sm:$0xf0]  ;;  %s2904_s19 = sshll.u32 %s4771_s18, 4  ;;  %s2906_s1 = sshll.u32 %s4988_s13, 4  ;;  %s2905_s19 = int_to_ptr.vmem [resolvable:$true] %s2904_s19  ;;  %s2907_s1 = int_to_ptr.hbm [resolvable:$true] %s2906_s1 }
  0x63   :  { %1808 = vmatpush.bf16.msrb.mxu2 %v3551_v52  ;;  %v4219_v52 = vld [vmem:[#allocation8 + $0x138] sm:$0xf0] }
  0x64   :  { %1821 = vmatpush.bf16.msrb.mxu3 %v3775_v53  ;;  %v3330_v53 = vld [vmem:[#allocation8 + $0x2e0] sm:$0xf]  ;;  %v3107_v55 = vor.u32 %v4219_v52, %v3106_v51  ;;  %v4240_v52 = vld [vmem:[#allocation8 + $0x1e0] sm:$0xf0] }
  0x65   :  { %1785 = vmatpush.bf16.msrb.mxu0 %v3019_v41  ;;  %v3331_v56 = vor.u32 %v4275_v54, %v3330_v53  ;;  %v3526_v53 = vld [vmem:[#allocation8 + $0x468] sm:$0xf]  ;;  %v4324_v54 = vld [vmem:[#allocation8 + $0x480] sm:$0xf0] }
  0x66   :  { %1798 = vmatpush.bf16.msrb.mxu1 %v3243_v42  ;;  %v3387_v42 = vor.u32 %v4289_v37, %v3386_v36 }
  0x67   :  { %1809 = vmatpush.bf16.msrb.mxu2 %v3523_v62  ;;  %v4268_v62 = vld [vmem:[#allocation8 + $0x2c0] sm:$0xf0] }
  0x68   :  { %1822 = vmatpush.bf16.msrb.mxu3 %v3747_v1 }
  0x69   :  { %1786 = vmatpush.bf16.msrb.mxu0 %v2991_v44 }
  0x6a   :  { %1799 = vmatpush.bf16.msrb.mxu1 %v3215_v48  ;;  %v3135_v48 = vor.u32 %v4226_v24, %v3134_v43  ;;  %v3778_v43 = vld [vmem:[#allocation8 + $0x660] sm:$0xf]  ;;  %v4387_v24 = vld [vmem:[#allocation8 + $0x678] sm:$0xf0] }
  0x6b   :  { %1810 = vmatpush.bf16.msrb.mxu2 %v3495_v5  ;;  %v4205_v5 = vld [vmem:[#allocation8 + $0xc8] sm:$0xf0]  ;;  %v3779_v51 = vor.u32 %v4387_v24, %v3778_v43  ;;  %v3638_v43 = vld [vmem:[#allocation8 + $0x548] sm:$0xf] }
  0x6c   :  { %1823 = vmatpush.bf16.msrb.mxu3 %v3719_v7 }
  0x6d   :  { %1787 = vmatpush.bf16.msrb.mxu0 %v2963_v57  ;;  %v194_v57 = vperm.slane %v189_v27, 2  ;;  %v4338_v27 = vld [vmem:[#allocation8 + $0x4f0] sm:$0xf0] }
  0x6e   :  { %1800 = vmatpush.bf16.msrb.mxu1 %v3187_v61  ;;  %v3302_v61 = vld [vmem:[#allocation8 + $0x2a8] sm:$0xf] }
  0x6f   :  { %1811 = vmatpush.bf16.msrb.mxu2 %v3467_v11  ;;  %v3303_v3 = vor.u32 %v4268_v62, %v3302_v61 }
  0x70   :  { %1824 = vmatpush.bf16.msrb.mxu3 %v3691_v13  ;;  %v4401_v13 = vld [vmem:[#allocation8 + $0x6e8] sm:$0xf0] }
  0x71   :  { %v3835_v22 = vor.u32 %v4401_v13, %v3834_v12  ;;  %v3470_v13 = vld [vmem:[#allocation8 + $0x3f8] sm:$0xf] }
  0x73   :  { %1812 = vmatpush.bf16.msrb.mxu2 %v3439_v16  ;;  %v3051_v16 = vor.u32 %v4205_v5, %v3050_v4  ;;  %v3722_v5 = vld [vmem:[#allocation8 + $0x5f0] sm:$0xf] }
  0x74   :  { %1825 = vmatpush.bf16.msrb.mxu3 %v3663_v19  ;;  %v4198_v19 = vld [vmem:[#allocation8 + $0x90] sm:$0xf0]  ;;  %v3723_v12 = vor.u32 %v4373_v6, %v3722_v5 }
  0x77   :  { %1813 = vmatpush.bf16.msrb.mxu2 %v3411_v23  ;;  %v3246_v23 = vld [vmem:[#allocation8 + $0x238] sm:$0xf] }
  0x78   :  { %1826 = vmatpush.bf16.msrb.mxu3 %v3635_v26  ;;  %v3582_v26 = vld [vmem:[#allocation8 + $0x4d8] sm:$0xf]  ;;  %v3247_v33 = vor.u32 %v4254_v25, %v3246_v23  ;;  %v4272_v23 = vld [vmem:[#allocation8 + $0x2e4] sm:$0xf]  ;;  %v3332_v25 = vld [vmem:[#allocation8 + $0x2fc] sm:$0xf0] }
  0x79   :  { %v3583_v36 = vor.u32 %v4338_v27, %v3582_v26 }
  0xb5   :  { %v253_v30 = vpop.f32.mrf.mxu2 }
  0xb6   :  { %v254_v31 = vadd.f32 %v253_v30, %v192_v28  ;;  %v266_v32 = vpop.f32.mrf.mxu3  ;;  %v3806_v28 = vld [vmem:[#allocation8 + $0x698] sm:$0xf] }
  0xb7   :  { %v267_v35 = vadd.f32 %v266_v32, %v193_v29  ;;  %v4394_v29 = vld [vmem:[#allocation8 + $0x6b0] sm:$0xf0]  ;;  %v3023_v32 = vor.u32 %v4198_v19, %v3022_v18  ;;  %v3694_v18 = vld [vmem:[#allocation8 + $0x5b8] sm:$0xf] }
  0xb8   :  { %v296_v38 = vmax.f32 %v254_v31, 0.0  ;;  %v3807_v37 = vor.u32 %v4394_v29, %v3806_v28  ;;  %v4366_v19 = vld [vmem:[#allocation8 + $0x5d0] sm:$0xf0]  ;;  %v3442_v28 = vld [vmem:[#allocation8 + $0x3c0] sm:$0xf] }
  0xb9   :  { %v297_v39 = vmax.f32 %v267_v35, 0.0  ;;  %v4191_v35 = vld [vmem:[#allocation8 + $0x58] sm:$0xf0]  ;;  %v3695_v27 = vor.u32 %v4366_v19, %v3694_v18 }
  0xba   :  { %v4891_v41 = vpack.c.bf16 %v296_v38, %v296_v38  ;;  %v3218_v38 = vld [vmem:[#allocation8 + $0x200] sm:$0xf]  ;;  %v2995_v45 = vor.u32 %v4191_v35, %v2994_v34  ;;  %v4303_v29 = vld [vmem:[#allocation8 + $0x3d8] sm:$0xf0]  ;;  %v4209_v34 = vld [vmem:[#allocation8 + $0xec] sm:$0xf] }
  0xbb   :  { %v4893_v44 = vpack.c.bf16 %v297_v39, %v297_v39  ;;  %v4247_v39 = vld [vmem:[#allocation8 + $0x218] sm:$0xf0]  ;;  %v3080_v35 = vld [vmem:[#allocation8 + $0x104] sm:$0xf0] }
  0xbc   :  { %1736 = vmatmul.bf16.vlgmr.msra.gmra.mxu0 %v4891_v41  ;;  %v3219_v46 = vor.u32 %v4247_v39, %v3218_v38  ;;  %v3443_v38 = vor.u32 %v4303_v29, %v3442_v28  ;;  %v3083_v24 = vor.u32 %v4209_v34, %v3080_v35  ;;  %v4321_v28 = vld [vmem:[#allocation8 + $0x46c] sm:$0xf]  ;;  %v3528_v29 = vld [vmem:[#allocation8 + $0x484] sm:$0xf0]  ;;  %v3394_v34 = vld [vmem:[#allocation8 + $0x358] sm:$0xf] }
  0xbd   :  { %1749 = vmatmul.bf16.vlgmr.msra.gmra.mxu1 %v4893_v44  ;;  %1832 = vmatpush.bf16.msra.mxu0 %v3163_v40  ;;  %v255_v47 = vpop.f32.mrf.mxu2  ;;  %v3554_v40 = vld [vmem:[#allocation8 + $0x4a0] sm:$0xf]  ;;  %v4290_v35 = vld [vmem:[#allocation8 + $0x370] sm:$0xf0] }
  0xbe   :  { %1845 = vmatpush.bf16.msra.mxu1 %v3387_v42  ;;  %v268_v49 = vpop.f32.mrf.mxu3  ;;  %v4331_v42 = vld [vmem:[#allocation8 + $0x4b8] sm:$0xf0]  ;;  %v2966_v47 = vld [vmem:[#allocation8 + $0x8] sm:$0xf] }
  0xbf   :  { %v3190_v49 = vld [vmem:[#allocation8 + $0x1c8] sm:$0xf] }
  0xc0   :  { %v3191_v62 = vor.u32 %v4240_v52, %v3190_v49  ;;  %v4258_v49 = vld [vmem:[#allocation8 + $0x274] sm:$0xf]  ;;  %v3612_v52 = vld [vmem:[#allocation8 + $0x52c] sm:$0xf0] }
  0xc1   :  { %1833 = vmatpush.bf16.msra.mxu0 %v3135_v48  ;;  %v4184_v48 = vld [vmem:[#allocation8 + $0x20] sm:$0xf0] }
  0xc2   :  { %1846 = vmatpush.bf16.msra.mxu1 %v3359_v50  ;;  %v3555_v50 = vor.u32 %v4331_v42, %v3554_v40  ;;  %v2967_v61 = vor.u32 %v4184_v48, %v2966_v47  ;;  %v3414_v40 = vld [vmem:[#allocation8 + $0x388] sm:$0xf]  ;;  %v4296_v42 = vld [vmem:[#allocation8 + $0x3a0] sm:$0xf0]  ;;  %v4202_v47 = vld [vmem:[#allocation8 + $0xb4] sm:$0xf] }
  0xc3   :  { %v3052_v48 = vld [vmem:[#allocation8 + $0xcc] sm:$0xf0] }
  0xc5   :  { %1834 = vmatpush.bf16.msra.mxu0 %v3107_v55  ;;  %v279_v63 = vpop.f32.mrf.mxu2  ;;  %v3750_v55 = vld [vmem:[#allocation8 + $0x628] sm:$0xf] }
  0xc6   :  { %1847 = vmatpush.bf16.msra.mxu1 %v3331_v56  ;;  %v280_v1 = vadd.f32 %v279_v63, %v194_v57  ;;  %v292_v2 = vpop.f32.mrf.mxu3  ;;  %v4380_v56 = vld [vmem:[#allocation8 + $0x640] sm:$0xf0]  ;;  %v4230_v57 = vld [vmem:[#allocation8 + $0x194] sm:$0xf]  ;;  %v3527_v63 = vor.u32 %v4324_v54, %v3526_v53  ;;  %v3836_v54 = vld [vmem:[#allocation8 + $0x6ec] sm:$0xf0] }
  0xc7   :  { %v293_v7 = vadd.f32 %v292_v2, %v195_v60  ;;  %v3388_v60 = vld [vmem:[#allocation8 + $0x36c] sm:$0xf0]  ;;  %v4317_v2 = vld [vmem:[#allocation8 + $0x448] sm:$0xf0]  ;;  %v4398_v53 = vld [vmem:[#allocation8 + $0x6d4] sm:$0xf] }
  0xc8   :  { %v298_v11 = vmax.f32 %v280_v1, 0.0  ;;  %v3498_v1 = vld [vmem:[#allocation8 + $0x430] sm:$0xf]  ;;  %v3391_v4 = vor.u32 %v4286_v59, %v3388_v60  ;;  %v4195_v59 = vld [vmem:[#allocation8 + $0x7c] sm:$0xf] }
  0xc9   :  { %v299_v14 = vmax.f32 %v293_v7, 0.0  ;;  %1835 = vmatpush.bf16.msra.mxu0 %v3079_v0  ;;  %v3751_v0 = vor.u32 %v4380_v56, %v3750_v55  ;;  %v4223_v7 = vld [vmem:[#allocation8 + $0x15c] sm:$0xf]  ;;  %v3415_v55 = vor.u32 %v4296_v42, %v3414_v40  ;;  %v3024_v60 = vld [vmem:[#allocation8 + $0x94] sm:$0xf0] }
  0xca   :  { %v4897_v15 = vpack.c.bf16 %v298_v11, %v298_v11  ;;  %1848 = vmatpush.bf16.msra.mxu1 %v3303_v3  ;;  %v3167_v3 = vor.u32 %v4230_v57, %v3164_v58  ;;  %v3499_v11 = vor.u32 %v4317_v2, %v3498_v1  ;;  %v3055_v57 = vor.u32 %v4202_v47, %v3052_v48  ;;  %v4335_v1 = vld [vmem:[#allocation8 + $0x4dc] sm:$0xf]  ;;  %v3584_v2 = vld [vmem:[#allocation8 + $0x4f4] sm:$0xf0]  ;;  %v4314_v40 = vld [vmem:[#allocation8 + $0x434] sm:$0xf] }
  0xcb   :  { %v4899_v20 = vpack.c.bf16 %v299_v14, %v299_v14  ;;  %v4310_v14 = vld [vmem:[#allocation8 + $0x410] sm:$0xf0]  ;;  %v3027_v5 = vor.u32 %v4195_v59, %v3024_v60  ;;  %v3500_v42 = vld [vmem:[#allocation8 + $0x44c] sm:$0xf0]  ;;  %v3142_v47 = vld [vmem:[#allocation8 + $0x160] sm:$0xf] }
  0xcc   :  { %1762 = vmatmul.bf16.vlgmr.msra.gmra.mxu2 %v4897_v15  ;;  %1788 = vmatmul.bf16.vlgmr.msrb.gmra.mxu0 %v4891_v41  ;;  %v3471_v26 = vor.u32 %v4310_v14, %v3470_v13  ;;  %v4328_v13 = vld [vmem:[#allocation8 + $0x4a4] sm:$0xf]  ;;  %v3556_v14 = vld [vmem:[#allocation8 + $0x4bc] sm:$0xf0]  ;;  %v4227_v48 = vld [vmem:[#allocation8 + $0x178] sm:$0xf0] }
  0xcd   :  { %1775 = vmatmul.bf16.vlgmr.msra.gmra.mxu3 %v4899_v20  ;;  %1801 = vmatmul.bf16.vlgmr.msrb.gmra.mxu1 %v4893_v44  ;;  %v281_v30 = vpop.f32.mrf.mxu2  ;;  %v3114_v59 = vld [vmem:[#allocation8 + $0x128] sm:$0xf]  ;;  %v4220_v60 = vld [vmem:[#allocation8 + $0x140] sm:$0xf0] }
  0xce   :  { %1836 = vmatpush.bf16.msra.mxu0 %v3051_v16  ;;  %1849 = vmatpush.bf16.msra.mxu1 %v3275_v17  ;;  %v294_v31 = vpop.f32.mrf.mxu3  ;;  %v3139_v16 = vor.u32 %v4223_v7, %v3136_v8  ;;  %v3363_v17 = vor.u32 %v4279_v9, %v3360_v10  ;;  %v4188_v7 = vld [vmem:[#allocation8 + $0x44] sm:$0xf]  ;;  %v2996_v8 = vld [vmem:[#allocation8 + $0x5c] sm:$0xf0]  ;;  %v3587_v9 = vor.u32 %v4335_v1, %v3584_v2 }
  0xcf   :  { %1858 = vmatpush.bf16.msra.mxu2 %v3611_v21  ;;  %1871 = vmatpush.bf16.msra.mxu3 %v3835_v22  ;;  %v4216_v21 = vld [vmem:[#allocation8 + $0x124] sm:$0xf]  ;;  %v3108_v22 = vld [vmem:[#allocation8 + $0x13c] sm:$0xf0]  ;;  %v3335_v31 = vor.u32 %v4272_v23, %v3332_v25  ;;  %v2999_v18 = vor.u32 %v4188_v7, %v2996_v8  ;;  %v4237_v23 = vld [vmem:[#allocation8 + $0x1cc] sm:$0xf]  ;;  %v3559_v25 = vor.u32 %v4328_v13, %v3556_v14 }
  0xd0   :  { %v3111_v30 = vor.u32 %v4216_v21, %v3108_v22  ;;  %v4181_v21 = vld [vmem:[#allocation8 + $0xc] sm:$0xf]  ;;  %v2968_v22 = vld [vmem:[#allocation8 + $0x24] sm:$0xf0]  ;;  %v4300_v1 = vld [vmem:[#allocation8 + $0x3c4] sm:$0xf] }
  0xd1   :  { %v3444_v2 = vld [vmem:[#allocation8 + $0x3dc] sm:$0xf0]  ;;  %v3086_v7 = vld [vmem:[#allocation8 + $0xf0] sm:$0xf]  ;;  %v4213_v8 = vld [vmem:[#allocation8 + $0x108] sm:$0xf0] }
  0xd2   :  { %1837 = vmatpush.bf16.msra.mxu0 %v3023_v32  ;;  %1850 = vmatpush.bf16.msra.mxu1 %v3247_v33  ;;  %v3666_v32 = vld [vmem:[#allocation8 + $0x580] sm:$0xf]  ;;  %v4359_v33 = vld [vmem:[#allocation8 + $0x598] sm:$0xf0]  ;;  %v4293_v13 = vld [vmem:[#allocation8 + $0x38c] sm:$0xf] }
  0xd3   :  { %1859 = vmatpush.bf16.msra.mxu2 %v3583_v36  ;;  %1872 = vmatpush.bf16.msra.mxu3 %v3807_v37  ;;  %v4265_v36 = vld [vmem:[#allocation8 + $0x2ac] sm:$0xf]  ;;  %v3304_v37 = vld [vmem:[#allocation8 + $0x2c4] sm:$0xf0]  ;;  %v3667_v39 = vor.u32 %v4359_v33, %v3666_v32  ;;  %v3170_v32 = vld [vmem:[#allocation8 + $0x198] sm:$0xf] }
  0xd4   :  { %v4234_v33 = vld [vmem:[#allocation8 + $0x1b0] sm:$0xf0]  ;;  %v3416_v14 = vld [vmem:[#allocation8 + $0x3a4] sm:$0xf0] }
  0xd6   :  { %1838 = vmatpush.bf16.msra.mxu0 %v2995_v45  ;;  %1851 = vmatpush.bf16.msra.mxu1 %v3219_v46  ;;  %v3307_v45 = vor.u32 %v4265_v36, %v3304_v37  ;;  %v4352_v46 = vld [vmem:[#allocation8 + $0x560] sm:$0xf0]  ;;  %v2971_v36 = vor.u32 %v4181_v21, %v2968_v22  ;;  %v3058_v21 = vld [vmem:[#allocation8 + $0xb8] sm:$0xf]  ;;  %v4206_v22 = vld [vmem:[#allocation8 + $0xd0] sm:$0xf0] }
  0xd7   :  { %1860 = vmatpush.bf16.msra.mxu2 %v3555_v50  ;;  %1873 = vmatpush.bf16.msra.mxu3 %v3779_v51  ;;  %v3276_v50 = vld [vmem:[#allocation8 + $0x28c] sm:$0xf0]  ;;  %v4342_v51 = vld [vmem:[#allocation8 + $0x514] sm:$0xf]  ;;  %v3639_v56 = vor.u32 %v4352_v46, %v3638_v43  ;;  %v3171_v43 = vor.u32 %v4234_v33, %v3170_v32  ;;  %v3059_v32 = vor.u32 %v4206_v22, %v3058_v21  ;;  %v4224_v21 = vld [vmem:[#allocation8 + $0x164] sm:$0xf] }
  0xd8   :  { %v3279_v58 = vor.u32 %v4258_v49, %v3276_v50  ;;  %v3724_v46 = vld [vmem:[#allocation8 + $0x60c] sm:$0xf0]  ;;  %v3366_v49 = vld [vmem:[#allocation8 + $0x320] sm:$0xf]  ;;  %v4283_v50 = vld [vmem:[#allocation8 + $0x338] sm:$0xf0] }
  0xd9   :  { %v3144_v22 = vld [vmem:[#allocation8 + $0x17c] sm:$0xf0] }
  0xda   :  { %1839 = vmatpush.bf16.msra.mxu0 %v2967_v61  ;;  %1852 = vmatpush.bf16.msra.mxu1 %v3191_v62  ;;  %v3615_v61 = vor.u32 %v4342_v51, %v3612_v52  ;;  %v3839_v62 = vor.u32 %v4398_v53, %v3836_v54  ;;  %v3503_v51 = vor.u32 %v4314_v40, %v3500_v42  ;;  %v4307_v53 = vld [vmem:[#allocation8 + $0x3fc] sm:$0xf]  ;;  %v3472_v54 = vld [vmem:[#allocation8 + $0x414] sm:$0xf0]  ;;  %v3590_v40 = vld [vmem:[#allocation8 + $0x4e0] sm:$0xf] }
  0xdb   :  { %1861 = vmatpush.bf16.msra.mxu2 %v3527_v63  ;;  %1874 = vmatpush.bf16.msra.mxu3 %v3751_v0  ;;  %v4251_v63 = vld [vmem:[#allocation8 + $0x23c] sm:$0xf]  ;;  %v3248_v0 = vld [vmem:[#allocation8 + $0x254] sm:$0xf0] }
  0xdc   :  { %1814 = vmatmul.bf16.vlgmr.msrb.gmra.mxu2 %v4897_v15  ;;  %v3251_v6 = vor.u32 %v4251_v63, %v3248_v0  ;;  %v3475_v63 = vor.u32 %v4307_v53, %v3472_v54  ;;  %v4339_v42 = vld [vmem:[#allocation8 + $0x4f8] sm:$0xf0]  ;;  %v3562_v53 = vld [vmem:[#allocation8 + $0x4a8] sm:$0xf]  ;;  %v4332_v54 = vld [vmem:[#allocation8 + $0x4c0] sm:$0xf0] }
  0xdd   :  { %1827 = vmatmul.bf16.vlgmr.msrb.gmra.mxu3 %v4899_v20  ;;  %1840 = vmatmul.bf16.vlgmr.msra.gmra.mxu0 %v4891_v41 }
  0xde   :  { %1884 = vmatpush.bf16.msrb.mxu0 %v3167_v3  ;;  %1897 = vmatpush.bf16.msrb.mxu1 %v3391_v4  ;;  %v4391_v3 = vld [vmem:[#allocation8 + $0x69c] sm:$0xf]  ;;  %v3808_v4 = vld [vmem:[#allocation8 + $0x6b4] sm:$0xf0] }
  0xdf   :  { %1853 = vmatmul.bf16.vlgmr.msra.gmra.mxu1 %v4893_v44  ;;  %1862 = vmatpush.bf16.msra.mxu2 %v3499_v11  ;;  %v3811_v10 = vor.u32 %v4391_v3, %v3808_v4  ;;  %v4244_v11 = vld [vmem:[#allocation8 + $0x204] sm:$0xf]  ;;  %v3115_v3 = vor.u32 %v4220_v60, %v3114_v59  ;;  %v2974_v59 = vld [vmem:[#allocation8 + $0x10] sm:$0xf]  ;;  %v4185_v60 = vld [vmem:[#allocation8 + $0x28] sm:$0xf0] }
  0xe0   :  { %1875 = vmatpush.bf16.msra.mxu3 %v3723_v12  ;;  %v3220_v12 = vld [vmem:[#allocation8 + $0x21c] sm:$0xf0] }
  0xe1   :  { %v3223_v19 = vor.u32 %v4244_v11, %v3220_v12  ;;  %v3447_v11 = vor.u32 %v4300_v1, %v3444_v2  ;;  %v3534_v1 = vld [vmem:[#allocation8 + $0x470] sm:$0xf]  ;;  %v4325_v2 = vld [vmem:[#allocation8 + $0x488] sm:$0xf0] }
  0xe2   :  { %1885 = vmatpush.bf16.msrb.mxu0 %v3139_v16  ;;  %1898 = vmatpush.bf16.msrb.mxu1 %v3363_v17  ;;  %v4384_v16 = vld [vmem:[#allocation8 + $0x664] sm:$0xf]  ;;  %v3780_v17 = vld [vmem:[#allocation8 + $0x67c] sm:$0xf0] }
  0xe3   :  { %1863 = vmatpush.bf16.msra.mxu2 %v3471_v26  ;;  %v3783_v26 = vor.u32 %v4384_v16, %v3780_v17  ;;  %v4349_v16 = vld [vmem:[#allocation8 + $0x54c] sm:$0xf]  ;;  %v3087_v17 = vor.u32 %v4213_v8, %v3086_v7  ;;  %v4287_v7 = vld [vmem:[#allocation8 + $0x35c] sm:$0xf]  ;;  %v3396_v8 = vld [vmem:[#allocation8 + $0x374] sm:$0xf0] }
  0xe4   :  { %1876 = vmatpush.bf16.msra.mxu3 %v3695_v27  ;;  %v3192_v27 = vld [vmem:[#allocation8 + $0x1e4] sm:$0xf0] }
  0xe5   :  { %v3195_v37 = vor.u32 %v4237_v23, %v3192_v27  ;;  %v3282_v23 = vld [vmem:[#allocation8 + $0x278] sm:$0xf]  ;;  %v4346_v27 = vld [vmem:[#allocation8 + $0x530] sm:$0xf0] }
  0xe6   :  { %1886 = vmatpush.bf16.msrb.mxu0 %v3111_v30  ;;  %1899 = vmatpush.bf16.msrb.mxu1 %v3335_v31  ;;  %v4377_v30 = vld [vmem:[#allocation8 + $0x62c] sm:$0xf]  ;;  %v3752_v31 = vld [vmem:[#allocation8 + $0x644] sm:$0xf0] }
  0xe7   :  { %1864 = vmatpush.bf16.msra.mxu2 %v3443_v38  ;;  %v3531_v38 = vor.u32 %v4321_v28, %v3528_v29  ;;  %v3842_v28 = vld [vmem:[#allocation8 + $0x6d8] sm:$0xf]  ;;  %v4402_v29 = vld [vmem:[#allocation8 + $0x6f0] sm:$0xf0] }
  0xe8   :  { %1877 = vmatpush.bf16.msra.mxu3 %v3667_v39  ;;  %v3755_v39 = vor.u32 %v4377_v30, %v3752_v31  ;;  %v3419_v30 = vor.u32 %v4293_v13, %v3416_v14  ;;  %v3506_v13 = vld [vmem:[#allocation8 + $0x438] sm:$0xf]  ;;  %v4318_v14 = vld [vmem:[#allocation8 + $0x450] sm:$0xf0] }
  0xea   :  { %1887 = vmatpush.bf16.msrb.mxu0 %v3083_v24  ;;  %1900 = vmatpush.bf16.msrb.mxu1 %v3307_v45  ;;  %v3395_v24 = vor.u32 %v4290_v35, %v3394_v34  ;;  %v4370_v45 = vld [vmem:[#allocation8 + $0x5f4] sm:$0xf]  ;;  %v3030_v34 = vld [vmem:[#allocation8 + $0x80] sm:$0xf]  ;;  %v4199_v35 = vld [vmem:[#allocation8 + $0x98] sm:$0xf0] }
  0xeb   :  { %1865 = vmatpush.bf16.msra.mxu2 %v3415_v55  ;;  %v3727_v52 = vor.u32 %v4370_v45, %v3724_v46  ;;  %v3143_v55 = vor.u32 %v4227_v48, %v3142_v47  ;;  %v3031_v45 = vor.u32 %v4199_v35, %v3030_v34  ;;  %v3002_v47 = vld [vmem:[#allocation8 + $0x48] sm:$0xf]  ;;  %v4192_v48 = vld [vmem:[#allocation8 + $0x60] sm:$0xf0]  ;;  %v4217_v34 = vld [vmem:[#allocation8 + $0x12c] sm:$0xf] }
  0xec   :  { %1878 = vmatpush.bf16.msra.mxu3 %v3639_v56  ;;  %v3367_v56 = vor.u32 %v4283_v50, %v3366_v49  ;;  %v3591_v49 = vor.u32 %v4339_v42, %v3590_v40  ;;  %v3116_v35 = vld [vmem:[#allocation8 + $0x144] sm:$0xf0]  ;;  %v4304_v42 = vld [vmem:[#allocation8 + $0x3e0] sm:$0xf0] }
  0xed   :  { %v3450_v40 = vld [vmem:[#allocation8 + $0x3c8] sm:$0xf] }
  0xee   :  { %1888 = vmatpush.bf16.msrb.mxu0 %v3055_v57  ;;  %1901 = vmatpush.bf16.msrb.mxu1 %v3279_v58  ;;  %v4363_v57 = vld [vmem:[#allocation8 + $0x5bc] sm:$0xf]  ;;  %v3696_v58 = vld [vmem:[#allocation8 + $0x5d4] sm:$0xf0] }
  0xef   :  { %1910 = vmatpush.bf16.msrb.mxu2 %v3615_v61  ;;  %1879 = vmatmul.bf16.vlgmr.msra.gmra.mxu3 %v4899_v20  ;;  %v3338_v61 = vld [vmem:[#allocation8 + $0x2e8] sm:$0xf]  ;;  %v3699_v0 = vor.u32 %v4363_v57, %v3696_v58  ;;  %v3003_v57 = vor.u32 %v4192_v48, %v3002_v47  ;;  %v4210_v47 = vld [vmem:[#allocation8 + $0xf4] sm:$0xf]  ;;  %v3088_v48 = vld [vmem:[#allocation8 + $0x10c] sm:$0xf0] }
  0xf0   :  { %1923 = vmatpush.bf16.msrb.mxu3 %v3839_v62  ;;  %1866 = vmatmul.bf16.vlgmr.msra.gmra.mxu2 %v4897_v15  ;;  %v4276_v62 = vld [vmem:[#allocation8 + $0x300] sm:$0xf0] }
  0xf1   :  { %v3339_v4 = vor.u32 %v4276_v62, %v3338_v61  ;;  %v3198_v61 = vld [vmem:[#allocation8 + $0x1d0] sm:$0xf]  ;;  %v3563_v62 = vor.u32 %v4332_v54, %v3562_v53  ;;  %v4297_v54 = vld [vmem:[#allocation8 + $0x3a8] sm:$0xf0] }
  0xf2   :  { %1889 = vmatpush.bf16.msrb.mxu0 %v3027_v5  ;;  %1902 = vmatpush.bf16.msrb.mxu1 %v3251_v6  ;;  %v4356_v5 = vld [vmem:[#allocation8 + $0x584] sm:$0xf]  ;;  %v3668_v6 = vld [vmem:[#allocation8 + $0x59c] sm:$0xf0]  ;;  %v3422_v53 = vld [vmem:[#allocation8 + $0x390] sm:$0xf] }
  0xf3   :  { %1911 = vmatpush.bf16.msrb.mxu2 %v3587_v9  ;;  %v3310_v9 = vld [vmem:[#allocation8 + $0x2b0] sm:$0xf]  ;;  %v3671_v12 = vor.u32 %v4356_v5, %v3668_v6  ;;  %v4231_v5 = vld [vmem:[#allocation8 + $0x19c] sm:$0xf]  ;;  %v3172_v6 = vld [vmem:[#allocation8 + $0x1b4] sm:$0xf0] }
  0xf4   :  { %1924 = vmatpush.bf16.msrb.mxu3 %v3811_v10  ;;  %v4269_v10 = vld [vmem:[#allocation8 + $0x2c8] sm:$0xf0] }
  0xf6   :  { %1890 = vmatpush.bf16.msrb.mxu0 %v2999_v18  ;;  %1903 = vmatpush.bf16.msrb.mxu1 %v3223_v19  ;;  %v3311_v18 = vor.u32 %v4269_v10, %v3310_v9  ;;  %v3640_v19 = vld [vmem:[#allocation8 + $0x564] sm:$0xf0]  ;;  %v2975_v9 = vor.u32 %v4185_v60, %v2974_v59  ;;  %v4203_v59 = vld [vmem:[#allocation8 + $0xbc] sm:$0xf]  ;;  %v3060_v60 = vld [vmem:[#allocation8 + $0xd4] sm:$0xf0] }
  0xf7   :  { %1912 = vmatpush.bf16.msrb.mxu2 %v3559_v25  ;;  %v4262_v25 = vld [vmem:[#allocation8 + $0x290] sm:$0xf0]  ;;  %v3643_v31 = vor.u32 %v4349_v16, %v3640_v19  ;;  %v3175_v16 = vor.u32 %v4231_v5, %v3172_v6  ;;  %v3063_v5 = vor.u32 %v4203_v59, %v3060_v60  ;;  %v3150_v59 = vld [vmem:[#allocation8 + $0x168] sm:$0xf]  ;;  %v4228_v60 = vld [vmem:[#allocation8 + $0x180] sm:$0xf0] }
  0xf8   :  { %1925 = vmatpush.bf16.msrb.mxu3 %v3783_v26  ;;  %v3618_v26 = vld [vmem:[#allocation8 + $0x518] sm:$0xf]  ;;  %v3283_v33 = vor.u32 %v4262_v25, %v3282_v23  ;;  %v4374_v19 = vld [vmem:[#allocation8 + $0x610] sm:$0xf0]  ;;  %v4280_v23 = vld [vmem:[#allocation8 + $0x324] sm:$0xf] }
  0xf9   :  { %v3368_v25 = vld [vmem:[#allocation8 + $0x33c] sm:$0xf0] }
  0xfa   :  { %1891 = vmatpush.bf16.msrb.mxu0 %v2971_v36  ;;  %1904 = vmatpush.bf16.msrb.mxu1 %v3195_v37  ;;  %v3619_v36 = vor.u32 %v4346_v27, %v3618_v26  ;;  %v3843_v37 = vor.u32 %v4402_v29, %v3842_v28  ;;  %v3507_v26 = vor.u32 %v4318_v14, %v3506_v13  ;;  %v3478_v28 = vld [vmem:[#allocation8 + $0x400] sm:$0xf]  ;;  %v4311_v29 = vld [vmem:[#allocation8 + $0x418] sm:$0xf0]  ;;  %v4336_v13 = vld [vmem:[#allocation8 + $0x4e4] sm:$0xf] }
  0xfb   :  { %1913 = vmatpush.bf16.msrb.mxu2 %v3531_v38  ;;  %v3254_v38 = vld [vmem:[#allocation8 + $0x240] sm:$0xf] }
  0xfc   :  { %1926 = vmatpush.bf16.msrb.mxu3 %v3755_v39  ;;  %v4255_v39 = vld [vmem:[#allocation8 + $0x258] sm:$0xf0]  ;;  %v3592_v14 = vld [vmem:[#allocation8 + $0x4fc] sm:$0xf0] }
  0xfd   :  { %1892 = vmatmul.bf16.vlgmr.msrb.gmra.mxu0 %v4891_v41  ;;  %1905 = vmatmul.bf16.vlgmr.msrb.gmra.mxu1 %v4893_v44  ;;  %v3255_v46 = vor.u32 %v4255_v39, %v3254_v38  ;;  %v3479_v38 = vor.u32 %v4311_v29, %v3478_v28  ;;  %v4329_v28 = vld [vmem:[#allocation8 + $0x4ac] sm:$0xf]  ;;  %v3564_v29 = vld [vmem:[#allocation8 + $0x4c4] sm:$0xf0] }
  0xfe   :  { %1936 = vmatpush.bf16.msra.mxu0 %v3171_v43  ;;  %1949 = vmatpush.bf16.msra.mxu1 %v3395_v24  ;;  %v3814_v43 = vld [vmem:[#allocation8 + $0x6a0] sm:$0xf]  ;;  %v4395_v24 = vld [vmem:[#allocation8 + $0x6b8] sm:$0xf0] }
  0xff   :  { %1914 = vmatpush.bf16.msrb.mxu2 %v3503_v51  ;;  %v3815_v50 = vor.u32 %v4395_v24, %v3814_v43  ;;  %v3226_v51 = vld [vmem:[#allocation8 + $0x208] sm:$0xf]  ;;  %v3119_v43 = vor.u32 %v4217_v34, %v3116_v35  ;;  %v4182_v34 = vld [vmem:[#allocation8 + $0x14] sm:$0xf]  ;;  %v2976_v35 = vld [vmem:[#allocation8 + $0x2c] sm:$0xf0] }
 0x100   :  { %1927 = vmatpush.bf16.msrb.mxu3 %v3727_v52  ;;  %v4248_v52 = vld [vmem:[#allocation8 + $0x220] sm:$0xf0] }
 0x101   :  { %v3227_v58 = vor.u32 %v4248_v52, %v3226_v51  ;;  %v3451_v51 = vor.u32 %v4304_v42, %v3450_v40  ;;  %v4322_v40 = vld [vmem:[#allocation8 + $0x474] sm:$0xf]  ;;  %v3536_v42 = vld [vmem:[#allocation8 + $0x48c] sm:$0xf0] }
 0x102   :  { %1937 = vmatpush.bf16.msra.mxu0 %v3143_v55  ;;  %1950 = vmatpush.bf16.msra.mxu1 %v3367_v56  ;;  %v3786_v55 = vld [vmem:[#allocation8 + $0x668] sm:$0xf]  ;;  %v4388_v56 = vld [vmem:[#allocation8 + $0x680] sm:$0xf0] }
 0x103   :  { %1915 = vmatpush.bf16.msrb.mxu2 %v3475_v63  ;;  %v3787_v63 = vor.u32 %v4388_v56, %v3786_v55  ;;  %v3646_v55 = vld [vmem:[#allocation8 + $0x550] sm:$0xf]  ;;  %v3091_v56 = vor.u32 %v4210_v47, %v3088_v48  ;;  %v3402_v47 = vld [vmem:[#allocation8 + $0x360] sm:$0xf]  ;;  %v4291_v48 = vld [vmem:[#allocation8 + $0x378] sm:$0xf0] }
 0x104   :  { %1928 = vmatpush.bf16.msrb.mxu3 %v3699_v0  ;;  %v4241_v0 = vld [vmem:[#allocation8 + $0x1e8] sm:$0xf0] }
 0x105   :  { %v3199_v10 = vor.u32 %v4241_v0, %v3198_v61  ;;  %v4259_v61 = vld [vmem:[#allocation8 + $0x27c] sm:$0xf]  ;;  %v3620_v0 = vld [vmem:[#allocation8 + $0x534] sm:$0xf0] }
 0x106   :  { %1938 = vmatpush.bf16.msra.mxu0 %v3115_v3  ;;  %1951 = vmatpush.bf16.msra.mxu1 %v3339_v4  ;;  %v3758_v3 = vld [vmem:[#allocation8 + $0x630] sm:$0xf]  ;;  %v4381_v4 = vld [vmem:[#allocation8 + $0x648] sm:$0xf0] }
 0x107   :  { %1916 = vmatpush.bf16.msrb.mxu2 %v3447_v11  ;;  %v3535_v11 = vor.u32 %v4325_v2, %v3534_v1  ;;  %v4399_v1 = vld [vmem:[#allocation8 + $0x6dc] sm:$0xf]  ;;  %v3844_v2 = vld [vmem:[#allocation8 + $0x6f4] sm:$0xf0] }
 0x108   :  { %1929 = vmatpush.bf16.msrb.mxu3 %v3671_v12  ;;  %v3759_v12 = vor.u32 %v4381_v4, %v3758_v3  ;;  %v3423_v3 = vor.u32 %v4297_v54, %v3422_v53  ;;  %v4315_v53 = vld [vmem:[#allocation8 + $0x43c] sm:$0xf]  ;;  %v3508_v54 = vld [vmem:[#allocation8 + $0x454] sm:$0xf0] }
 0x10a   :  { %1939 = vmatpush.bf16.msra.mxu0 %v3087_v17  ;;  %1952 = vmatpush.bf16.msra.mxu1 %v3311_v18  ;;  %v3399_v17 = vor.u32 %v4287_v7, %v3396_v8  ;;  %v3730_v18 = vld [vmem:[#allocation8 + $0x5f8] sm:$0xf]  ;;  %v4196_v7 = vld [vmem:[#allocation8 + $0x84] sm:$0xf]  ;;  %v3032_v8 = vld [vmem:[#allocation8 + $0x9c] sm:$0xf0] }
 0x10b   :  { %1917 = vmatpush.bf16.msrb.mxu2 %v3419_v30  ;;  %v3731_v27 = vor.u32 %v4374_v19, %v3730_v18  ;;  %v3147_v30 = vor.u32 %v4224_v21, %v3144_v22  ;;  %v3035_v18 = vor.u32 %v4196_v7, %v3032_v8  ;;  %v4189_v21 = vld [vmem:[#allocation8 + $0x4c] sm:$0xf]  ;;  %v3004_v22 = vld [vmem:[#allocation8 + $0x64] sm:$0xf0]  ;;  %v3122_v7 = vld [vmem:[#allocation8 + $0x130] sm:$0xf] }
 0x10c   :  { %1930 = vmatpush.bf16.msrb.mxu3 %v3643_v31  ;;  %v3371_v31 = vor.u32 %v4280_v23, %v3368_v25  ;;  %v3595_v23 = vor.u32 %v4336_v13, %v3592_v14  ;;  %v4221_v8 = vld [vmem:[#allocation8 + $0x148] sm:$0xf0] }
 0x10d   :  { %v4301_v14 = vld [vmem:[#allocation8 + $0x3cc] sm:$0xf] }
 0x10e   :  { %1940 = vmatpush.bf16.msra.mxu0 %v3059_v32  ;;  %1953 = vmatpush.bf16.msra.mxu1 %v3283_v33  ;;  %v3702_v32 = vld [vmem:[#allocation8 + $0x5c0] sm:$0xf]  ;;  %v4367_v33 = vld [vmem:[#allocation8 + $0x5d8] sm:$0xf0] }
 0x10f   :  { %1962 = vmatpush.bf16.msra.mxu2 %v3619_v36  ;;  %1931 = vmatmul.bf16.vlgmr.msrb.gmra.mxu3 %v4899_v20  ;;  %v4273_v36 = vld [vmem:[#allocation8 + $0x2ec] sm:$0xf]  ;;  %v3703_v39 = vor.u32 %v4367_v33, %v3702_v32  ;;  %v3007_v32 = vor.u32 %v4189_v21, %v3004_v22  ;;  %v3676_v22 = vld [vmem:[#allocation8 + $0x5a4] sm:$0xf0] }
 0x110   :  { %1975 = vmatpush.bf16.msra.mxu3 %v3843_v37  ;;  %1918 = vmatmul.bf16.vlgmr.msrb.gmra.mxu2 %v4897_v15  ;;  %v3340_v37 = vld [vmem:[#allocation8 + $0x304] sm:$0xf0]  ;;  %v4357_v21 = vld [vmem:[#allocation8 + $0x58c] sm:$0xf] }
 0x111   :  { %v3343_v24 = vor.u32 %v4273_v36, %v3340_v37  ;;  %v4238_v36 = vld [vmem:[#allocation8 + $0x1d4] sm:$0xf]  ;;  %v3567_v37 = vor.u32 %v4329_v28, %v3564_v29  ;;  %v3679_v29 = vor.u32 %v4357_v21, %v3676_v22  ;;  %v3206_v21 = vld [vmem:[#allocation8 + $0x1d8] sm:$0xf] }
 0x112   :  { %1941 = vmatpush.bf16.msra.mxu0 %v3031_v45  ;;  %1954 = vmatpush.bf16.msra.mxu1 %v3255_v46  ;;  %v3674_v45 = vld [vmem:[#allocation8 + $0x588] sm:$0xf]  ;;  %v4360_v46 = vld [vmem:[#allocation8 + $0x5a0] sm:$0xf0]  ;;  %v4242_v22 = vld [vmem:[#allocation8 + $0x1f0] sm:$0xf0] }
 0x113   :  { %1963 = vmatpush.bf16.msra.mxu2 %v3591_v49  ;;  %v4266_v49 = vld [vmem:[#allocation8 + $0x2b4] sm:$0xf]  ;;  %v3675_v52 = vor.u32 %v4360_v46, %v3674_v45  ;;  %v3178_v45 = vld [vmem:[#allocation8 + $0x1a0] sm:$0xf]  ;;  %v4235_v46 = vld [vmem:[#allocation8 + $0x1b8] sm:$0xf0] }
 0x114   :  { %1976 = vmatpush.bf16.msra.mxu3 %v3815_v50  ;;  %v3312_v50 = vld [vmem:[#allocation8 + $0x2cc] sm:$0xf0] }
 0x116   :  { %1942 = vmatpush.bf16.msra.mxu0 %v3003_v57  ;;  %1955 = vmatpush.bf16.msra.mxu1 %v3227_v58  ;;  %v3315_v57 = vor.u32 %v4266_v49, %v3312_v50  ;;  %v4353_v58 = vld [vmem:[#allocation8 + $0x568] sm:$0xf0]  ;;  %v2979_v49 = vor.u32 %v4182_v34, %v2976_v35  ;;  %v3648_v35 = vld [vmem:[#allocation8 + $0x56c] sm:$0xf0] }
 0x117   :  { %1964 = vmatpush.bf16.msra.mxu2 %v3563_v62  ;;  %v3284_v62 = vld [vmem:[#allocation8 + $0x294] sm:$0xf0]  ;;  %v3647_v4 = vor.u32 %v4353_v58, %v3646_v55  ;;  %v3179_v55 = vor.u32 %v4235_v46, %v3178_v45 }
 0x118   :  { %1977 = vmatpush.bf16.msra.mxu3 %v3787_v63  ;;  %v4343_v63 = vld [vmem:[#allocation8 + $0x51c] sm:$0xf]  ;;  %v3287_v6 = vor.u32 %v4259_v61, %v3284_v62  ;;  %v3732_v58 = vld [vmem:[#allocation8 + $0x614] sm:$0xf0]  ;;  %v3374_v61 = vld [vmem:[#allocation8 + $0x328] sm:$0xf] }
 0x119   :  { %v4284_v62 = vld [vmem:[#allocation8 + $0x340] sm:$0xf0] }
 0x11a   :  { %1943 = vmatpush.bf16.msra.mxu0 %v2975_v9  ;;  %1956 = vmatpush.bf16.msra.mxu1 %v3199_v10  ;;  %v3623_v9 = vor.u32 %v4343_v63, %v3620_v0  ;;  %v3847_v10 = vor.u32 %v4399_v1, %v3844_v2  ;;  %v3511_v63 = vor.u32 %v4315_v53, %v3508_v54  ;;  %v4308_v1 = vld [vmem:[#allocation8 + $0x404] sm:$0xf]  ;;  %v3480_v2 = vld [vmem:[#allocation8 + $0x41c] sm:$0xf0] }
 0x11b   :  { %1965 = vmatpush.bf16.msra.mxu2 %v3535_v11  ;;  %v4252_v11 = vld [vmem:[#allocation8 + $0x244] sm:$0xf] }
 0x11c   :  { %1978 = vmatpush.bf16.msra.mxu3 %v3759_v12  ;;  %v3256_v12 = vld [vmem:[#allocation8 + $0x25c] sm:$0xf0] }
 0x11d   :  { %1944 = vmatmul.bf16.vlgmr.msra.gmra.mxu0 %v4891_v41  ;;  %1957 = vmatmul.bf16.vlgmr.msra.gmra.mxu1 %v4893_v44  ;;  %v3259_v19 = vor.u32 %v4252_v11, %v3256_v12  ;;  %v3483_v11 = vor.u32 %v4308_v1, %v3480_v2 }
 0x11e   :  { %1988 = vmatpush.bf16.msrb.mxu0 %v3175_v16  ;;  %2001 = vmatpush.bf16.msrb.mxu1 %v3399_v17  ;;  %v4392_v16 = vld [vmem:[#allocation8 + $0x6a4] sm:$0xf]  ;;  %v3816_v17 = vld [vmem:[#allocation8 + $0x6bc] sm:$0xf0] }
 0x11f   :  { %1966 = vmatpush.bf16.msra.mxu2 %v3507_v26  ;;  %v3819_v25 = vor.u32 %v4392_v16, %v3816_v17  ;;  %v4245_v26 = vld [vmem:[#allocation8 + $0x20c] sm:$0xf]  ;;  %v3452_v16 = vld [vmem:[#allocation8 + $0x3e4] sm:$0xf0]  ;;  %v3123_v17 = vor.u32 %v4221_v8, %v3122_v7  ;;  %v3794_v7 = vld [vmem:[#allocation8 + $0x670] sm:$0xf] }
 0x120   :  { %1979 = vmatpush.bf16.msra.mxu3 %v3731_v27  ;;  %v3228_v27 = vld [vmem:[#allocation8 + $0x224] sm:$0xf0]  ;;  %v3455_v28 = vor.u32 %v4301_v14, %v3452_v16  ;;  %v4389_v8 = vld [vmem:[#allocation8 + $0x688] sm:$0xf0]  ;;  %v2982_v14 = vld [vmem:[#allocation8 + $0x18] sm:$0xf] }
 0x121   :  { %v3231_v33 = vor.u32 %v4245_v26, %v3228_v27  ;;  %v3318_v26 = vld [vmem:[#allocation8 + $0x2b8] sm:$0xf]  ;;  %v4270_v27 = vld [vmem:[#allocation8 + $0x2d0] sm:$0xf0] }
 0x122   :  { %1989 = vmatpush.bf16.msrb.mxu0 %v3147_v30  ;;  %2002 = vmatpush.bf16.msrb.mxu1 %v3371_v31  ;;  %v4385_v30 = vld [vmem:[#allocation8 + $0x66c] sm:$0xf]  ;;  %v3788_v31 = vld [vmem:[#allocation8 + $0x684] sm:$0xf0]  ;;  %v3319_v34 = vor.u32 %v4270_v27, %v3318_v26  ;;  %v4186_v16 = vld [vmem:[#allocation8 + $0x30] sm:$0xf0] }
 0x123   :  { %1967 = vmatpush.bf16.msra.mxu2 %v3479_v38  ;;  %v3791_v38 = vor.u32 %v4385_v30, %v3788_v31  ;;  %v4294_v30 = vld [vmem:[#allocation8 + $0x394] sm:$0xf]  ;;  %v3424_v31 = vld [vmem:[#allocation8 + $0x3ac] sm:$0xf0]  ;;  %v3766_v26 = vld [vmem:[#allocation8 + $0x638] sm:$0xf] }
 0x124   :  { %1980 = vmatpush.bf16.msra.mxu3 %v3703_v39  ;;  %v3200_v39 = vld [vmem:[#allocation8 + $0x1ec] sm:$0xf0]  ;;  %v3427_v45 = vor.u32 %v4294_v30, %v3424_v31  ;;  %v4382_v27 = vld [vmem:[#allocation8 + $0x650] sm:$0xf0] }
 0x125   :  { %v3203_v50 = vor.u32 %v4238_v36, %v3200_v39  ;;  %v3066_v36 = vld [vmem:[#allocation8 + $0xc0] sm:$0xf]  ;;  %v4263_v39 = vld [vmem:[#allocation8 + $0x298] sm:$0xf0]  ;;  %v3767_v31 = vor.u32 %v4382_v27, %v3766_v26 }
 0x126   :  { %1990 = vmatpush.bf16.msrb.mxu0 %v3119_v43  ;;  %2003 = vmatpush.bf16.msrb.mxu1 %v3343_v24  ;;  %v4378_v43 = vld [vmem:[#allocation8 + $0x634] sm:$0xf]  ;;  %v3760_v24 = vld [vmem:[#allocation8 + $0x64c] sm:$0xf0]  ;;  %v4406_v27 = vld [vmem:[#allocation11 + $0x10] sm:$0xff] }
 0x127   :  { %1968 = vmatpush.bf16.msra.mxu2 %v3451_v51  ;;  %v3539_v51 = vor.u32 %v4322_v40, %v3536_v42  ;;  %v3626_v40 = vld [vmem:[#allocation8 + $0x520] sm:$0xf]  ;;  %v4347_v42 = vld [vmem:[#allocation8 + $0x538] sm:$0xf0] }
 0x128   :  { %1981 = vmatpush.bf16.msra.mxu3 %v3675_v52  ;;  %v3763_v52 = vor.u32 %v4378_v43, %v3760_v24  ;;  %v3850_v43 = vld [vmem:[#allocation8 + $0x6e0] sm:$0xf]  ;;  %v4403_v24 = vld [vmem:[#allocation8 + $0x6f8] sm:$0xf0]  ;;  %v3627_v53 = vor.u32 %v4347_v42, %v3626_v40 }
 0x129   :  { %v3851_v54 = vor.u32 %v4403_v24, %v3850_v43 }
 0x12a   :  { %1991 = vmatpush.bf16.msrb.mxu0 %v3091_v56  ;;  %2004 = vmatpush.bf16.msrb.mxu1 %v3315_v57  ;;  %v3403_v56 = vor.u32 %v4291_v48, %v3402_v47  ;;  %v4371_v57 = vld [vmem:[#allocation8 + $0x5fc] sm:$0xf] }
 0x12b   :  { %1969 = vmatpush.bf16.msra.mxu2 %v3423_v3  ;;  %v3735_v0 = vor.u32 %v4371_v57, %v3732_v58  ;;  %v3151_v3 = vor.u32 %v4228_v60, %v3150_v59  ;;  %v3598_v57 = vld [vmem:[#allocation8 + $0x4e8] sm:$0xf]  ;;  %v4340_v58 = vld [vmem:[#allocation8 + $0x500] sm:$0xf0] }
 0x12c   :  { %1982 = vmatpush.bf16.msra.mxu3 %v3647_v4  ;;  %v3375_v4 = vor.u32 %v4284_v62, %v3374_v61  ;;  %v3822_v59 = vld [vmem:[#allocation8 + $0x6a8] sm:$0xf]  ;;  %v4396_v60 = vld [vmem:[#allocation8 + $0x6c0] sm:$0xf0]  ;;  %v3599_v1 = vor.u32 %v4340_v58, %v3598_v57  ;;  %v3458_v57 = vld [vmem:[#allocation8 + $0x3d0] sm:$0xf] }
 0x12d   :  { %v3823_v2 = vor.u32 %v4396_v60, %v3822_v59  ;;  %v4305_v59 = vld [vmem:[#allocation8 + $0x3e8] sm:$0xf0]  ;;  %v3682_v60 = vld [vmem:[#allocation8 + $0x590] sm:$0xf] }
 0x12e   :  { %1992 = vmatpush.bf16.msrb.mxu0 %v3063_v5  ;;  %2005 = vmatpush.bf16.msrb.mxu1 %v3287_v6  ;;  %v4364_v5 = vld [vmem:[#allocation8 + $0x5c4] sm:$0xf]  ;;  %v3704_v6 = vld [vmem:[#allocation8 + $0x5dc] sm:$0xf0] }
 0x12f   :  { %2014 = vmatpush.bf16.msrb.mxu2 %v3623_v9  ;;  %1983 = vmatmul.bf16.vlgmr.msra.gmra.mxu3 %v4899_v20  ;;  %v3346_v9 = vld [vmem:[#allocation8 + $0x2f0] sm:$0xf]  ;;  %v3707_v12 = vor.u32 %v4364_v5, %v3704_v6  ;;  %v4333_v6 = vld [vmem:[#allocation8 + $0x4c8] sm:$0xf0] }
 0x130   :  { %2027 = vmatpush.bf16.msrb.mxu3 %v3847_v10  ;;  %1970 = vmatmul.bf16.vlgmr.msra.gmra.mxu2 %v4897_v15  ;;  %v4277_v10 = vld [vmem:[#allocation8 + $0x308] sm:$0xf0]  ;;  %v3570_v5 = vld [vmem:[#allocation8 + $0x4b0] sm:$0xf] }
 0x132   :  { %1993 = vmatpush.bf16.msrb.mxu0 %v3035_v18  ;;  %2006 = vmatpush.bf16.msrb.mxu1 %v3259_v19  ;;  %v3347_v18 = vor.u32 %v4277_v10, %v3346_v9 }
 0x133   :  { %2015 = vmatpush.bf16.msrb.mxu2 %v3595_v23  ;;  %v3094_v23 = vld [vmem:[#allocation8 + $0xf8] sm:$0xf] }
 0x134   :  { %2028 = vmatpush.bf16.msrb.mxu3 %v3819_v25  ;;  %v4214_v25 = vld [vmem:[#allocation8 + $0x110] sm:$0xf0] }
 0x136   :  { %1994 = vmatpush.bf16.msrb.mxu0 %v3007_v32  ;;  %2007 = vmatpush.bf16.msrb.mxu1 %v3231_v33  ;;  %v4350_v32 = vld [vmem:[#allocation8 + $0x554] sm:$0xf]  ;;  %v3095_v33 = vor.u32 %v4214_v25, %v3094_v23  ;;  %v3542_v23 = vld [vmem:[#allocation8 + $0x478] sm:$0xf] }
 0x137   :  { %2016 = vmatpush.bf16.msrb.mxu2 %v3567_v37  ;;  %v4207_v37 = vld [vmem:[#allocation8 + $0xd8] sm:$0xf0]  ;;  %v3651_v46 = vor.u32 %v4350_v32, %v3648_v35  ;;  %v4326_v25 = vld [vmem:[#allocation8 + $0x490] sm:$0xf0]  ;;  %v4411_v32 = vld [vmem:[#allocation11 + $0x38] sm:$0xff] }
 0x138   :  { %2029 = vmatpush.bf16.msrb.mxu3 %v3791_v38  ;;  %v3290_v38 = vld [vmem:[#allocation8 + $0x280] sm:$0xf]  ;;  %v3067_v48 = vor.u32 %v4207_v37, %v3066_v36  ;;  %v3543_v30 = vor.u32 %v4326_v25, %v3542_v23  ;;  %v4319_v37 = vld [vmem:[#allocation8 + $0x458] sm:$0xf0] }
 0x139   :  { %v4921_v13 = vpop.f32.mrf.mxu0  ;;  %v3514_v35 = vld [vmem:[#allocation8 + $0x440] sm:$0xf] }
 0x13a   :  { %1995 = vmatpush.bf16.msrb.mxu0 %v2979_v49  ;;  %2008 = vmatpush.bf16.msrb.mxu1 %v3203_v50  ;;  %v4923_v19 = vpop.f32.mrf.mxu1  ;;  %v3291_v49 = vor.u32 %v4263_v39, %v3290_v38  ;;  %v3738_v38 = vld [vmem:[#allocation8 + $0x600] sm:$0xf]  ;;  %v4375_v39 = vld [vmem:[#allocation8 + $0x618] sm:$0xf0]  ;;  %v3515_v43 = vor.u32 %v4319_v37, %v3514_v35 }
 0x13b   :  { %2017 = vmatpush.bf16.msrb.mxu2 %v3539_v51  ;;  %v3038_v51 = vld [vmem:[#allocation8 + $0x88] sm:$0xf]  ;;  %v3739_v24 = vor.u32 %v4375_v39, %v3738_v38  ;;  %v4435_v23 = vld [vmem:[#allocation11 + $0xf8] sm:$0xff]  ;;  %v4433_v39 = vld [vmem:[#allocation11 + $0xe8] sm:$0xff] }
 0x13c   :  { %2030 = vmatpush.bf16.msrb.mxu3 %v3763_v52  ;;  %v4200_v52 = vld [vmem:[#allocation8 + $0xa0] sm:$0xf0] }
 0x13d   :  { %1996 = vmatmul.bf16.vlgmr.msrb.gmra.mxu0 %v4891_v41  ;;  %2009 = vmatmul.bf16.vlgmr.msrb.gmra.mxu1 %v4893_v44  ;;  %v3039_v61 = vor.u32 %v4200_v52, %v3038_v51  ;;  %v4937_v51 = vld [vmem:[#allocation10] sm:$0xff] }
 0x13e   :  { %2040 = vmatpush.bf16.msra.mxu0 %v3179_v55  ;;  %2053 = vmatpush.bf16.msra.mxu1 %v3403_v56  ;;  %v3262_v55 = vld [vmem:[#allocation8 + $0x248] sm:$0xf]  ;;  %v4256_v56 = vld [vmem:[#allocation8 + $0x260] sm:$0xf0] }
 0x13f   :  { %2018 = vmatpush.bf16.msrb.mxu2 %v3511_v63  ;;  %v3263_v62 = vor.u32 %v4256_v56, %v3262_v55  ;;  %v3010_v63 = vld [vmem:[#allocation8 + $0x50] sm:$0xf] }
 0x140   :  { %2031 = vmatpush.bf16.msrb.mxu3 %v3735_v0  ;;  %v4193_v0 = vld [vmem:[#allocation8 + $0x68] sm:$0xf0]  ;;  %v4417_v55 = vld [vmem:[#allocation11 + $0x68] sm:$0xff] }
 0x141   :  { %v1739_v47 = vpop.f32.mrf.mxu0  ;;  %v3011_v10 = vor.u32 %v4193_v0, %v3010_v63 }
 0x142   :  { %2041 = vmatpush.bf16.msra.mxu0 %v3151_v3  ;;  %2054 = vmatpush.bf16.msra.mxu1 %v3375_v4  ;;  %v1752_v50 = vpop.f32.mrf.mxu1  ;;  %v3234_v3 = vld [vmem:[#allocation8 + $0x210] sm:$0xf]  ;;  %v4249_v4 = vld [vmem:[#allocation8 + $0x228] sm:$0xf0]  ;;  %v3486_v47 = vld [vmem:[#allocation8 + $0x408] sm:$0xf] }
 0x143   :  { %2019 = vmatpush.bf16.msrb.mxu2 %v3483_v11  ;;  %v3235_v11 = vor.u32 %v4249_v4, %v3234_v3  ;;  %v4368_v50 = vld [vmem:[#allocation8 + $0x5e0] sm:$0xf0]  ;;  %v4416_v3 = vld [vmem:[#allocation11 + $0x60] sm:$0xff]  ;;  %v3430_v4 = vld [vmem:[#allocation8 + $0x398] sm:$0xf] }
 0x144   :  { %2032 = vmatpush.bf16.msrb.mxu3 %v3707_v12 }
 0x146   :  { %2042 = vmatpush.bf16.msra.mxu0 %v3123_v17  ;;  %2055 = vmatpush.bf16.msra.mxu1 %v3347_v18  ;;  %v3571_v17 = vor.u32 %v4333_v6, %v3570_v5  ;;  %v3795_v18 = vor.u32 %v4389_v8, %v3794_v7  ;;  %v4298_v5 = vld [vmem:[#allocation8 + $0x3b0] sm:$0xf0]  ;;  %v3654_v6 = vld [vmem:[#allocation8 + $0x558] sm:$0xf] }
 0x147   :  { %2020 = vmatpush.bf16.msrb.mxu2 %v3455_v28  ;;  %v2983_v28 = vor.u32 %v4186_v16, %v2982_v14  ;;  %v4354_v7 = vld [vmem:[#allocation8 + $0x570] sm:$0xf0]  ;;  %v4407_v16 = vld [vmem:[#allocation11 + $0x18] sm:$0xff] }
 0x148   :  { %2033 = vmatpush.bf16.msrb.mxu3 %v3679_v29  ;;  %v3207_v29 = vor.u32 %v4242_v22, %v3206_v21  ;;  %v3655_v14 = vor.u32 %v4354_v7, %v3654_v6  ;;  %v4427_v22 = vld [vmem:[#allocation11 + $0xb8] sm:$0xff]  ;;  %v4440_v7 = vld [vmem:[#allocation11 + $0x120] sm:$0xff] }
 0x149   :  { %v4927_v9 = vpop.f32.mrf.mxu0 }
 0x14a   :  { %2043 = vmatpush.bf16.msra.mxu0 %v3095_v33  ;;  %2056 = vmatpush.bf16.msra.mxu1 %v3319_v34  ;;  %v4929_v12 = vpop.f32.mrf.mxu1  ;;  %v4419_v33 = vld [vmem:[#allocation11 + $0x78] sm:$0xff] }
 0x14b   :  { %2021 = vmatpush.bf16.msrb.mxu2 %v3427_v45  ;;  %v4410_v45 = vld [vmem:[#allocation11 + $0x30] sm:$0xff] }
 0x14c   :  { %2034 = vmatpush.bf16.msrb.mxu3 %v3651_v46  ;;  %v4418_v46 = vld [vmem:[#allocation11 + $0x70] sm:$0xff] }
 0x14e   :  { %2044 = vmatpush.bf16.msra.mxu0 %v3067_v48  ;;  %2057 = vmatpush.bf16.msra.mxu1 %v3291_v49  ;;  %v4312_v48 = vld [vmem:[#allocation8 + $0x420] sm:$0xf0]  ;;  %v3710_v49 = vld [vmem:[#allocation8 + $0x5c8] sm:$0xf] }
 0x14f   :  { %2066 = vmatpush.bf16.msra.mxu2 %v3627_v53  ;;  %2035 = vmatmul.bf16.vlgmr.msrb.gmra.mxu3 %v4899_v20  ;;  %v4931_v34 = vpop.f32.mrf.mxu2  ;;  %v3487_v52 = vor.u32 %v4312_v48, %v3486_v47  ;;  %v3711_v53 = vor.u32 %v4368_v50, %v3710_v49  ;;  %v4423_v48 = vld [vmem:[#allocation11 + $0x98] sm:$0xff] }
 0x150   :  { %2079 = vmatpush.bf16.msra.mxu3 %v3851_v54  ;;  %2022 = vmatmul.bf16.vlgmr.msrb.gmra.mxu2 %v4897_v15  ;;  %v4933_v36 = vpop.f32.mrf.mxu3  ;;  %v4409_v54 = vld [vmem:[#allocation11 + $0x28] sm:$0xff] }
 0x151   :  { %v1791_v40 = vpop.f32.mrf.mxu0 }
 0x152   :  { %2045 = vmatpush.bf16.msra.mxu0 %v3039_v61  ;;  %2058 = vmatpush.bf16.msra.mxu1 %v3263_v62  ;;  %v1804_v42 = vpop.f32.mrf.mxu1  ;;  %v4361_v61 = vld [vmem:[#allocation8 + $0x5a8] sm:$0xf0]  ;;  %v3459_v62 = vor.u32 %v4305_v59, %v3458_v57  ;;  %v564_v40 = vperm.slane %v4937_v51, 2  ;;  %v4443_v59 = vld [vmem:[#allocation11 + $0x138] sm:$0xff] }
 0x153   :  { %2067 = vmatpush.bf16.msra.mxu2 %v3599_v1  ;;  %v3683_v63 = vor.u32 %v4361_v61, %v3682_v60  ;;  %v4412_v42 = vld [vmem:[#allocation11 + $0x40] sm:$0xff]  ;;  %v4421_v60 = vld [vmem:[#allocation11 + $0x88] sm:$0xff] }
 0x154   :  { %2080 = vmatpush.bf16.msra.mxu3 %v3823_v2  ;;  %v4408_v2 = vld [vmem:[#allocation11 + $0x20] sm:$0xff] }
 0x156   :  { %2046 = vmatpush.bf16.msra.mxu0 %v3011_v10  ;;  %2059 = vmatpush.bf16.msra.mxu1 %v3235_v11  ;;  %v3431_v11 = vor.u32 %v4298_v5, %v3430_v4 }
 0x157   :  { %2068 = vmatpush.bf16.msra.mxu2 %v3571_v17  ;;  %v1765_v56 = vpop.f32.mrf.mxu2  ;;  %v4415_v17 = vld [vmem:[#allocation11 + $0x58] sm:$0xff] }
 0x158   :  { %2081 = vmatpush.bf16.msra.mxu3 %v3795_v18  ;;  %v1778_v58 = vpop.f32.mrf.mxu3 }
 0x15a   :  { %2047 = vmatpush.bf16.msra.mxu0 %v2983_v28  ;;  %2060 = vmatpush.bf16.msra.mxu1 %v3207_v29  ;;  %v4941_v0 = vpop.f32.mrf.mxu0  ;;  %v4414_v28 = vld [vmem:[#allocation11 + $0x50] sm:$0xff] }
 0x15b   :  { %2069 = vmatpush.bf16.msra.mxu2 %v3543_v30 }
 0x15c   :  { %2082 = vmatpush.bf16.msra.mxu3 %v3767_v31  ;;  %v4943_v1 = vpop.f32.mrf.mxu1  ;;  %v4426_v31 = vld [vmem:[#allocation11 + $0xb0] sm:$0xff] }
 0x15d   :  { %2048 = vmatmul.bf16.vlgmr.msra.gmra.mxu0 %v4891_v41  ;;  %2061 = vmatmul.bf16.vlgmr.msra.gmra.mxu1 %v4893_v44  ;;  %v562_v41 = vperm.slane %v4937_v51, 0  ;;  %v563_v44 = vperm.slane %v4937_v51, 1 }
 0x15e   :  { %2558 = vmatpush.bf16.msrb.mxu0 %v4411_v32  ;;  %2571 = vmatpush.bf16.msrb.mxu1 %v4419_v33  ;;  %v4434_v32 = vld [vmem:[#allocation11 + $0xf0] sm:$0xff] }
 0x15f   :  { %2070 = vmatpush.bf16.msra.mxu2 %v3515_v43  ;;  %v1738_v8 = vadd.f32 %v4921_v13, %v562_v41  ;;  %v1790_v10 = vadd.f32 %v4927_v9, %v563_v44  ;;  %v1815_v18 = vpop.f32.mrf.mxu2  ;;  %v4429_v44 = vld [vmem:[#allocation11 + $0xc8] sm:$0xff] }
 0x160   :  { %2083 = vmatpush.bf16.msra.mxu3 %v3739_v24  ;;  %v1828_v21 = vpop.f32.mrf.mxu3  ;;  %v4424_v24 = vld [vmem:[#allocation11 + $0xa0] sm:$0xff] }
 0x161   :  { %v1751_v25 = vadd.f32 %v4923_v19, %v1738_v8  ;;  %v1803_v26 = vadd.f32 %v4929_v12, %v1790_v10  ;;  %v4405_v19 = vld [vmem:[#allocation11 + $0x8] sm:$0xff]  ;;  %v565_v8 = vperm.slane %v4937_v51, 3  ;;  %v4439_v10 = vld [vmem:[#allocation11 + $0x118] sm:$0xff] }
 0x162   :  { %2559 = vmatpush.bf16.msrb.mxu0 %v4410_v45  ;;  %2572 = vmatpush.bf16.msrb.mxu1 %v4418_v46  ;;  %v1843_v13 = vpop.f32.mrf.mxu0  ;;  %v4413_v12 = vld [vmem:[#allocation11 + $0x48] sm:$0xff]  ;;  %v4432_v45 = vld [vmem:[#allocation11 + $0xe0] sm:$0xff]  ;;  %v1842_v46 = vadd.f32 %v4941_v0, %v564_v40 }
 0x163   :  { %2071 = vmatpush.bf16.msra.mxu2 %v3487_v52  ;;  %v1764_v29 = vadd.f32 %v4931_v34, %v1751_v25  ;;  %v1816_v30 = vadd.f32 %v1815_v18, %v1803_v26  ;;  %v4425_v34 = vld [vmem:[#allocation11 + $0xa8] sm:$0xff]  ;;  %v4431_v52 = vld [vmem:[#allocation11 + $0xd8] sm:$0xff]  ;;  %v4420_v0 = vld [vmem:[#allocation11 + $0x80] sm:$0xff] }
 0x164   :  { %2084 = vmatpush.bf16.msra.mxu3 %v3711_v53  ;;  %v1856_v9 = vpop.f32.mrf.mxu1  ;;  %v1855_v53 = vadd.f32 %v4943_v1, %v1842_v46  ;;  %v4428_v1 = vld [vmem:[#allocation11 + $0xc0] sm:$0xff]  ;;  %v4451_v13 = vld [vmem:[#allocation11 + $0x178] sm:$0xff] }
 0x165   :  { %v1777_v37 = vadd.f32 %v4933_v36, %v1764_v29  ;;  %v1829_v38 = vadd.f32 %v1828_v21, %v1816_v30  ;;  %v4436_v26 = vld [vmem:[#allocation11 + $0x100] sm:$0xff]  ;;  %v4459_v46 = vld [vmem:[#allocation11 + $0x1b8] sm:$0xff] }
 0x166   :  { %2560 = vmatpush.bf16.msrb.mxu0 %v4409_v54  ;;  %2573 = vmatpush.bf16.msrb.mxu1 %v4417_v55  ;;  %v4422_v54 = vld [vmem:[#allocation11 + $0x90] sm:$0xff] }
 0x167   :  { %2072 = vmatpush.bf16.msra.mxu2 %v3459_v62  ;;  %v1817_v33 = vpop.f32.mrf.mxu2  ;;  %v2093_v43 = vmax.f32 %v1829_v38, 0.0  ;;  %v4430_v55 = vld [vmem:[#allocation11 + $0xd0] sm:$0xff] }
 0x168   :  { %2085 = vmatpush.bf16.msra.mxu3 %v3683_v63  ;;  %v1830_v35 = vpop.f32.mrf.mxu3  ;;  %v4442_v63 = vld [vmem:[#allocation11 + $0x130] sm:$0xff]  ;;  %v4448_v33 = vld [vmem:[#allocation11 + $0x160] sm:$0xff] }
 0x169   :  { %v2213_v47 = vpack.c.bf16 %v2093_v43, %v2093_v43  ;;  %v4447_v35 = vld [vmem:[#allocation11 + $0x158] sm:$0xff]  ;;  %v4446_v38 = vld [vmem:[#allocation11 + $0x150] sm:$0xff] }
 0x16a   :  { %2561 = vmatpush.bf16.msrb.mxu0 %v4408_v2  ;;  %2574 = vmatpush.bf16.msrb.mxu1 %v4416_v3  ;;  %v4441_v3 = vld [vmem:[#allocation11 + $0x128] sm:$0xff] }
 0x16b   :  { %2073 = vmatpush.bf16.msra.mxu2 %v3431_v11 }
 0x16c   :  { %2086 = vmatpush.bf16.msra.mxu3 %v3655_v14  ;;  %v4438_v14 = vld [vmem:[#allocation11 + $0x110] sm:$0xff] }
 0x16e   :  { %2562 = vmatpush.bf16.msrb.mxu0 %v4407_v16  ;;  %2575 = vmatpush.bf16.msrb.mxu1 %v4415_v17 }
 0x16f   :  { %2584 = vmatpush.bf16.msrb.mxu2 %v4427_v22  ;;  %2087 = vmatmul.bf16.vlgmr.msra.gmra.mxu3 %v4899_v20  ;;  %v2092_v20 = vmax.f32 %v1777_v37, 0.0  ;;  %v4437_v22 = vld [vmem:[#allocation11 + $0x108] sm:$0xff]  ;;  %v566_v37 = vperm.slane %v4937_v51, 4 }
 0x170   :  { %2597 = vmatpush.bf16.msrb.mxu3 %v4435_v23  ;;  %2074 = vmatmul.bf16.vlgmr.msra.gmra.mxu2 %v4897_v15  ;;  %v4404_v15 = vld [vmem:[#allocation11] sm:$0xff] }
 0x171   :  { %v2212_v36 = vpack.c.bf16 %v2092_v20, %v2092_v20 }
 0x172   :  { %2563 = vmatpush.bf16.msrb.mxu0 %v4406_v27  ;;  %2576 = vmatpush.bf16.msrb.mxu1 %v4414_v28  ;;  %v1880_v50 = vpop.f32.mrf.mxu3 }
 0x173   :  { %2585 = vmatpush.bf16.msrb.mxu2 %v4426_v31  ;;  %v1867_v49 = vpop.f32.mrf.mxu2  ;;  %v4450_v31 = vld [vmem:[#allocation11 + $0x170] sm:$0xff] }
 0x174   :  { %2598 = vmatpush.bf16.msrb.mxu3 %v4434_v32  ;;  %v1868_v56 = vadd.f32 %v1867_v49, %v1855_v53  ;;  %v4449_v32 = vld [vmem:[#allocation11 + $0x168] sm:$0xff] }
 0x175   :  { %v4457_v53 = vld [vmem:[#allocation11 + $0x1a8] sm:$0xff] }
 0x176   :  { %2564 = vmatpush.bf16.msrb.mxu0 %v4405_v19  ;;  %2577 = vmatpush.bf16.msrb.mxu1 %v4413_v12  ;;  %v1881_v62 = vadd.f32 %v1880_v50, %v1868_v56  ;;  %v4456_v56 = vld [vmem:[#allocation11 + $0x1a0] sm:$0xff] }
 0x177   :  { %2586 = vmatpush.bf16.msrb.mxu2 %v4425_v34 }
 0x178   :  { %2599 = vmatpush.bf16.msrb.mxu3 %v4433_v39  ;;  %v2094_v2 = vmax.f32 %v1881_v62, 0.0 }
 0x17a   :  { %2565 = vmatpush.bf16.msrb.mxu0 %v4404_v15  ;;  %2578 = vmatpush.bf16.msrb.mxu1 %v4412_v42  ;;  %v1893_v57 = vpop.f32.mrf.mxu0  ;;  %v1906_v58 = vpop.f32.mrf.mxu1  ;;  %v2214_v6 = vpack.c.bf16 %v2094_v2, %v2094_v2  ;;  %v4445_v42 = vld [vmem:[#allocation11 + $0x148] sm:$0xff] }
 0x17b   :  { %2587 = vmatpush.bf16.msrb.mxu2 %v4424_v24  ;;  %v1869_v61 = vpop.f32.mrf.mxu2  ;;  %v1882_v41 = vpop.f32.mrf.mxu3  ;;  %v1894_v11 = vadd.f32 %v1893_v57, %v565_v8  ;;  %v4444_v24 = vld [vmem:[#allocation11 + $0x140] sm:$0xff]  ;;  %v4455_v57 = vld [vmem:[#allocation11 + $0x198] sm:$0xff] }
 0x17c   :  { %2600 = vmatpush.bf16.msrb.mxu3 %v4432_v45  ;;  %v4453_v41 = vld [vmem:[#allocation11 + $0x188] sm:$0xff] }
 0x17d   :  { %2566 = vmatmul.bf16.vlgmr.msrb.gmra.mxu0 %v2212_v36  ;;  %2579 = vmatmul.bf16.vlgmr.msrb.gmra.mxu1 %v2213_v47  ;;  %v1907_v16 = vadd.f32 %v1906_v58, %v1894_v11  ;;  %v567_v58 = vperm.slane %v4937_v51, 5  ;;  %v568_v11 = vperm.slane %v4937_v51, 6 }
 0x17e   :  { %2610 = vmatpush.bf16.msra.mxu0 %v4443_v59  ;;  %2623 = vmatpush.bf16.msra.mxu1 %v4451_v13  ;;  %v4454_v59 = vld [vmem:[#allocation11 + $0x190] sm:$0xff] }
 0x17f   :  { %2588 = vmatpush.bf16.msrb.mxu2 %v4423_v48 }
 0x180   :  { %2601 = vmatpush.bf16.msrb.mxu3 %v4431_v52  ;;  %v4458_v52 = vld [vmem:[#allocation11 + $0x1b0] sm:$0xff] }
 0x182   :  { %2611 = vmatpush.bf16.msra.mxu0 %v4442_v63  ;;  %v1895_v4 = vpop.f32.mrf.mxu0  ;;  %v1908_v5 = vpop.f32.mrf.mxu1  ;;  %2624 = vmatpush.bf16.msra.mxu1 %v4450_v31 }
 0x183   :  { %2589 = vmatpush.bf16.msrb.mxu2 %v4422_v54 }
 0x184   :  { %2602 = vmatpush.bf16.msrb.mxu3 %v4430_v55 }
 0x186   :  { %2612 = vmatpush.bf16.msra.mxu0 %v4441_v3  ;;  %2625 = vmatpush.bf16.msra.mxu1 %v4449_v32 }
 0x187   :  { %2590 = vmatpush.bf16.msrb.mxu2 %v4421_v60 }
 0x188   :  { %2603 = vmatpush.bf16.msrb.mxu3 %v4429_v44 }
 0x18a   :  { %2613 = vmatpush.bf16.msra.mxu0 %v4440_v7  ;;  %2626 = vmatpush.bf16.msra.mxu1 %v4448_v33 }
 0x18b   :  { %2591 = vmatpush.bf16.msrb.mxu2 %v4420_v0 }
 0x18c   :  { %2604 = vmatpush.bf16.msrb.mxu3 %v4428_v1  ;;  %v4452_v1 = vld [vmem:[#allocation11 + $0x180] sm:$0xff] }
 0x18e   :  { %2592 = vmatmul.bf16.vlgmr.msrb.gmra.mxu2 %v2214_v6  ;;  %2614 = vmatpush.bf16.msra.mxu0 %v4439_v10 }
 0x18f   :  { %2627 = vmatpush.bf16.msra.mxu1 %v4447_v35  ;;  %2636 = vmatpush.bf16.msra.mxu2 %v4459_v46  ;;  %v4460_v46 = vld [vmem:[#allocation13] sm:$0xff] }
 0x192   :  { %2615 = vmatpush.bf16.msra.mxu0 %v4438_v14  ;;  %v1932_v18 = vpop.f32.mrf.mxu3 }
 0x193   :  { %v1919_v17 = vpop.f32.mrf.mxu2  ;;  %2628 = vmatpush.bf16.msra.mxu1 %v4446_v38  ;;  %2637 = vmatpush.bf16.msra.mxu2 %v4458_v52  ;;  %v4471_v52 = vld [vmem:[#allocation14 + $0x18] sm:$0xff] }
 0x194   :  { %v1920_v21 = vadd.f32 %v1919_v17, %v1907_v16 }
 0x196   :  { %v1933_v23 = vadd.f32 %v1932_v18, %v1920_v21  ;;  %2616 = vmatpush.bf16.msra.mxu0 %v4437_v22 }
 0x197   :  { %2629 = vmatpush.bf16.msra.mxu1 %v4445_v42  ;;  %2638 = vmatpush.bf16.msra.mxu2 %v4457_v53  ;;  %v4464_v42 = vld [vmem:[#allocation13 + $0x20] sm:$0xff]  ;;  %v4470_v53 = vld [vmem:[#allocation14 + $0x10] sm:$0xff] }
 0x198   :  { %v2095_v25 = vmax.f32 %v1933_v23, 0.0  ;;  %v4500_v23 = vld [vmem:[%s4981_s6] ss:$0 sm:$0xff] }
 0x19a   :  { %v2215_v9 = vpack.c.bf16 %v2095_v25, %v2095_v25  ;;  %v1945_v27 = vpop.f32.mrf.mxu0  ;;  %v1958_v28 = vpop.f32.mrf.mxu1  ;;  %2617 = vmatpush.bf16.msra.mxu0 %v4436_v26 }
 0x19b   :  { %v1921_v29 = vpop.f32.mrf.mxu2  ;;  %v1934_v30 = vpop.f32.mrf.mxu3  ;;  %v1946_v34 = vadd.f32 %v1945_v27, %v566_v37  ;;  %2630 = vmatpush.bf16.msra.mxu1 %v4444_v24  ;;  %2639 = vmatpush.bf16.msra.mxu2 %v4456_v56 }
 0x19c   :  { %2605 = vmatmul.bf16.vlgmr.msrb.gmra.mxu3 %v2215_v9 }
 0x19d   :  { %v1959_v39 = vadd.f32 %v1958_v28, %v1946_v34  ;;  %v4467_v34 = vld [vmem:[#allocation13 + $0x38] sm:$0xff] }
 0x19e   :  { %2719 = vmatpush.bf16.msra.mxu3 %v4467_v34 }
 0x19f   :  { %2640 = vmatpush.bf16.msra.mxu2 %v4455_v57 }
 0x1a2   :  { %v1947_v19 = vpop.f32.mrf.mxu0  ;;  %v1960_v12 = vpop.f32.mrf.mxu1 }
 0x1a3   :  { %2641 = vmatpush.bf16.msra.mxu2 %v4454_v59 }
 0x1a7   :  { %2642 = vmatpush.bf16.msra.mxu2 %v4453_v41  ;;  %v4468_v41 = vld [vmem:[#allocation14] sm:$0xff] }
 0x1ab   :  { %2643 = vmatpush.bf16.msra.mxu2 %v4452_v1  ;;  %v4479_v1 = vld [vmem:[#allocation16 + $0x18] sm:$0xff] }
 0x1b2   :  { %v1984_v15 = vpop.f32.mrf.mxu3 }
 0x1b3   :  { %v1971_v40 = vpop.f32.mrf.mxu2 }
 0x1b4   :  { %v1972_v20 = vadd.f32 %v1971_v40, %v1959_v39  ;;  %v4466_v40 = vld [vmem:[#allocation13 + $0x30] sm:$0xff] }
 0x1b5   :  { %2720 = vmatpush.bf16.msra.mxu3 %v4466_v40 }
 0x1b6   :  { %v1985_v43 = vadd.f32 %v1984_v15, %v1972_v20  ;;  %v4465_v15 = vld [vmem:[#allocation13 + $0x28] sm:$0xff]  ;;  %v4463_v20 = vld [vmem:[#allocation13 + $0x18] sm:$0xff] }
 0x1b8   :  { %v2096_v45 = vmax.f32 %v1985_v43, 0.0  ;;  %v4462_v43 = vld [vmem:[#allocation13 + $0x10] sm:$0xff] }
 0x1b9   :  { %2721 = vmatpush.bf16.msra.mxu3 %v4465_v15 }
 0x1ba   :  { %v2216_v36 = vpack.c.bf16 %v2096_v45, %v2096_v45  ;;  %v1997_v47 = vpop.f32.mrf.mxu0  ;;  %v2010_v48 = vpop.f32.mrf.mxu1  ;;  %v4461_v45 = vld [vmem:[#allocation13 + $0x8] sm:$0xff] }
 0x1bb   :  { %v1973_v49 = vpop.f32.mrf.mxu2  ;;  %v1986_v50 = vpop.f32.mrf.mxu3  ;;  %v1998_v60 = vadd.f32 %v1997_v47, %v567_v58  ;;  %v4475_v47 = vld [vmem:[#allocation14 + $0x38] sm:$0xff] }
 0x1bc   :  { %2618 = vmatmul.bf16.vlgmr.msra.gmra.mxu0 %v2216_v36  ;;  %v4473_v49 = vld [vmem:[#allocation14 + $0x28] sm:$0xff]  ;;  %v4472_v50 = vld [vmem:[#allocation14 + $0x20] sm:$0xff] }
 0x1bd   :  { %v2011_v61 = vadd.f32 %v2010_v48, %v1998_v60  ;;  %2722 = vmatpush.bf16.msra.mxu3 %v4464_v42  ;;  %2802 = vmatpush.bf16.msrb.mxu0 %v4475_v47  ;;  %v4474_v48 = vld [vmem:[#allocation14 + $0x30] sm:$0xff] }
 0x1c1   :  { %2723 = vmatpush.bf16.msra.mxu3 %v4463_v20  ;;  %2803 = vmatpush.bf16.msrb.mxu0 %v4474_v48 }
 0x1c2   :  { %v1999_v54 = vpop.f32.mrf.mxu0  ;;  %v2012_v55 = vpop.f32.mrf.mxu1 }
 0x1c5   :  { %2724 = vmatpush.bf16.msra.mxu3 %v4462_v43  ;;  %2804 = vmatpush.bf16.msrb.mxu0 %v4473_v49 }
 0x1c9   :  { %2725 = vmatpush.bf16.msra.mxu3 %v4461_v45  ;;  %2805 = vmatpush.bf16.msrb.mxu0 %v4472_v50 }
 0x1cd   :  { %2726 = vmatpush.bf16.msra.mxu3 %v4460_v46  ;;  %2806 = vmatpush.bf16.msrb.mxu0 %v4471_v52 }
 0x1d1   :  { %2807 = vmatpush.bf16.msrb.mxu0 %v4470_v53 }
 0x1d2   :  { %v2036_v62 = vpop.f32.mrf.mxu3 }
 0x1d3   :  { %v2023_v44 = vpop.f32.mrf.mxu2 }
 0x1d4   :  { %v2024_v63 = vadd.f32 %v2023_v44, %v2011_v61  ;;  %v4469_v61 = vld [vmem:[#allocation14 + $0x8] sm:$0xff]  ;;  %v4483_v44 = vld [vmem:[#allocation16 + $0x38] sm:$0xff] }
 0x1d5   :  { %2808 = vmatpush.bf16.msrb.mxu0 %v4469_v61  ;;  %2885 = vmatpush.bf16.msrb.mxu1 %v4483_v44 }
 0x1d6   :  { %v2037_v0 = vadd.f32 %v2036_v62, %v2024_v63  ;;  %v4482_v62 = vld [vmem:[#allocation16 + $0x30] sm:$0xff]  ;;  %v4481_v63 = vld [vmem:[#allocation16 + $0x28] sm:$0xff] }
 0x1d8   :  { %v2097_v2 = vmax.f32 %v2037_v0, 0.0  ;;  %v4480_v0 = vld [vmem:[#allocation16 + $0x20] sm:$0xff] }
 0x1d9   :  { %2809 = vmatpush.bf16.msrb.mxu0 %v4468_v41  ;;  %2886 = vmatpush.bf16.msrb.mxu1 %v4482_v62 }
 0x1da   :  { %v2217_v3 = vpack.c.bf16 %v2097_v2, %v2097_v2  ;;  %v2049_v4 = vpop.f32.mrf.mxu0  ;;  %v2062_v5 = vpop.f32.mrf.mxu1  ;;  %v4478_v2 = vld [vmem:[#allocation16 + $0x10] sm:$0xff] }
 0x1db   :  { %v2025_v6 = vpop.f32.mrf.mxu2  ;;  %v2038_v7 = vpop.f32.mrf.mxu3  ;;  %v2050_v14 = vadd.f32 %v2049_v4, %v568_v11  ;;  %v4476_v11 = vld [vmem:[#allocation16] sm:$0xff] }
 0x1dc   :  { %2631 = vmatmul.bf16.vlgmr.msra.gmra.mxu1 %v2217_v3  ;;  %v4501_v3 = vld [vmem:[%s4983_s8] ss:$0 sm:$0xff] }
 0x1dd   :  { %v2063_v16 = vadd.f32 %v2062_v5, %v2050_v14  ;;  %2887 = vmatpush.bf16.msrb.mxu1 %v4481_v63  ;;  %v4502_v14 = vld [vmem:[%s4985_s10] ss:$0 sm:$0xff] }
 0x1e1   :  { %2888 = vmatpush.bf16.msrb.mxu1 %v4480_v0 }
 0x1e2   :  { %v2051_v8 = vpop.f32.mrf.mxu0  ;;  %v2064_v10 = vpop.f32.mrf.mxu1 }
 0x1e3   :  { %v4477_v10 = vld [vmem:[#allocation16 + $0x8] sm:$0xff] }
 0x1e5   :  { %2889 = vmatpush.bf16.msrb.mxu1 %v4479_v1 }
 0x1e9   :  { %2890 = vmatpush.bf16.msrb.mxu1 %v4478_v2 }
 0x1ed   :  { %2891 = vmatpush.bf16.msrb.mxu1 %v4477_v10 }
 0x1f1   :  { %2892 = vmatpush.bf16.msrb.mxu1 %v4476_v11 }
 0x1f2   :  { %v2088_v18 = vpop.f32.mrf.mxu3 }
 0x1f3   :  { %v2075_v17 = vpop.f32.mrf.mxu2 }
 0x1f4   :  { %v2076_v21 = vadd.f32 %v2075_v17, %v2063_v16 }
 0x1f6   :  { %v2089_v22 = vadd.f32 %v2088_v18, %v2076_v21 }
 0x1f8   :  { %v2098_v25 = vmax.f32 %v2089_v22, 0.0 }
 0x1fa   :  { %v2218_v26 = vpack.c.bf16 %v2098_v25, %v2098_v25  ;;  %v2567_v13 = vpop.f32.mrf.mxu0  ;;  %v2580_v9 = vpop.f32.mrf.mxu1 }
 0x1fb   :  { %v2568_v27 = vadd.f32 %v4500_v23, %v2567_v13  ;;  %v2077_v28 = vpop.f32.mrf.mxu2  ;;  %v2090_v29 = vpop.f32.mrf.mxu3  ;;  %v4503_v23 = vld [vmem:[%s4987_s12] ss:$0 sm:$0xff] }
 0x1fc   :  { %2644 = vmatmul.bf16.vlgmr.msra.gmra.mxu2 %v2218_v26 }
 0x1fd   :  { %v2581_v30 = vadd.f32 %v2580_v9, %v2568_v27 }
 0x202   :  { %v2569_v51 = vpop.f32.mrf.mxu0  ;;  %v2582_v31 = vpop.f32.mrf.mxu1 }
 0x211   :  { %v2593_v32 = vpop.f32.mrf.mxu2 }
 0x212   :  { %v2594_v19 = vadd.f32 %v2593_v32, %v2581_v30 }
 0x219   :  { %v2595_v12 = vpop.f32.mrf.mxu2 }
 0x21f   :  { %v2606_v33 = vpop.f32.mrf.mxu3 }
 0x220   :  { %v2607_v35 = vadd.f32 %v2606_v33, %v2594_v19 }
 0x227   :  { %v2608_v37 = vpop.f32.mrf.mxu3 }
 0x239   :  { %v2619_v38 = vpop.f32.mrf.mxu0 }
 0x23a   :  { %v2620_v54 = vadd.f32 %v2619_v38, %v2607_v35 }
 0x241   :  { %v2621_v39 = vpop.f32.mrf.mxu0 }
 0x259   :  { %v2632_v24 = vpop.f32.mrf.mxu1 }
 0x25a   :  { %v2633_v55 = vadd.f32 %v2632_v24, %v2620_v54 }
 0x261   :  { %v2634_v36 = vpop.f32.mrf.mxu1 }
 0x27f   :  { %v2645_v56 = vpop.f32.mrf.mxu2 }
 0x280   :  { %v2646_v57 = vadd.f32 %v2645_v56, %v2633_v55 }
 0x282   :  { %v2649_v58 = vmax.f32 %v2646_v57, 0.0 }
 0x284   :  { %v2667_v59 = vpack.c.bf16 %v2649_v58, %v2649_v58 }
 0x286   :  { %2727 = vmatmul.bf16.vlgmr.msra.gmra.mxu3 %v2667_v59 }
 0x287   :  { %v2647_v60 = vpop.f32.mrf.mxu2 }
 0x309   :  { %v2728_v4 = vpop.f32.mrf.mxu3 }
 0x30a   :  { %v2729_v5 = vadd.f32 %v4501_v3, %v2728_v4 }
 0x30c   :  { %v2732_v6 = vmax.f32 %v2729_v5, 0.0 }
 0x30e   :  { %v2750_v7 = vpack.c.bf16 %v2732_v6, %v2732_v6 }
 0x310   :  { %2810 = vmatmul.bf16.vlgmr.msrb.gmra.mxu0 %v2750_v7 }
 0x311   :  { %v2730_v8 = vpop.f32.mrf.mxu3 }
 0x38d   :  { %v2811_v16 = vpop.f32.mrf.mxu0 }
 0x38e   :  { %v2812_v17 = vadd.f32 %v4502_v14, %v2811_v16 }
 0x390   :  { %v2815_v18 = vmax.f32 %v2812_v17, 0.0 }
 0x392   :  { %v2833_v21 = vpack.c.bf16 %v2815_v18, %v2815_v18 }
 0x394   :  { %2893 = vmatmul.bf16.vlgmr.msrb.gmra.mxu1 %v2833_v21 }
 0x395   :  { %v2813_v22 = vpop.f32.mrf.mxu0 }
 0x411   :  { %v2894_v25 = vpop.f32.mrf.mxu1 }
 0x412   :  { %v2895_v26 = vadd.f32 %v4503_v23, %v2894_v25 }
 0x414   :  { %2898 = vst [vmem:[#allocation17] sm:$0xff] %v2895_v26 }
 0x415   :  { %2909 = dma.vmem_to_hbm [thread:$0]  %s2905_s19, 128, %s2907_s1, [#allocation4]  }
 0x419   :  { %v2896_v13 = vpop.f32.mrf.mxu1 }
 0x41a   :  { %4754 = dma.done.wait [#allocation4], 128  }
 0x41b   :  { %4755 = vsyncadd [#allocation4], 4294967168 }
 0x41c   :  { %2914 = vsyncpa [#allocation3], 1 }
 0x41d   :  { %2915 = vsyncpa [#allocation6], 1 }
 0x41e   :  { %2916 = vsyncpa [#allocation9], 1 }
 0x41f   :  { %2917 = vsyncpa [#allocation12], 1 }
 0x420   :  { %2918 = vsyncpa [#allocation15], 1 }
 0x421   :  { %2919 = vsyncpa [#allocation4], 1 }

</bundles_post_ra>
